<compile_context>
chip_gen: v7x
topology: tpu7x:2x2x1
jax: 0.10.0
libtpu: 0.0.40
codegen_flags: <defaults>
</compile_context>

<pallas_src>
import numpy as np

import jax
import jax.numpy as jnp
from jax.experimental import pallas as pl
from jax.experimental.pallas import tpu as pltpu

SEQ_LEN = 100          # seq_length
C = 32                 # conv channels
L1 = SEQ_LEN           # 100
L2 = SEQ_LEN // 2      # 50
L3 = SEQ_LEN // 4      # 25
FC1_IN = C * L3        # 800
PACK = 4               # samples lane-packed per 128-lane vreg (4 * 32 channels)


def _round_up(a, m):
    return (a + m - 1) // m * m


# ----------------------------------------------------------------------------
# Kernel
# ----------------------------------------------------------------------------
def critic_kernel(x_ref, w1_ref, w2_ref, w3_ref,
                  fc1w_ref, fc1b_ref, fc2w_ref, fc2b_ref, fc3w_ref, fc3b_ref,
                  out_ref):
    f32 = jnp.float32
    bf16 = jnp.bfloat16
    G = out_ref.shape[0]                   # packed row-group = samples_per_block // 4
    zG = jnp.zeros((G, 128), f32)          # shared zero row-block (hoisted once)

    def lrelu(v):
        return jnp.maximum(v, 0.2 * v)

    def maxpool2(a):
        # MaxPool1d(2) over l (rows are l-major blocks of G): pairwise block max.
        M, Cc = a.shape
        h = a.reshape(M // (2 * G), 2 * G, Cc)
        return jnp.maximum(h[:, :G, :], h[:, G:, :]).reshape(M // 2, Cc)

    def conv32(a, w_ref):
        # Conv1d(32->32, k=3, pad=1), 4 samples lane-packed: all 3 taps in ONE
        # (M,128)x(128,384) matmul; tap alignment via G-row shifts of the result
        # (sublane-aligned copies, zero-padded per position -- never leaks across
        # samples because every sample shares the same l index per row block).
        M = a.shape[0]
        s = jnp.dot(a.astype(bf16), w_ref[...], preferred_element_type=f32)   # (M,384)
        out = s[:, 128:256]                                            # tap k=1 (l)
        out = out + jnp.concatenate([zG, s[:M - G, 0:128]], axis=0)    # tap k=0 (l-1)
        out = out + jnp.concatenate([s[G:, 256:384], zG], axis=0)      # tap k=2 (l+1)
        return out

    # ---- layer 1: taps pre-gathered host-side -> one matmul, pool, LeakyReLU ----
    a1 = jnp.dot(x_ref[...], w1_ref[...], preferred_element_type=f32)   # (100G,128)
    p1 = lrelu(maxpool2(a1))                                            # (50G, 128)

    # ---- layer 2: Conv1d(32->32) + MaxPool(2) + LeakyReLU -----------------------
    p2 = lrelu(maxpool2(conv32(p1, w2_ref)))                            # (25G, 128)

    # ---- layer 3: Conv1d(32->32) + LeakyReLU ------------------------------------
    a3 = lrelu(conv32(p2, w3_ref))                                      # (25G, 128)

    # ---- layer 4: flatten folded into 25 accumulating dots + packed FC stack ----
    acc = jnp.zeros((G, fc1b_ref.shape[1]), f32)
    for l in range(a3.shape[0] // G):
        acc = acc + jnp.dot(a3[l * G:(l + 1) * G, :].astype(bf16), fc1w_ref[l],
                            preferred_element_type=f32)                 # (G, 200)
    h = lrelu(acc + fc1b_ref[...])
    h = lrelu(jnp.dot(h.astype(bf16), fc2w_ref[...],
                      preferred_element_type=f32) + fc2b_ref[...])      # (G, 60)
    out_ref[...] = (jnp.dot(h.astype(bf16), fc3w_ref[...],
                            preferred_element_type=f32) + fc3b_ref[...])  # (G, 4)


# ----------------------------------------------------------------------------
# Wrapper
# ----------------------------------------------------------------------------
def critic_forward(x, kernel_params, block_batch=128):
    B, L = x.shape
    assert L == SEQ_LEN
    (w1p, w2p, w3p, fc1wp, fc1b, fc2wp, fc2b, fc3wp, fc3b) = kernel_params

    # Samples per grid step: multiple of 32 (4 lane-packed samples x 8 sublanes).
    BT = _round_up(min(block_batch, max(B, 1)), PACK * 8)
    if _round_up(B, 32) >= 64:                     # keep >= 2 blocks (v7x dual-TC)
        BT = min(BT, _round_up(_round_up(B, 32) // 2, 32))
    B_pad = _round_up(B, BT)
    n_blocks = B_pad // BT
    G = BT // PACK
    M1 = SEQ_LEN * G

    # Host-side layout prep: gather the 3 conv-1 taps (zero padded per sample) and
    # lane-pack 4 samples per 128-lane row:
    #   row  = l * G + (b_local // 4)
    #   lane = (b_local % 4) * 32 + tap_k         (taps at lanes 0..2 of each group)
    xpad = jnp.zeros((B_pad, L), jnp.float32).at[:B].set(x.astype(jnp.float32))
    xp2 = jnp.pad(xpad, ((0, 0), (1, 1)))
    taps = jnp.stack([xp2[:, k:k + L] for k in range(3)], axis=-1)       # (B_pad,L,3)
    taps = jnp.pad(taps, ((0, 0), (0, 0), (0, C - 3)))                   # (B_pad,L,32)
    x_prep = (taps.reshape(n_blocks, G, PACK, L, C)
                  .transpose(0, 3, 1, 2, 4)
                  .reshape(n_blocks, M1, PACK * C)
                  .astype(jnp.bfloat16))                                 # (nb, 100G, 128)

    def wspec(arr):
        nd = arr.ndim
        return pl.BlockSpec(arr.shape, lambda i, _nd=nd: (0,) * _nd)

    grid_spec = pltpu.PrefetchScalarGridSpec(
        num_scalar_prefetch=0,
        grid=(n_blocks,),
        in_specs=[
            pl.BlockSpec((None, M1, PACK * C), lambda i: (i, 0, 0)),   # x block
            wspec(w1p), wspec(w2p), wspec(w3p),
            wspec(fc1wp), wspec(fc1b), wspec(fc2wp), wspec(fc2b),
            wspec(fc3wp), wspec(fc3b),
        ],
        out_specs=pl.BlockSpec((G, PACK), lambda i: (i, 0)),
    )

    out = pl.pallas_call(
        critic_kernel,
        out_shape=jax.ShapeDtypeStruct((n_blocks * G, PACK), jnp.float32),
        grid_spec=grid_spec,
        compiler_params=pltpu.CompilerParams(
            dimension_semantics=("parallel",),     # shard batch blocks over TCs (v7x)
            vmem_limit_bytes=32 * 1024 * 1024),
    )(x_prep, w1p, w2p, w3p, fc1wp, fc1b, fc2wp, fc2b, fc3wp, fc3b)

    # rows are (block, g), lanes are q = b_local % 4 -> row-major flatten = batch order
    return out.reshape(B_pad, 1)[:B]


# ----------------------------------------------------------------------------
# Parameters (deterministic init) + spectral norm (host-side weight preprocessing)
# ----------------------------------------------------------------------------
def spectral_normalize(w, key, n_power_iterations=10, eps=1e-12):
    """Matches torch.nn.utils.spectral_norm weight normalization (dim=0)."""
    out_c = w.shape[0]
    w_mat = w.reshape(out_c, -1)
    u = jax.random.normal(key, (out_c,), jnp.float32)
    u = u / (jnp.linalg.norm(u) + eps)
    v = None
    for _ in range(n_power_iterations):
        v = w_mat.T @ u
        v = v / (jnp.linalg.norm(v) + eps)
        u = w_mat @ v
        u = u / (jnp.linalg.norm(u) + eps)
    sigma = u @ (w_mat @ v)
    return w / sigma


def init_params(key):
    ks = jax.random.split(key, 12)

    def unif(k, shape, fan_in):
        bound = 1.0 / np.sqrt(fan_in)
        return jax.random.uniform(k, shape, jnp.float32, -bound, bound)

    conv1 = unif(ks[0], (C, 1, 3), 1 * 3)
    conv2 = unif(ks[1], (C, C, 3), C * 3)
    conv3 = unif(ks[2], (C, C, 3), C * 3)
    fc1_w = unif(ks[3], (50, FC1_IN), FC1_IN)
    fc1_b = unif(ks[4], (50,), FC1_IN)
    fc2_w = unif(ks[5], (15, 50), 50)
    fc2_b = unif(ks[6], (15,), 50)
    fc3_w = unif(ks[7], (1, 15), 15)
    fc3_b = unif(ks[8], (1,), 15)

    conv1 = spectral_normalize(conv1, ks[9])
    conv2 = spectral_normalize(conv2, ks[10])
    conv3 = spectral_normalize(conv3, ks[11])
    return conv1, conv2, conv3, fc1_w, fc1_b, fc2_w, fc2_b, fc3_w, fc3_b


def to_kernel_params(p):
    """Re-layout PyTorch-shaped params into 4x block-diagonal packed bf16 weights."""
    conv1, conv2, conv3, fc1_w, fc1_b, fc2_w, fc2_b, fc3_w, fc3_b = p
    eye4 = jnp.eye(PACK, dtype=jnp.float32)

    def blockdiag4(b):                       # (m, n) -> (4m, 4n) block-diagonal
        m, n = b.shape
        return (eye4[:, None, :, None] * b[None, :, None, :]).reshape(PACK * m, PACK * n)

    # layer 1: input lanes are (q*32 + tap_k), output lanes are (q*32 + co)
    b1 = jnp.zeros((C, C), jnp.float32).at[:3, :].set(conv1[:, 0, :].T)     # [k, co]
    w1p = blockdiag4(b1)                                                    # (128, 128)

    def conv_pack(w):     # (co, cin, 3) -> (128, 3*128): taps stacked on output lanes
        return jnp.concatenate([blockdiag4(w[:, :, k].T) for k in range(3)], axis=1)

    w2p = conv_pack(conv2)                                                  # (128, 384)
    w3p = conv_pack(conv3)                                                  # (128, 384)

    # fc1: kernel uses per-l lane blocks (lane = q*32 + c); PyTorch flat = c*25 + l
    base = jnp.transpose(fc1_w.reshape(50, C, L3), (2, 1, 0))               # (25, 32, 50)
    fc1wp = (eye4[None, :, None, :, None] *
             base[:, None, :, None, :]).reshape(L3, PACK * C, PACK * 50)    # (25,128,200)
    fc1b_p = jnp.tile(fc1_b, PACK).reshape(1, PACK * 50)                    # (1, 200)
    fc2wp = blockdiag4(fc2_w.T)                                             # (200, 60)
    fc2b_p = jnp.tile(fc2_b, PACK).reshape(1, PACK * 15)                    # (1, 60)
    fc3wp = blockdiag4(fc3_w.T)                                             # (60, 4)
    fc3b_p = jnp.tile(fc3_b, PACK).reshape(1, PACK)                         # (1, 4)

    bf16 = jnp.bfloat16
    return (w1p.astype(bf16), w2p.astype(bf16), w3p.astype(bf16),
            fc1wp.astype(bf16), fc1b_p, fc2wp.astype(bf16), fc2b_p,
            fc3wp.astype(bf16), fc3b_p)


# ----------------------------------------------------------------------------
# Pure-JAX reference (PyTorch NCL semantics, f32) for a correctness check
# ----------------------------------------------------------------------------
def critic_ref(x, p):
    conv1, conv2, conv3, fc1_w, fc1_b, fc2_w, fc2_b, fc3_w, fc3_b = p

    def conv1d(h, w):                              # h (B, Cin, L), w (Cout, Cin, 3)
        L = h.shape[-1]
        hp = jnp.pad(h, ((0, 0), (0, 0), (1, 1)))
        out = 0.0
        for k in range(3):
            out = out + jnp.einsum('bcl,oc->bol', hp[:, :, k:k + L], w[:, :, k])
        return out

    lrelu = lambda v: jnp.where(v > 0, v, 0.2 * v)
    pool = lambda v: v.reshape(v.shape[0], v.shape[1], v.shape[2] // 2, 2).max(-1)

    h = x[:, None, :]
    h = pool(lrelu(conv1d(h, conv1)))
    h = pool(lrelu(conv1d(h, conv2)))
    h = lrelu(conv1d(h, conv3))
    h = h.reshape(h.shape[0], -1)                  # (B, 800), channel-major flatten
    h = lrelu(h @ fc1_w.T + fc1_b)
    h = lrelu(h @ fc2_w.T + fc2_b)
    return h @ fc3_w.T + fc3_b


# ----------------------------------------------------------------------------
if __name__ == "__main__":
    key = jax.random.PRNGKey(0)
    pkey, xkey = jax.random.split(key)

    params = init_params(pkey)             # PyTorch-shaped (after spectral norm)
    kparams = to_kernel_params(params)     # packed/block-diagonal bf16 copies

    B = 4
    x = jax.random.normal(xkey, (B, SEQ_LEN), jnp.float32)

    out = critic_forward(x, kparams)
    out = jax.block_until_ready(out)

    ref = critic_ref(x, params)
    # bf16 MXU operands (f32 accumulation) -> loosened tolerance vs the f32 reference.
    np.testing.assert_allclose(np.asarray(out), np.asarray(ref),
                               rtol=3e-2, atol=2e-2)
    print("KERNEL_OK")
</pallas_src>

<mosaic_0001>
module attributes {stable_mosaic.version = 11 : i64} {
  func.func @critic_kernel(%arg0: i32, %arg1: memref<1x800x128xbf16, #tpu.memory_space<vmem>>, %arg2: memref<128x128xbf16, #tpu.memory_space<vmem>>, %arg3: memref<128x384xbf16, #tpu.memory_space<vmem>>, %arg4: memref<128x384xbf16, #tpu.memory_space<vmem>>, %arg5: memref<25x128x200xbf16, #tpu.memory_space<vmem>>, %arg6: memref<1x200xf32, #tpu.memory_space<vmem>>, %arg7: memref<200x60xbf16, #tpu.memory_space<vmem>>, %arg8: memref<1x60xf32, #tpu.memory_space<vmem>>, %arg9: memref<60x4xbf16, #tpu.memory_space<vmem>>, %arg10: memref<1x4xf32, #tpu.memory_space<vmem>>, %arg11: memref<8x4xf32, #tpu.memory_space<vmem>>) attributes {dimension_semantics = [#tpu.dimension_semantics<parallel>], iteration_bounds = array<i64: 1>, scalar_prefetch = 0 : i64, scratch_operands = 0 : i64, tpu.core_type = #tpu.core_type<tc>, window_params = [{transform_indices = @transform_0, window_bounds = array<i64: 1, 800, 128>}, {pipeline_mode = #tpu.pipeline_mode<synchronous>, transform_indices = @transform_1, window_bounds = array<i64: 128, 128>}, {pipeline_mode = #tpu.pipeline_mode<synchronous>, transform_indices = @transform_2, window_bounds = array<i64: 128, 384>}, {pipeline_mode = #tpu.pipeline_mode<synchronous>, transform_indices = @transform_3, window_bounds = array<i64: 128, 384>}, {pipeline_mode = #tpu.pipeline_mode<synchronous>, transform_indices = @transform_4, window_bounds = array<i64: 25, 128, 200>}, {pipeline_mode = #tpu.pipeline_mode<synchronous>, transform_indices = @transform_5, window_bounds = array<i64: 1, 200>}, {pipeline_mode = #tpu.pipeline_mode<synchronous>, transform_indices = @transform_6, window_bounds = array<i64: 200, 60>}, {pipeline_mode = #tpu.pipeline_mode<synchronous>, transform_indices = @transform_7, window_bounds = array<i64: 1, 60>}, {pipeline_mode = #tpu.pipeline_mode<synchronous>, transform_indices = @transform_8, window_bounds = array<i64: 60, 4>}, {pipeline_mode = #tpu.pipeline_mode<synchronous>, transform_indices = @transform_9, window_bounds = array<i64: 1, 4>}, {transform_indices = @transform_10, window_bounds = array<i64: 8, 4>}]} {
    %cst = arith.constant 0.000000e+00 : f32
    %0 = vector.broadcast %cst : f32 to vector<8x128xf32>
    %c0 = arith.constant 0 : index
    %c0_0 = arith.constant 0 : index
    %c0_1 = arith.constant 0 : index
    %1 = vector.load %arg1[%c0, %c0_0, %c0_1] : memref<1x800x128xbf16, #tpu.memory_space<vmem>>, vector<1x800x128xbf16>
    %2 = vector.shape_cast %1 : vector<1x800x128xbf16> to vector<800x128xbf16>
    %c0_2 = arith.constant 0 : index
    %c0_3 = arith.constant 0 : index
    %3 = vector.load %arg2[%c0_2, %c0_3] : memref<128x128xbf16, #tpu.memory_space<vmem>>, vector<128x128xbf16>
    %cst_4 = arith.constant dense<0.000000e+00> : vector<800x128xf32>
    %4 = tpu.matmul %2, %3, %cst_4 {dimension_numbers = #tpu.dot_dimension_numbers<[1], [0], [0], [1], [0, 0, 1, 1], [], []>} : vector<800x128xbf16>, vector<128x128xbf16>, vector<800x128xf32> -> vector<800x128xf32>
    %5 = vector.shape_cast %4 : vector<800x128xf32> to vector<50x16x128xf32>
    %6 = vector.extract_strided_slice %5 {offsets = [0, 0, 0], sizes = [50, 8, 128], strides = [1, 1, 1]} : vector<50x16x128xf32> to vector<50x8x128xf32>
    %7 = vector.extract_strided_slice %5 {offsets = [0, 8, 0], sizes = [50, 8, 128], strides = [1, 1, 1]} : vector<50x16x128xf32> to vector<50x8x128xf32>
    %8 = arith.maximumf %6, %7 : vector<50x8x128xf32>
    %9 = vector.shape_cast %8 : vector<50x8x128xf32> to vector<400x128xf32>
    %cst_5 = arith.constant 2.000000e-01 : f32
    %10 = vector.broadcast %cst_5 : f32 to vector<400x128xf32>
    %11 = arith.mulf %10, %9 : vector<400x128xf32>
    %12 = arith.maximumf %9, %11 : vector<400x128xf32>
    %13 = arith.truncf %12 : vector<400x128xf32> to vector<400x128xbf16>
    %c0_6 = arith.constant 0 : index
    %c0_7 = arith.constant 0 : index
    %14 = vector.load %arg3[%c0_6, %c0_7] : memref<128x384xbf16, #tpu.memory_space<vmem>>, vector<128x384xbf16>
    %cst_8 = arith.constant dense<0.000000e+00> : vector<400x384xf32>
    %15 = tpu.matmul %13, %14, %cst_8 {dimension_numbers = #tpu.dot_dimension_numbers<[1], [0], [0], [1], [0, 0, 1, 1], [], []>} : vector<400x128xbf16>, vector<128x384xbf16>, vector<400x384xf32> -> vector<400x384xf32>
    %16 = vector.extract_strided_slice %15 {offsets = [0, 128], sizes = [400, 128], strides = [1, 1]} : vector<400x384xf32> to vector<400x128xf32>
    %17 = vector.extract_strided_slice %15 {offsets = [0, 0], sizes = [392, 128], strides = [1, 1]} : vector<400x384xf32> to vector<392x128xf32>
    %18 = tpu.concatenate %0, %17 in 0 : vector<8x128xf32>, vector<392x128xf32> -> vector<400x128xf32>
    %19 = arith.addf %16, %18 : vector<400x128xf32>
    %20 = vector.extract_strided_slice %15 {offsets = [8, 256], sizes = [392, 128], strides = [1, 1]} : vector<400x384xf32> to vector<392x128xf32>
    %21 = tpu.concatenate %20, %0 in 0 : vector<392x128xf32>, vector<8x128xf32> -> vector<400x128xf32>
    %22 = arith.addf %19, %21 : vector<400x128xf32>
    %23 = vector.shape_cast %22 : vector<400x128xf32> to vector<25x16x128xf32>
    %24 = vector.extract_strided_slice %23 {offsets = [0, 0, 0], sizes = [25, 8, 128], strides = [1, 1, 1]} : vector<25x16x128xf32> to vector<25x8x128xf32>
    %25 = vector.extract_strided_slice %23 {offsets = [0, 8, 0], sizes = [25, 8, 128], strides = [1, 1, 1]} : vector<25x16x128xf32> to vector<25x8x128xf32>
    %26 = arith.maximumf %24, %25 : vector<25x8x128xf32>
    %27 = vector.shape_cast %26 : vector<25x8x128xf32> to vector<200x128xf32>
    %cst_9 = arith.constant 2.000000e-01 : f32
    %28 = vector.broadcast %cst_9 : f32 to vector<200x128xf32>
    %29 = arith.mulf %28, %27 : vector<200x128xf32>
    %30 = arith.maximumf %27, %29 : vector<200x128xf32>
    %31 = arith.truncf %30 : vector<200x128xf32> to vector<200x128xbf16>
    %c0_10 = arith.constant 0 : index
    %c0_11 = arith.constant 0 : index
    %32 = vector.load %arg4[%c0_10, %c0_11] : memref<128x384xbf16, #tpu.memory_space<vmem>>, vector<128x384xbf16>
    %cst_12 = arith.constant dense<0.000000e+00> : vector<200x384xf32>
    %33 = tpu.matmul %31, %32, %cst_12 {dimension_numbers = #tpu.dot_dimension_numbers<[1], [0], [0], [1], [0, 0, 1, 1], [], []>} : vector<200x128xbf16>, vector<128x384xbf16>, vector<200x384xf32> -> vector<200x384xf32>
    %34 = vector.extract_strided_slice %33 {offsets = [0, 128], sizes = [200, 128], strides = [1, 1]} : vector<200x384xf32> to vector<200x128xf32>
    %35 = vector.extract_strided_slice %33 {offsets = [0, 0], sizes = [192, 128], strides = [1, 1]} : vector<200x384xf32> to vector<192x128xf32>
    %36 = tpu.concatenate %0, %35 in 0 : vector<8x128xf32>, vector<192x128xf32> -> vector<200x128xf32>
    %37 = arith.addf %34, %36 : vector<200x128xf32>
    %38 = vector.extract_strided_slice %33 {offsets = [8, 256], sizes = [192, 128], strides = [1, 1]} : vector<200x384xf32> to vector<192x128xf32>
    %39 = tpu.concatenate %38, %0 in 0 : vector<192x128xf32>, vector<8x128xf32> -> vector<200x128xf32>
    %40 = arith.addf %37, %39 : vector<200x128xf32>
    %cst_13 = arith.constant 2.000000e-01 : f32
    %41 = vector.broadcast %cst_13 : f32 to vector<200x128xf32>
    %42 = arith.mulf %41, %40 : vector<200x128xf32>
    %43 = arith.maximumf %40, %42 : vector<200x128xf32>
    %cst_14 = arith.constant 0.000000e+00 : f32
    %44 = vector.broadcast %cst_14 : f32 to vector<8x200xf32>
    %45 = vector.extract_strided_slice %43 {offsets = [0, 0], sizes = [8, 128], strides = [1, 1]} : vector<200x128xf32> to vector<8x128xf32>
    %46 = arith.truncf %45 : vector<8x128xf32> to vector<8x128xbf16>
    %c0_15 = arith.constant 0 : index
    %c0_16 = arith.constant 0 : index
    %c0_17 = arith.constant 0 : index
    %47 = vector.load %arg5[%c0_15, %c0_16, %c0_17] : memref<25x128x200xbf16, #tpu.memory_space<vmem>>, vector<1x128x200xbf16>
    %48 = vector.shape_cast %47 : vector<1x128x200xbf16> to vector<128x200xbf16>
    %cst_18 = arith.constant dense<0.000000e+00> : vector<8x200xf32>
    %49 = tpu.matmul %46, %48, %cst_18 {dimension_numbers = #tpu.dot_dimension_numbers<[1], [0], [0], [1], [0, 0, 1, 1], [], []>} : vector<8x128xbf16>, vector<128x200xbf16>, vector<8x200xf32> -> vector<8x200xf32>
    %50 = arith.addf %44, %49 : vector<8x200xf32>
    %51 = vector.extract_strided_slice %43 {offsets = [8, 0], sizes = [8, 128], strides = [1, 1]} : vector<200x128xf32> to vector<8x128xf32>
    %52 = arith.truncf %51 : vector<8x128xf32> to vector<8x128xbf16>
    %c1 = arith.constant 1 : index
    %c0_19 = arith.constant 0 : index
    %c0_20 = arith.constant 0 : index
    %53 = vector.load %arg5[%c1, %c0_19, %c0_20] : memref<25x128x200xbf16, #tpu.memory_space<vmem>>, vector<1x128x200xbf16>
    %54 = vector.shape_cast %53 : vector<1x128x200xbf16> to vector<128x200xbf16>
    %cst_21 = arith.constant dense<0.000000e+00> : vector<8x200xf32>
    %55 = tpu.matmul %52, %54, %cst_21 {dimension_numbers = #tpu.dot_dimension_numbers<[1], [0], [0], [1], [0, 0, 1, 1], [], []>} : vector<8x128xbf16>, vector<128x200xbf16>, vector<8x200xf32> -> vector<8x200xf32>
    %56 = arith.addf %50, %55 : vector<8x200xf32>
    %57 = vector.extract_strided_slice %43 {offsets = [16, 0], sizes = [8, 128], strides = [1, 1]} : vector<200x128xf32> to vector<8x128xf32>
    %58 = arith.truncf %57 : vector<8x128xf32> to vector<8x128xbf16>
    %c2 = arith.constant 2 : index
    %c0_22 = arith.constant 0 : index
    %c0_23 = arith.constant 0 : index
    %59 = vector.load %arg5[%c2, %c0_22, %c0_23] : memref<25x128x200xbf16, #tpu.memory_space<vmem>>, vector<1x128x200xbf16>
    %60 = vector.shape_cast %59 : vector<1x128x200xbf16> to vector<128x200xbf16>
    %cst_24 = arith.constant dense<0.000000e+00> : vector<8x200xf32>
    %61 = tpu.matmul %58, %60, %cst_24 {dimension_numbers = #tpu.dot_dimension_numbers<[1], [0], [0], [1], [0, 0, 1, 1], [], []>} : vector<8x128xbf16>, vector<128x200xbf16>, vector<8x200xf32> -> vector<8x200xf32>
    %62 = arith.addf %56, %61 : vector<8x200xf32>
    %63 = vector.extract_strided_slice %43 {offsets = [24, 0], sizes = [8, 128], strides = [1, 1]} : vector<200x128xf32> to vector<8x128xf32>
    %64 = arith.truncf %63 : vector<8x128xf32> to vector<8x128xbf16>
    %c3 = arith.constant 3 : index
    %c0_25 = arith.constant 0 : index
    %c0_26 = arith.constant 0 : index
    %65 = vector.load %arg5[%c3, %c0_25, %c0_26] : memref<25x128x200xbf16, #tpu.memory_space<vmem>>, vector<1x128x200xbf16>
    %66 = vector.shape_cast %65 : vector<1x128x200xbf16> to vector<128x200xbf16>
    %cst_27 = arith.constant dense<0.000000e+00> : vector<8x200xf32>
    %67 = tpu.matmul %64, %66, %cst_27 {dimension_numbers = #tpu.dot_dimension_numbers<[1], [0], [0], [1], [0, 0, 1, 1], [], []>} : vector<8x128xbf16>, vector<128x200xbf16>, vector<8x200xf32> -> vector<8x200xf32>
    %68 = arith.addf %62, %67 : vector<8x200xf32>
    %69 = vector.extract_strided_slice %43 {offsets = [32, 0], sizes = [8, 128], strides = [1, 1]} : vector<200x128xf32> to vector<8x128xf32>
    %70 = arith.truncf %69 : vector<8x128xf32> to vector<8x128xbf16>
    %c4 = arith.constant 4 : index
    %c0_28 = arith.constant 0 : index
    %c0_29 = arith.constant 0 : index
    %71 = vector.load %arg5[%c4, %c0_28, %c0_29] : memref<25x128x200xbf16, #tpu.memory_space<vmem>>, vector<1x128x200xbf16>
    %72 = vector.shape_cast %71 : vector<1x128x200xbf16> to vector<128x200xbf16>
    %cst_30 = arith.constant dense<0.000000e+00> : vector<8x200xf32>
    %73 = tpu.matmul %70, %72, %cst_30 {dimension_numbers = #tpu.dot_dimension_numbers<[1], [0], [0], [1], [0, 0, 1, 1], [], []>} : vector<8x128xbf16>, vector<128x200xbf16>, vector<8x200xf32> -> vector<8x200xf32>
    %74 = arith.addf %68, %73 : vector<8x200xf32>
    %75 = vector.extract_strided_slice %43 {offsets = [40, 0], sizes = [8, 128], strides = [1, 1]} : vector<200x128xf32> to vector<8x128xf32>
    %76 = arith.truncf %75 : vector<8x128xf32> to vector<8x128xbf16>
    %c5 = arith.constant 5 : index
    %c0_31 = arith.constant 0 : index
    %c0_32 = arith.constant 0 : index
    %77 = vector.load %arg5[%c5, %c0_31, %c0_32] : memref<25x128x200xbf16, #tpu.memory_space<vmem>>, vector<1x128x200xbf16>
    %78 = vector.shape_cast %77 : vector<1x128x200xbf16> to vector<128x200xbf16>
    %cst_33 = arith.constant dense<0.000000e+00> : vector<8x200xf32>
    %79 = tpu.matmul %76, %78, %cst_33 {dimension_numbers = #tpu.dot_dimension_numbers<[1], [0], [0], [1], [0, 0, 1, 1], [], []>} : vector<8x128xbf16>, vector<128x200xbf16>, vector<8x200xf32> -> vector<8x200xf32>
    %80 = arith.addf %74, %79 : vector<8x200xf32>
    %81 = vector.extract_strided_slice %43 {offsets = [48, 0], sizes = [8, 128], strides = [1, 1]} : vector<200x128xf32> to vector<8x128xf32>
    %82 = arith.truncf %81 : vector<8x128xf32> to vector<8x128xbf16>
    %c6 = arith.constant 6 : index
    %c0_34 = arith.constant 0 : index
    %c0_35 = arith.constant 0 : index
    %83 = vector.load %arg5[%c6, %c0_34, %c0_35] : memref<25x128x200xbf16, #tpu.memory_space<vmem>>, vector<1x128x200xbf16>
    %84 = vector.shape_cast %83 : vector<1x128x200xbf16> to vector<128x200xbf16>
    %cst_36 = arith.constant dense<0.000000e+00> : vector<8x200xf32>
    %85 = tpu.matmul %82, %84, %cst_36 {dimension_numbers = #tpu.dot_dimension_numbers<[1], [0], [0], [1], [0, 0, 1, 1], [], []>} : vector<8x128xbf16>, vector<128x200xbf16>, vector<8x200xf32> -> vector<8x200xf32>
    %86 = arith.addf %80, %85 : vector<8x200xf32>
    %87 = vector.extract_strided_slice %43 {offsets = [56, 0], sizes = [8, 128], strides = [1, 1]} : vector<200x128xf32> to vector<8x128xf32>
    %88 = arith.truncf %87 : vector<8x128xf32> to vector<8x128xbf16>
    %c7 = arith.constant 7 : index
    %c0_37 = arith.constant 0 : index
    %c0_38 = arith.constant 0 : index
    %89 = vector.load %arg5[%c7, %c0_37, %c0_38] : memref<25x128x200xbf16, #tpu.memory_space<vmem>>, vector<1x128x200xbf16>
    %90 = vector.shape_cast %89 : vector<1x128x200xbf16> to vector<128x200xbf16>
    %cst_39 = arith.constant dense<0.000000e+00> : vector<8x200xf32>
    %91 = tpu.matmul %88, %90, %cst_39 {dimension_numbers = #tpu.dot_dimension_numbers<[1], [0], [0], [1], [0, 0, 1, 1], [], []>} : vector<8x128xbf16>, vector<128x200xbf16>, vector<8x200xf32> -> vector<8x200xf32>
    %92 = arith.addf %86, %91 : vector<8x200xf32>
    %93 = vector.extract_strided_slice %43 {offsets = [64, 0], sizes = [8, 128], strides = [1, 1]} : vector<200x128xf32> to vector<8x128xf32>
    %94 = arith.truncf %93 : vector<8x128xf32> to vector<8x128xbf16>
    %c8 = arith.constant 8 : index
    %c0_40 = arith.constant 0 : index
    %c0_41 = arith.constant 0 : index
    %95 = vector.load %arg5[%c8, %c0_40, %c0_41] : memref<25x128x200xbf16, #tpu.memory_space<vmem>>, vector<1x128x200xbf16>
    %96 = vector.shape_cast %95 : vector<1x128x200xbf16> to vector<128x200xbf16>
    %cst_42 = arith.constant dense<0.000000e+00> : vector<8x200xf32>
    %97 = tpu.matmul %94, %96, %cst_42 {dimension_numbers = #tpu.dot_dimension_numbers<[1], [0], [0], [1], [0, 0, 1, 1], [], []>} : vector<8x128xbf16>, vector<128x200xbf16>, vector<8x200xf32> -> vector<8x200xf32>
    %98 = arith.addf %92, %97 : vector<8x200xf32>
    %99 = vector.extract_strided_slice %43 {offsets = [72, 0], sizes = [8, 128], strides = [1, 1]} : vector<200x128xf32> to vector<8x128xf32>
    %100 = arith.truncf %99 : vector<8x128xf32> to vector<8x128xbf16>
    %c9 = arith.constant 9 : index
    %c0_43 = arith.constant 0 : index
    %c0_44 = arith.constant 0 : index
    %101 = vector.load %arg5[%c9, %c0_43, %c0_44] : memref<25x128x200xbf16, #tpu.memory_space<vmem>>, vector<1x128x200xbf16>
    %102 = vector.shape_cast %101 : vector<1x128x200xbf16> to vector<128x200xbf16>
    %cst_45 = arith.constant dense<0.000000e+00> : vector<8x200xf32>
    %103 = tpu.matmul %100, %102, %cst_45 {dimension_numbers = #tpu.dot_dimension_numbers<[1], [0], [0], [1], [0, 0, 1, 1], [], []>} : vector<8x128xbf16>, vector<128x200xbf16>, vector<8x200xf32> -> vector<8x200xf32>
    %104 = arith.addf %98, %103 : vector<8x200xf32>
    %105 = vector.extract_strided_slice %43 {offsets = [80, 0], sizes = [8, 128], strides = [1, 1]} : vector<200x128xf32> to vector<8x128xf32>
    %106 = arith.truncf %105 : vector<8x128xf32> to vector<8x128xbf16>
    %c10 = arith.constant 10 : index
    %c0_46 = arith.constant 0 : index
    %c0_47 = arith.constant 0 : index
    %107 = vector.load %arg5[%c10, %c0_46, %c0_47] : memref<25x128x200xbf16, #tpu.memory_space<vmem>>, vector<1x128x200xbf16>
    %108 = vector.shape_cast %107 : vector<1x128x200xbf16> to vector<128x200xbf16>
    %cst_48 = arith.constant dense<0.000000e+00> : vector<8x200xf32>
    %109 = tpu.matmul %106, %108, %cst_48 {dimension_numbers = #tpu.dot_dimension_numbers<[1], [0], [0], [1], [0, 0, 1, 1], [], []>} : vector<8x128xbf16>, vector<128x200xbf16>, vector<8x200xf32> -> vector<8x200xf32>
    %110 = arith.addf %104, %109 : vector<8x200xf32>
    %111 = vector.extract_strided_slice %43 {offsets = [88, 0], sizes = [8, 128], strides = [1, 1]} : vector<200x128xf32> to vector<8x128xf32>
    %112 = arith.truncf %111 : vector<8x128xf32> to vector<8x128xbf16>
    %c11 = arith.constant 11 : index
    %c0_49 = arith.constant 0 : index
    %c0_50 = arith.constant 0 : index
    %113 = vector.load %arg5[%c11, %c0_49, %c0_50] : memref<25x128x200xbf16, #tpu.memory_space<vmem>>, vector<1x128x200xbf16>
    %114 = vector.shape_cast %113 : vector<1x128x200xbf16> to vector<128x200xbf16>
    %cst_51 = arith.constant dense<0.000000e+00> : vector<8x200xf32>
    %115 = tpu.matmul %112, %114, %cst_51 {dimension_numbers = #tpu.dot_dimension_numbers<[1], [0], [0], [1], [0, 0, 1, 1], [], []>} : vector<8x128xbf16>, vector<128x200xbf16>, vector<8x200xf32> -> vector<8x200xf32>
    %116 = arith.addf %110, %115 : vector<8x200xf32>
    %117 = vector.extract_strided_slice %43 {offsets = [96, 0], sizes = [8, 128], strides = [1, 1]} : vector<200x128xf32> to vector<8x128xf32>
    %118 = arith.truncf %117 : vector<8x128xf32> to vector<8x128xbf16>
    %c12 = arith.constant 12 : index
    %c0_52 = arith.constant 0 : index
    %c0_53 = arith.constant 0 : index
    %119 = vector.load %arg5[%c12, %c0_52, %c0_53] : memref<25x128x200xbf16, #tpu.memory_space<vmem>>, vector<1x128x200xbf16>
    %120 = vector.shape_cast %119 : vector<1x128x200xbf16> to vector<128x200xbf16>
    %cst_54 = arith.constant dense<0.000000e+00> : vector<8x200xf32>
    %121 = tpu.matmul %118, %120, %cst_54 {dimension_numbers = #tpu.dot_dimension_numbers<[1], [0], [0], [1], [0, 0, 1, 1], [], []>} : vector<8x128xbf16>, vector<128x200xbf16>, vector<8x200xf32> -> vector<8x200xf32>
    %122 = arith.addf %116, %121 : vector<8x200xf32>
    %123 = vector.extract_strided_slice %43 {offsets = [104, 0], sizes = [8, 128], strides = [1, 1]} : vector<200x128xf32> to vector<8x128xf32>
    %124 = arith.truncf %123 : vector<8x128xf32> to vector<8x128xbf16>
    %c13 = arith.constant 13 : index
    %c0_55 = arith.constant 0 : index
    %c0_56 = arith.constant 0 : index
    %125 = vector.load %arg5[%c13, %c0_55, %c0_56] : memref<25x128x200xbf16, #tpu.memory_space<vmem>>, vector<1x128x200xbf16>
    %126 = vector.shape_cast %125 : vector<1x128x200xbf16> to vector<128x200xbf16>
    %cst_57 = arith.constant dense<0.000000e+00> : vector<8x200xf32>
    %127 = tpu.matmul %124, %126, %cst_57 {dimension_numbers = #tpu.dot_dimension_numbers<[1], [0], [0], [1], [0, 0, 1, 1], [], []>} : vector<8x128xbf16>, vector<128x200xbf16>, vector<8x200xf32> -> vector<8x200xf32>
    %128 = arith.addf %122, %127 : vector<8x200xf32>
    %129 = vector.extract_strided_slice %43 {offsets = [112, 0], sizes = [8, 128], strides = [1, 1]} : vector<200x128xf32> to vector<8x128xf32>
    %130 = arith.truncf %129 : vector<8x128xf32> to vector<8x128xbf16>
    %c14 = arith.constant 14 : index
    %c0_58 = arith.constant 0 : index
    %c0_59 = arith.constant 0 : index
    %131 = vector.load %arg5[%c14, %c0_58, %c0_59] : memref<25x128x200xbf16, #tpu.memory_space<vmem>>, vector<1x128x200xbf16>
    %132 = vector.shape_cast %131 : vector<1x128x200xbf16> to vector<128x200xbf16>
    %cst_60 = arith.constant dense<0.000000e+00> : vector<8x200xf32>
    %133 = tpu.matmul %130, %132, %cst_60 {dimension_numbers = #tpu.dot_dimension_numbers<[1], [0], [0], [1], [0, 0, 1, 1], [], []>} : vector<8x128xbf16>, vector<128x200xbf16>, vector<8x200xf32> -> vector<8x200xf32>
    %134 = arith.addf %128, %133 : vector<8x200xf32>
    %135 = vector.extract_strided_slice %43 {offsets = [120, 0], sizes = [8, 128], strides = [1, 1]} : vector<200x128xf32> to vector<8x128xf32>
    %136 = arith.truncf %135 : vector<8x128xf32> to vector<8x128xbf16>
    %c15 = arith.constant 15 : index
    %c0_61 = arith.constant 0 : index
    %c0_62 = arith.constant 0 : index
    %137 = vector.load %arg5[%c15, %c0_61, %c0_62] : memref<25x128x200xbf16, #tpu.memory_space<vmem>>, vector<1x128x200xbf16>
    %138 = vector.shape_cast %137 : vector<1x128x200xbf16> to vector<128x200xbf16>
    %cst_63 = arith.constant dense<0.000000e+00> : vector<8x200xf32>
    %139 = tpu.matmul %136, %138, %cst_63 {dimension_numbers = #tpu.dot_dimension_numbers<[1], [0], [0], [1], [0, 0, 1, 1], [], []>} : vector<8x128xbf16>, vector<128x200xbf16>, vector<8x200xf32> -> vector<8x200xf32>
    %140 = arith.addf %134, %139 : vector<8x200xf32>
    %141 = vector.extract_strided_slice %43 {offsets = [128, 0], sizes = [8, 128], strides = [1, 1]} : vector<200x128xf32> to vector<8x128xf32>
    %142 = arith.truncf %141 : vector<8x128xf32> to vector<8x128xbf16>
    %c16 = arith.constant 16 : index
    %c0_64 = arith.constant 0 : index
    %c0_65 = arith.constant 0 : index
    %143 = vector.load %arg5[%c16, %c0_64, %c0_65] : memref<25x128x200xbf16, #tpu.memory_space<vmem>>, vector<1x128x200xbf16>
    %144 = vector.shape_cast %143 : vector<1x128x200xbf16> to vector<128x200xbf16>
    %cst_66 = arith.constant dense<0.000000e+00> : vector<8x200xf32>
    %145 = tpu.matmul %142, %144, %cst_66 {dimension_numbers = #tpu.dot_dimension_numbers<[1], [0], [0], [1], [0, 0, 1, 1], [], []>} : vector<8x128xbf16>, vector<128x200xbf16>, vector<8x200xf32> -> vector<8x200xf32>
    %146 = arith.addf %140, %145 : vector<8x200xf32>
    %147 = vector.extract_strided_slice %43 {offsets = [136, 0], sizes = [8, 128], strides = [1, 1]} : vector<200x128xf32> to vector<8x128xf32>
    %148 = arith.truncf %147 : vector<8x128xf32> to vector<8x128xbf16>
    %c17 = arith.constant 17 : index
    %c0_67 = arith.constant 0 : index
    %c0_68 = arith.constant 0 : index
    %149 = vector.load %arg5[%c17, %c0_67, %c0_68] : memref<25x128x200xbf16, #tpu.memory_space<vmem>>, vector<1x128x200xbf16>
    %150 = vector.shape_cast %149 : vector<1x128x200xbf16> to vector<128x200xbf16>
    %cst_69 = arith.constant dense<0.000000e+00> : vector<8x200xf32>
    %151 = tpu.matmul %148, %150, %cst_69 {dimension_numbers = #tpu.dot_dimension_numbers<[1], [0], [0], [1], [0, 0, 1, 1], [], []>} : vector<8x128xbf16>, vector<128x200xbf16>, vector<8x200xf32> -> vector<8x200xf32>
    %152 = arith.addf %146, %151 : vector<8x200xf32>
    %153 = vector.extract_strided_slice %43 {offsets = [144, 0], sizes = [8, 128], strides = [1, 1]} : vector<200x128xf32> to vector<8x128xf32>
    %154 = arith.truncf %153 : vector<8x128xf32> to vector<8x128xbf16>
    %c18 = arith.constant 18 : index
    %c0_70 = arith.constant 0 : index
    %c0_71 = arith.constant 0 : index
    %155 = vector.load %arg5[%c18, %c0_70, %c0_71] : memref<25x128x200xbf16, #tpu.memory_space<vmem>>, vector<1x128x200xbf16>
    %156 = vector.shape_cast %155 : vector<1x128x200xbf16> to vector<128x200xbf16>
    %cst_72 = arith.constant dense<0.000000e+00> : vector<8x200xf32>
    %157 = tpu.matmul %154, %156, %cst_72 {dimension_numbers = #tpu.dot_dimension_numbers<[1], [0], [0], [1], [0, 0, 1, 1], [], []>} : vector<8x128xbf16>, vector<128x200xbf16>, vector<8x200xf32> -> vector<8x200xf32>
    %158 = arith.addf %152, %157 : vector<8x200xf32>
    %159 = vector.extract_strided_slice %43 {offsets = [152, 0], sizes = [8, 128], strides = [1, 1]} : vector<200x128xf32> to vector<8x128xf32>
    %160 = arith.truncf %159 : vector<8x128xf32> to vector<8x128xbf16>
    %c19 = arith.constant 19 : index
    %c0_73 = arith.constant 0 : index
    %c0_74 = arith.constant 0 : index
    %161 = vector.load %arg5[%c19, %c0_73, %c0_74] : memref<25x128x200xbf16, #tpu.memory_space<vmem>>, vector<1x128x200xbf16>
    %162 = vector.shape_cast %161 : vector<1x128x200xbf16> to vector<128x200xbf16>
    %cst_75 = arith.constant dense<0.000000e+00> : vector<8x200xf32>
    %163 = tpu.matmul %160, %162, %cst_75 {dimension_numbers = #tpu.dot_dimension_numbers<[1], [0], [0], [1], [0, 0, 1, 1], [], []>} : vector<8x128xbf16>, vector<128x200xbf16>, vector<8x200xf32> -> vector<8x200xf32>
    %164 = arith.addf %158, %163 : vector<8x200xf32>
    %165 = vector.extract_strided_slice %43 {offsets = [160, 0], sizes = [8, 128], strides = [1, 1]} : vector<200x128xf32> to vector<8x128xf32>
    %166 = arith.truncf %165 : vector<8x128xf32> to vector<8x128xbf16>
    %c20 = arith.constant 20 : index
    %c0_76 = arith.constant 0 : index
    %c0_77 = arith.constant 0 : index
    %167 = vector.load %arg5[%c20, %c0_76, %c0_77] : memref<25x128x200xbf16, #tpu.memory_space<vmem>>, vector<1x128x200xbf16>
    %168 = vector.shape_cast %167 : vector<1x128x200xbf16> to vector<128x200xbf16>
    %cst_78 = arith.constant dense<0.000000e+00> : vector<8x200xf32>
    %169 = tpu.matmul %166, %168, %cst_78 {dimension_numbers = #tpu.dot_dimension_numbers<[1], [0], [0], [1], [0, 0, 1, 1], [], []>} : vector<8x128xbf16>, vector<128x200xbf16>, vector<8x200xf32> -> vector<8x200xf32>
    %170 = arith.addf %164, %169 : vector<8x200xf32>
    %171 = vector.extract_strided_slice %43 {offsets = [168, 0], sizes = [8, 128], strides = [1, 1]} : vector<200x128xf32> to vector<8x128xf32>
    %172 = arith.truncf %171 : vector<8x128xf32> to vector<8x128xbf16>
    %c21 = arith.constant 21 : index
    %c0_79 = arith.constant 0 : index
    %c0_80 = arith.constant 0 : index
    %173 = vector.load %arg5[%c21, %c0_79, %c0_80] : memref<25x128x200xbf16, #tpu.memory_space<vmem>>, vector<1x128x200xbf16>
    %174 = vector.shape_cast %173 : vector<1x128x200xbf16> to vector<128x200xbf16>
    %cst_81 = arith.constant dense<0.000000e+00> : vector<8x200xf32>
    %175 = tpu.matmul %172, %174, %cst_81 {dimension_numbers = #tpu.dot_dimension_numbers<[1], [0], [0], [1], [0, 0, 1, 1], [], []>} : vector<8x128xbf16>, vector<128x200xbf16>, vector<8x200xf32> -> vector<8x200xf32>
    %176 = arith.addf %170, %175 : vector<8x200xf32>
    %177 = vector.extract_strided_slice %43 {offsets = [176, 0], sizes = [8, 128], strides = [1, 1]} : vector<200x128xf32> to vector<8x128xf32>
    %178 = arith.truncf %177 : vector<8x128xf32> to vector<8x128xbf16>
    %c22 = arith.constant 22 : index
    %c0_82 = arith.constant 0 : index
    %c0_83 = arith.constant 0 : index
    %179 = vector.load %arg5[%c22, %c0_82, %c0_83] : memref<25x128x200xbf16, #tpu.memory_space<vmem>>, vector<1x128x200xbf16>
    %180 = vector.shape_cast %179 : vector<1x128x200xbf16> to vector<128x200xbf16>
    %cst_84 = arith.constant dense<0.000000e+00> : vector<8x200xf32>
    %181 = tpu.matmul %178, %180, %cst_84 {dimension_numbers = #tpu.dot_dimension_numbers<[1], [0], [0], [1], [0, 0, 1, 1], [], []>} : vector<8x128xbf16>, vector<128x200xbf16>, vector<8x200xf32> -> vector<8x200xf32>
    %182 = arith.addf %176, %181 : vector<8x200xf32>
    %183 = vector.extract_strided_slice %43 {offsets = [184, 0], sizes = [8, 128], strides = [1, 1]} : vector<200x128xf32> to vector<8x128xf32>
    %184 = arith.truncf %183 : vector<8x128xf32> to vector<8x128xbf16>
    %c23 = arith.constant 23 : index
    %c0_85 = arith.constant 0 : index
    %c0_86 = arith.constant 0 : index
    %185 = vector.load %arg5[%c23, %c0_85, %c0_86] : memref<25x128x200xbf16, #tpu.memory_space<vmem>>, vector<1x128x200xbf16>
    %186 = vector.shape_cast %185 : vector<1x128x200xbf16> to vector<128x200xbf16>
    %cst_87 = arith.constant dense<0.000000e+00> : vector<8x200xf32>
    %187 = tpu.matmul %184, %186, %cst_87 {dimension_numbers = #tpu.dot_dimension_numbers<[1], [0], [0], [1], [0, 0, 1, 1], [], []>} : vector<8x128xbf16>, vector<128x200xbf16>, vector<8x200xf32> -> vector<8x200xf32>
    %188 = arith.addf %182, %187 : vector<8x200xf32>
    %189 = vector.extract_strided_slice %43 {offsets = [192, 0], sizes = [8, 128], strides = [1, 1]} : vector<200x128xf32> to vector<8x128xf32>
    %190 = arith.truncf %189 : vector<8x128xf32> to vector<8x128xbf16>
    %c24 = arith.constant 24 : index
    %c0_88 = arith.constant 0 : index
    %c0_89 = arith.constant 0 : index
    %191 = vector.load %arg5[%c24, %c0_88, %c0_89] : memref<25x128x200xbf16, #tpu.memory_space<vmem>>, vector<1x128x200xbf16>
    %192 = vector.shape_cast %191 : vector<1x128x200xbf16> to vector<128x200xbf16>
    %cst_90 = arith.constant dense<0.000000e+00> : vector<8x200xf32>
    %193 = tpu.matmul %190, %192, %cst_90 {dimension_numbers = #tpu.dot_dimension_numbers<[1], [0], [0], [1], [0, 0, 1, 1], [], []>} : vector<8x128xbf16>, vector<128x200xbf16>, vector<8x200xf32> -> vector<8x200xf32>
    %194 = arith.addf %188, %193 : vector<8x200xf32>
    %c0_91 = arith.constant 0 : index
    %c0_92 = arith.constant 0 : index
    %195 = vector.load %arg6[%c0_91, %c0_92] : memref<1x200xf32, #tpu.memory_space<vmem>>, vector<1x200xf32>
    %196 = vector.broadcast %195 : vector<1x200xf32> to vector<8x200xf32>
    %197 = arith.addf %194, %196 : vector<8x200xf32>
    %cst_93 = arith.constant 2.000000e-01 : f32
    %198 = vector.broadcast %cst_93 : f32 to vector<8x200xf32>
    %199 = arith.mulf %198, %197 : vector<8x200xf32>
    %200 = arith.maximumf %197, %199 : vector<8x200xf32>
    %201 = arith.truncf %200 : vector<8x200xf32> to vector<8x200xbf16>
    %c0_94 = arith.constant 0 : index
    %c0_95 = arith.constant 0 : index
    %202 = vector.load %arg7[%c0_94, %c0_95] : memref<200x60xbf16, #tpu.memory_space<vmem>>, vector<200x60xbf16>
    %cst_96 = arith.constant dense<0.000000e+00> : vector<8x60xf32>
    %203 = tpu.matmul %201, %202, %cst_96 {dimension_numbers = #tpu.dot_dimension_numbers<[1], [0], [0], [1], [0, 0, 1, 1], [], []>} : vector<8x200xbf16>, vector<200x60xbf16>, vector<8x60xf32> -> vector<8x60xf32>
    %c0_97 = arith.constant 0 : index
    %c0_98 = arith.constant 0 : index
    %204 = vector.load %arg8[%c0_97, %c0_98] : memref<1x60xf32, #tpu.memory_space<vmem>>, vector<1x60xf32>
    %205 = vector.broadcast %204 : vector<1x60xf32> to vector<8x60xf32>
    %206 = arith.addf %203, %205 : vector<8x60xf32>
    %cst_99 = arith.constant 2.000000e-01 : f32
    %207 = vector.broadcast %cst_99 : f32 to vector<8x60xf32>
    %208 = arith.mulf %207, %206 : vector<8x60xf32>
    %209 = arith.maximumf %206, %208 : vector<8x60xf32>
    %210 = arith.truncf %209 : vector<8x60xf32> to vector<8x60xbf16>
    %c0_100 = arith.constant 0 : index
    %c0_101 = arith.constant 0 : index
    %211 = vector.load %arg9[%c0_100, %c0_101] : memref<60x4xbf16, #tpu.memory_space<vmem>>, vector<60x4xbf16>
    %cst_102 = arith.constant dense<0.000000e+00> : vector<8x4xf32>
    %212 = tpu.matmul %210, %211, %cst_102 {dimension_numbers = #tpu.dot_dimension_numbers<[1], [0], [0], [1], [0, 0, 1, 1], [], []>} : vector<8x60xbf16>, vector<60x4xbf16>, vector<8x4xf32> -> vector<8x4xf32>
    %c0_103 = arith.constant 0 : index
    %c0_104 = arith.constant 0 : index
    %213 = vector.load %arg10[%c0_103, %c0_104] : memref<1x4xf32, #tpu.memory_space<vmem>>, vector<1x4xf32>
    %214 = vector.broadcast %213 : vector<1x4xf32> to vector<8x4xf32>
    %215 = arith.addf %212, %214 : vector<8x4xf32>
    %c0_105 = arith.constant 0 : index
    %c0_106 = arith.constant 0 : index
    %216 = vector.load %arg11[%c0_105, %c0_106] : memref<8x4xf32, #tpu.memory_space<vmem>>, vector<8x4xf32>
    tpu.vector_store %arg11[%c0_105, %c0_106], %215 {strides = array<i32>} : memref<8x4xf32, #tpu.memory_space<vmem>>, vector<8x4xf32>,
    return
  }
  func.func @transform_0(%arg0: i32) -> (i32, i32, i32) {
    %c0_i32 = arith.constant 0 : i32
    %c0_i32_0 = arith.constant 0 : i32
    %c0_i32_1 = arith.constant 0 : i32
    return %arg0, %c0_i32, %c0_i32_0 : i32, i32, i32
  }
  func.func @transform_1(%arg0: i32) -> (i32, i32) {
    %c0_i32 = arith.constant 0 : i32
    %c0_i32_0 = arith.constant 0 : i32
    %c0_i32_1 = arith.constant 0 : i32
    return %c0_i32, %c0_i32_0 : i32, i32
  }
  func.func @transform_2(%arg0: i32) -> (i32, i32) {
    %c0_i32 = arith.constant 0 : i32
    %c0_i32_0 = arith.constant 0 : i32
    %c0_i32_1 = arith.constant 0 : i32
    return %c0_i32, %c0_i32_0 : i32, i32
  }
  func.func @transform_3(%arg0: i32) -> (i32, i32) {
    %c0_i32 = arith.constant 0 : i32
    %c0_i32_0 = arith.constant 0 : i32
    %c0_i32_1 = arith.constant 0 : i32
    return %c0_i32, %c0_i32_0 : i32, i32
  }
  func.func @transform_4(%arg0: i32) -> (i32, i32, i32) {
    %c0_i32 = arith.constant 0 : i32
    %c0_i32_0 = arith.constant 0 : i32
    %c0_i32_1 = arith.constant 0 : i32
    %c0_i32_2 = arith.constant 0 : i32
    return %c0_i32, %c0_i32_0, %c0_i32_1 : i32, i32, i32
  }
  func.func @transform_5(%arg0: i32) -> (i32, i32) {
    %c0_i32 = arith.constant 0 : i32
    %c0_i32_0 = arith.constant 0 : i32
    %c0_i32_1 = arith.constant 0 : i32
    return %c0_i32, %c0_i32_0 : i32, i32
  }
  func.func @transform_6(%arg0: i32) -> (i32, i32) {
    %c0_i32 = arith.constant 0 : i32
    %c0_i32_0 = arith.constant 0 : i32
    %c0_i32_1 = arith.constant 0 : i32
    return %c0_i32, %c0_i32_0 : i32, i32
  }
  func.func @transform_7(%arg0: i32) -> (i32, i32) {
    %c0_i32 = arith.constant 0 : i32
    %c0_i32_0 = arith.constant 0 : i32
    %c0_i32_1 = arith.constant 0 : i32
    return %c0_i32, %c0_i32_0 : i32, i32
  }
  func.func @transform_8(%arg0: i32) -> (i32, i32) {
    %c0_i32 = arith.constant 0 : i32
    %c0_i32_0 = arith.constant 0 : i32
    %c0_i32_1 = arith.constant 0 : i32
    return %c0_i32, %c0_i32_0 : i32, i32
  }
  func.func @transform_9(%arg0: i32) -> (i32, i32) {
    %c0_i32 = arith.constant 0 : i32
    %c0_i32_0 = arith.constant 0 : i32
    %c0_i32_1 = arith.constant 0 : i32
    return %c0_i32, %c0_i32_0 : i32, i32
  }
  func.func @transform_10(%arg0: i32) -> (i32, i32) {
    %c0_i32 = arith.constant 0 : i32
    %c0_i32_0 = arith.constant 0 : i32
    return %arg0, %c0_i32 : i32, i32
  }
}

</mosaic_0001>

<bundles_post_ra>
// kernel: tpu_custom_call.1
= control target key start
LH: loop header
LB: loop body
LE: loop exit
PB: predicated region body
PF: predicated region fallthrough
CT: control target
= control target key end

     0   :  { %v8397_v12 = vmov 0.0   ;;  %v8398_v60 = vmov 0   ;;  %vm8399_vm0 = vmmov 0   ;;  %vm6176_vm1 = vcmask 1043456   ;;  %s10446_s1 = inlined_call_operand.vmem [shape: bf16[128,128], index: 1, kind: input, shape index: {}]   ;;  %s10447_s0 = inlined_call_operand.vmem [shape: bf16[1,800,128], index: 0, kind: input, shape index: {}]   ;;  %s10448_s2 = inlined_call_operand.vmem [shape: bf16[128,384], index: 2, kind: input, shape index: {}]   ;;  %s10449_s3 = inlined_call_operand.vmem [shape: bf16[128,384], index: 3, kind: input, shape index: {}]   ;;  %s10450_s4 = inlined_call_operand.vmem [shape: bf16[25,128,200], index: 4, kind: input, shape index: {}]   ;;  %s10451_s6 = inlined_call_operand.vmem [shape: bf16[200,60], index: 6, kind: input, shape index: {}]   ;;  %s10452_s8 = inlined_call_operand.vmem [shape: bf16[60,4], index: 8, kind: input, shape index: {}]   ;;  %s10453_s5 = inlined_call_operand.vmem [shape: f32[1,200], index: 5, kind: input, shape index: {}]   ;;  %s10454_s7 = inlined_call_operand.vmem [shape: f32[1,60], index: 7, kind: input, shape index: {}]   ;;  %s10455_s9 = inlined_call_operand.vmem [shape: f32[1,4], index: 9, kind: input, shape index: {}]   ;;  %s10456_s10 = inlined_call_operand.vmem [shape: f32[8,4], index: 10, kind: output, shape index: {}]  }
   0x1   :  { %v7658_v0 = vld [vmem:[%s10446_s1] sm:$0xff]   ;;  %v7659_v1 = vld [vmem:[%s10446_s1 + $0x8] sm:$0xff]   ;;  %v7660_v2 = vld [vmem:[%s10446_s1 + $0x10] sm:$0xff]   ;;  %1300 = vmatprep.mubr.bf16.mxu1 %v8398_v60  ;;  %vm6172_vm2 = vcmask 588800   ;;  %vm6265_vm3 = vcmask 1045504   ;;  %vm6261_vm4 = vcmask 490496  }
   0x2   :  { %7343 = vmatprep.subr.bf16.mxu0 %v7658_v0  ;;  %v7661_v3 = vld [vmem:[%s10446_s1 + $0x18] sm:$0xff]   ;;  %v7666_v4 = vld [vmem:[%s10447_s0] sm:$0xff]   ;;  %v7663_v6 = vld [vmem:[%s10446_s1 + $0x28] sm:$0xff]   ;;  %vm6309_vm5 = vcmask 31744  }
   0x3   :  { %7344 = vmatpush3.bf16.msra.mxu0 %v7658_v0  ;;  %7359 = vmatprep.mubr.bf16.mxu0 %v7666_v4  ;;  %v7662_v5 = vld [vmem:[%s10446_s1 + $0x20] sm:$0xff]   ;;  %v7664_v7 = vld [vmem:[%s10446_s1 + $0x30] sm:$0xff]   ;;  %v7665_v8 = vld [vmem:[%s10446_s1 + $0x38] sm:$0xff]  }
   0x4   :  { %7345 = vmatprep.subr.bf16.mxu0 %v7659_v1  ;;  %v7667_v9 = vld [vmem:[%s10447_s0 + $0x8] sm:$0xff]   ;;  %v7668_v10 = vld [vmem:[%s10447_s0 + $0x10] sm:$0xff]   ;;  %v7669_v14 = vld [vmem:[%s10447_s0 + $0x18] sm:$0xff]  }
   0x5   :  { %v7673_v11 = vld [vmem:[%s10448_s2 + $0x8] ss:$12 sps:$4 sm:$0xff]   ;;  %v7681_v13 = vld [vmem:[%s10448_s2 + $0x20] ss:$12 sps:$4 sm:$0xff]   ;;  %v7688_v16 = vld [vmem:[%s10448_s2 + $0x38] ss:$12 sps:$4 sm:$0xff]  }
   0x6   :  { %v7670_v15 = vld [vmem:[%s10447_s0 + $0x20] sm:$0xff]   ;;  %v7695_v17 = vld [vmem:[%s10448_s2 + $0x50] ss:$12 sps:$4 sm:$0xff]   ;;  %v7671_v18 = vld [vmem:[%s10447_s0 + $0x28] sm:$0xff]  }
   0x7   :  { %7346 = vmatpush3.bf16.msra.mxu0 %v7659_v1  ;;  %v7672_v19 = vld [vmem:[%s10447_s0 + $0x30] sm:$0xff]   ;;  %v7709_v21 = vld [vmem:[%s10448_s2 + $0x80] ss:$12 sps:$4 sm:$0xff]   ;;  %v7674_v22 = vld [vmem:[%s10447_s0 + $0x38] sm:$0xff]  }
   0x8   :  { %7347 = vmatprep.subr.bf16.mxu0 %v7660_v2  ;;  %v7702_v20 = vld [vmem:[%s10448_s2 + $0x68] ss:$12 sps:$4 sm:$0xff]   ;;  %v7675_v23 = vld [vmem:[%s10447_s0 + $0x40] sm:$0xff]   ;;  %v7678_v26 = vld [vmem:[%s10447_s0 + $0x58] sm:$0xff]  }
   0x9   :  { %v7676_v24 = vld [vmem:[%s10447_s0 + $0x48] sm:$0xff]   ;;  %v7677_v25 = vld [vmem:[%s10447_s0 + $0x50] sm:$0xff]   ;;  %v7679_v27 = vld [vmem:[%s10447_s0 + $0x60] sm:$0xff]  }
   0xa   :  { %v7716_v28 = vld [vmem:[%s10448_s2 + $0x98] ss:$12 sps:$4 sm:$0xff]   ;;  %v7680_v29 = vld [vmem:[%s10447_s0 + $0x68] sm:$0xff]   ;;  %v7682_v30 = vld [vmem:[%s10447_s0 + $0x70] sm:$0xff]  }
   0xb   :  { %7348 = vmatpush3.bf16.msra.mxu0 %v7660_v2  ;;  %v7683_v31 = vld [vmem:[%s10447_s0 + $0x78] sm:$0xff]   ;;  %v7684_v32 = vld [vmem:[%s10447_s0 + $0x80] sm:$0xff]   ;;  %v7685_v34 = vld [vmem:[%s10447_s0 + $0x88] sm:$0xff]  }
   0xc   :  { %7349 = vmatprep.subr.bf16.mxu0 %v7661_v3  ;;  %v7722_v33 = vld [vmem:[%s10448_s2 + $0x4] ss:$12 sps:$4 sm:$0xff]   ;;  %v7725_v36 = vld [vmem:[%s10448_s2] ss:$12 sps:$4 sm:$0xff]   ;;  %v7726_v37 = vld [vmem:[%s10448_s2 + $0x1c] ss:$12 sps:$4 sm:$0xff]  }
   0xd   :  { %1268 = vmatprep.subr.bf16.mxu1 %v7722_v33  ;;  %v7686_v35 = vld [vmem:[%s10447_s0 + $0x90] sm:$0xff]   ;;  %v7728_v38 = vld [vmem:[%s10448_s2 + $0x18] ss:$12 sps:$4 sm:$0xff]   ;;  %v7690_v47 = vld [vmem:[%s10447_s0 + $0xa8] sm:$0xff]  }
   0xe   :  { %1269 = vmatpush1.bf16.msra.mxu1 %v7725_v36  ;;  %v7729_v39 = vld [vmem:[%s10448_s2 + $0xb0] ss:$12 sps:$4 sm:$0xff]   ;;  %v7730_v40 = vld [vmem:[%s10448_s2 + $0x34] ss:$12 sps:$4 sm:$0xff]   ;;  %v7733_v44 = vld [vmem:[%s10448_s2 + $0x4c] ss:$12 sps:$4 sm:$0xff]  }
   0xf   :  { %7350 = vmatpush3.bf16.msra.mxu0 %v7661_v3  ;;  %1270 = vmatprep.subr.bf16.mxu1 %v7726_v37  ;;  %v7687_v41 = vld [vmem:[%s10447_s0 + $0x98] sm:$0xff]   ;;  %v7689_v43 = vld [vmem:[%s10447_s0 + $0xa0] sm:$0xff]   ;;  %v7735_v45 = vld [vmem:[%s10448_s2 + $0x48] ss:$12 sps:$4 sm:$0xff]  }
  0x10   :  { %7351 = vmatprep.subr.bf16.mxu0 %v7662_v5  ;;  %v7732_v42 = vld [vmem:[%s10448_s2 + $0x30] ss:$12 sps:$4 sm:$0xff]   ;;  %v7738_v48 = vld [vmem:[%s10448_s2 + $0x60] ss:$12 sps:$4 sm:$0xff]   ;;  %v7741_v51 = vld [vmem:[%s10448_s2 + $0x78] ss:$12 sps:$4 sm:$0xff]  }
  0x11   :  { %v7736_v46 = vld [vmem:[%s10448_s2 + $0x64] ss:$12 sps:$4 sm:$0xff]   ;;  %v7739_v50 = vld [vmem:[%s10448_s2 + $0x7c] ss:$12 sps:$4 sm:$0xff]   ;;  %v7742_v54 = vld [vmem:[%s10448_s2 + $0x94] ss:$12 sps:$4 sm:$0xff]  }
  0x12   :  { %1271 = vmatpush1.bf16.msra.mxu1 %v7728_v38  ;;  %v7691_v49 = vld [vmem:[%s10447_s0 + $0xb0] sm:$0xff]   ;;  %v7692_v52 = vld [vmem:[%s10447_s0 + $0xb8] sm:$0xff]   ;;  %v7693_v53 = vld [vmem:[%s10447_s0 + $0xc0] sm:$0xff]  }
  0x13   :  { %7352 = vmatpush3.bf16.msra.mxu0 %v7662_v5  ;;  %1272 = vmatprep.subr.bf16.mxu1 %v7730_v40  ;;  %v7744_v55 = vld [vmem:[%s10448_s2 + $0x90] ss:$12 sps:$4 sm:$0xff]   ;;  %v7745_v56 = vld [vmem:[%s10448_s2 + $0xac] ss:$12 sps:$4 sm:$0xff]   ;;  %v7747_v57 = vld [vmem:[%s10448_s2 + $0xa8] ss:$12 sps:$4 sm:$0xff]  }
  0x14   :  { %7353 = vmatprep.subr.bf16.mxu0 %v7663_v6  ;;  %v7694_v58 = vld [vmem:[%s10447_s0 + $0xc8] sm:$0xff]   ;;  %v7696_v59 = vld [vmem:[%s10447_s0 + $0xd0] sm:$0xff]   ;;  %v7697_v61 = vld [vmem:[%s10447_s0 + $0xd8] sm:$0xff]  }
  0x15   :  { %v7698_v62 = vld [vmem:[%s10447_s0 + $0xe0] sm:$0xff]   ;;  %v7699_v63 = vld [vmem:[%s10447_s0 + $0xe8] sm:$0xff]   ;;  %v7700_v0 = vld [vmem:[%s10447_s0 + $0xf0] sm:$0xff]  }
  0x16   :  { %1273 = vmatpush1.bf16.msra.mxu1 %v7732_v42  ;;  %v7701_v1 = vld [vmem:[%s10447_s0 + $0xf8] sm:$0xff]   ;;  %v7703_v2 = vld [vmem:[%s10447_s0 + $0x100] sm:$0xff]   ;;  %v7704_v3 = vld [vmem:[%s10447_s0 + $0x108] sm:$0xff]  }
  0x17   :  { %7354 = vmatpush3.bf16.msra.mxu0 %v7663_v6  ;;  %1274 = vmatprep.subr.bf16.mxu1 %v7733_v44  ;;  %v7705_v4 = vld [vmem:[%s10447_s0 + $0x110] sm:$0xff]   ;;  %v7706_v5 = vld [vmem:[%s10447_s0 + $0x118] sm:$0xff]   ;;  %v7707_v6 = vld [vmem:[%s10447_s0 + $0x120] sm:$0xff]  }
  0x18   :  { %7355 = vmatprep.subr.bf16.mxu0 %v7664_v7  ;;  %v7750_v38 = vld [vmem:[%s10449_s3 + $0x4] ss:$12 sps:$4 sm:$0xff]  }
  0x1a   :  { %1275 = vmatpush1.bf16.msra.mxu1 %v7735_v45 }
  0x1b   :  { %7356 = vmatpush3.bf16.msra.mxu0 %v7664_v7  ;;  %1276 = vmatprep.subr.bf16.mxu1 %v7736_v46  ;;  %v7708_v7 = vld [vmem:[%s10447_s0 + $0x128] sm:$0xff]  }
  0x1c   :  { %7357 = vmatprep.subr.bf16.mxu0 %v7665_v8 }
  0x1e   :  { %1277 = vmatpush1.bf16.msra.mxu1 %v7738_v48 }
  0x1f   :  { %7358 = vmatpush3.bf16.msra.mxu0 %v7665_v8  ;;  %1278 = vmatprep.subr.bf16.mxu1 %v7739_v50  ;;  %v7710_v8 = vld [vmem:[%s10447_s0 + $0x130] sm:$0xff]  }
  0x20   :  { %7459 = vmatprep.subr.bf16.mxu0 %v8397_v12 }
  0x22   :  { %7360 = vmatmul.mubr.bf16.vlgmr.msra.gmra.mrb[0].mxu0 %v7667_v9  ;;  %1279 = vmatpush1.bf16.msra.mxu1 %v7741_v51  ;;  %v7711_v9 = vld [vmem:[%s10447_s0 + $0x138] sm:$0xff]  }
  0x23   :  { %7363 = vmatprep.mubr.bf16.mxu0 %v7668_v10  ;;  %7460 = vmatpush3.bf16.msra.mxu0 %v7673_v11  ;;  %v7712_v10 = vld [vmem:[%s10447_s0 + $0x140] sm:$0xff]   ;;  %v7713_v11 = vld [vmem:[%s10447_s0 + $0x148] sm:$0xff]  }
  0x24   :  { %7461 = vmatprep.subr.bf16.mxu0 %v8397_v12  ;;  %1280 = vmatprep.subr.bf16.mxu1 %v7742_v54 }
  0x26   :  { %1281 = vmatpush1.bf16.msra.mxu1 %v7744_v55 }
  0x27   :  { %7462 = vmatpush3.bf16.msra.mxu0 %v7681_v13  ;;  %1282 = vmatprep.subr.bf16.mxu1 %v7745_v56  ;;  %v7714_v13 = vld [vmem:[%s10447_s0 + $0x150] sm:$0xff]  }
  0x28   :  { %7463 = vmatprep.subr.bf16.mxu0 %v8397_v12 }
  0x2a   :  { %7364 = vmatmul.mubr.bf16.gmra.mrb[4].mxu0 %v7669_v14  ;;  %1283 = vmatpush1.bf16.msra.mxu1 %v7747_v57  ;;  %v7715_v14 = vld [vmem:[%s10447_s0 + $0x158] sm:$0xff]  }
  0x2b   :  { %7367 = vmatprep.mubr.bf16.mxu0 %v7670_v15  ;;  %7464 = vmatpush3.bf16.msra.mxu0 %v7688_v16  ;;  %v7717_v15 = vld [vmem:[%s10447_s0 + $0x160] sm:$0xff]   ;;  %v7718_v16 = vld [vmem:[%s10447_s0 + $0x168] sm:$0xff]  }
  0x2c   :  { %7465 = vmatprep.subr.bf16.mxu0 %v8397_v12  ;;  %2130 = vmatprep.subr.bf16.mxu1 %v7750_v38 }
  0x2f   :  { %7466 = vmatpush3.bf16.msra.mxu0 %v7695_v17  ;;  %v7719_v17 = vld [vmem:[%s10447_s0 + $0x170] sm:$0xff]  }
  0x30   :  { %7467 = vmatprep.subr.bf16.mxu0 %v8397_v12 }
  0x32   :  { %7368 = vmatmul.mubr.bf16.gmra.mrb[8].mxu0 %v7671_v18  ;;  %v7720_v18 = vld [vmem:[%s10447_s0 + $0x178] sm:$0xff]  }
  0x33   :  { %7371 = vmatprep.mubr.bf16.mxu0 %v7672_v19  ;;  %7468 = vmatpush3.bf16.msra.mxu0 %v7702_v20  ;;  %v7721_v19 = vld [vmem:[%s10447_s0 + $0x180] sm:$0xff]   ;;  %v7724_v20 = vld [vmem:[%s10447_s0 + $0x188] sm:$0xff]  }
  0x34   :  { %7469 = vmatprep.subr.bf16.mxu0 %v8397_v12 }
  0x37   :  { %7470 = vmatpush3.bf16.msra.mxu0 %v7709_v21 }
  0x38   :  { %7471 = vmatprep.subr.bf16.mxu0 %v8397_v12 }
  0x3a   :  { %7372 = vmatmul.mubr.bf16.gmra.mrb[12].mxu0 %v7674_v22 }
  0x3b   :  { %7375 = vmatprep.mubr.bf16.mxu0 %v7675_v23  ;;  %7472 = vmatpush3.bf16.msra.mxu0 %v7716_v28 }
  0x3c   :  { %7473 = vmatprep.subr.bf16.mxu0 %v8397_v12 }
  0x3f   :  { %7474 = vmatpush3.bf16.msra.mxu0 %v7729_v39 }
  0x42   :  { %7376 = vmatmul.mubr.bf16.gmra.mrb[16].mxu0 %v7676_v24 }
  0x43   :  { %7379 = vmatprep.mubr.bf16.mxu0 %v7677_v25 }
  0x4a   :  { %7380 = vmatmul.mubr.bf16.gmra.mrb[20].mxu0 %v7678_v26 }
  0x4b   :  { %7383 = vmatprep.mubr.bf16.mxu0 %v7679_v27 }
  0x52   :  { %7384 = vmatmul.mubr.bf16.gmra.mrb[24].mxu0 %v7680_v29 }
  0x53   :  { %7387 = vmatprep.mubr.bf16.mxu0 %v7682_v30 }
  0x5a   :  { %7388 = vmatmul.mubr.bf16.gmra.mrb[28].mxu0 %v7683_v31 }
  0x5b   :  { %7391 = vmatprep.mubr.bf16.mxu0 %v7684_v32 }
  0x62   :  { %7392 = vmatmul.mubr.bf16.gmra.mrb[32].mxu0 %v7685_v34 }
  0x63   :  { %7395 = vmatprep.mubr.bf16.mxu0 %v7686_v35  ;;  %v7748_v35 = vld [vmem:[%s10449_s3] ss:$12 sps:$4 sm:$0xff]  }
  0x6a   :  { %7396 = vmatmul.mubr.bf16.gmra.mrb[36].mxu0 %v7687_v41 }
  0x6b   :  { %7399 = vmatprep.mubr.bf16.mxu0 %v7689_v43 }
  0x72   :  { %7400 = vmatmul.mubr.bf16.gmra.mrb[40].mxu0 %v7690_v47 }
  0x73   :  { %7403 = vmatprep.mubr.bf16.mxu0 %v7691_v49 }
  0x7a   :  { %7404 = vmatmul.mubr.bf16.gmra.mrb[44].mxu0 %v7692_v52 }
  0x7b   :  { %7407 = vmatprep.mubr.bf16.mxu0 %v7693_v53 }
  0x82   :  { %7408 = vmatmul.mubr.bf16.gmra.mrb[48].mxu0 %v7694_v58 }
  0x83   :  { %7411 = vmatprep.mubr.bf16.mxu0 %v7696_v59 }
  0x8a   :  { %7412 = vmatmul.mubr.bf16.gmra.mrb[52].mxu0 %v7697_v61 }
  0x8b   :  { %7415 = vmatprep.mubr.bf16.mxu0 %v7698_v62 }
  0x92   :  { %7416 = vmatmul.mubr.bf16.gmra.mrb[56].mxu0 %v7699_v63 }
  0x93   :  { %7419 = vmatprep.mubr.bf16.mxu0 %v7700_v0 }
  0x9a   :  { %7420 = vmatmul.mubr.bf16.gmra.mrb[60].mxu0 %v7701_v1 }
  0x9b   :  { %7423 = vmatprep.mubr.bf16.mxu0 %v7703_v2 }
  0xa2   :  { %7424 = vmatmul.mubr.bf16.gmra.mrb[64].mxu0 %v7704_v3 }
  0xa3   :  { %7427 = vmatprep.mubr.bf16.mxu0 %v7705_v4 }
  0xaa   :  { %7428 = vmatmul.mubr.bf16.gmra.mrb[68].mxu0 %v7706_v5 }
  0xab   :  { %7431 = vmatprep.mubr.bf16.mxu0 %v7707_v6 }
  0xb2   :  { %7432 = vmatmul.mubr.bf16.gmra.mrb[72].mxu0 %v7708_v7 }
  0xb3   :  { %7435 = vmatprep.mubr.bf16.mxu0 %v7710_v8 }
  0xba   :  { %7436 = vmatmul.mubr.bf16.gmra.mrb[76].mxu0 %v7711_v9 }
  0xbb   :  { %7439 = vmatprep.mubr.bf16.mxu0 %v7712_v10 }
  0xc2   :  { %7440 = vmatmul.mubr.bf16.gmra.mrb[80].mxu0 %v7713_v11 }
  0xc3   :  { %7443 = vmatprep.mubr.bf16.mxu0 %v7714_v13 }
  0xca   :  { %7444 = vmatmul.mubr.bf16.gmra.mrb[84].mxu0 %v7715_v14  ;;  %v7751_v14 = vld [vmem:[%s10449_s3 + $0x18] ss:$12 sps:$4 sm:$0xff]  }
  0xcb   :  { %7447 = vmatprep.mubr.bf16.mxu0 %v7717_v15  ;;  %v7753_v15 = vld [vmem:[%s10449_s3 + $0x1c] ss:$12 sps:$4 sm:$0xff]  }
  0xd2   :  { %7448 = vmatmul.mubr.bf16.gmra.mrb[88].mxu0 %v7718_v16 }
  0xd3   :  { %7451 = vmatprep.mubr.bf16.mxu0 %v7719_v17 }
  0xda   :  { %7452 = vmatmul.mubr.bf16.gmra.mrb[92].mxu0 %v7720_v18 }
  0xdb   :  { %7455 = vmatprep.mubr.bf16.mxu0 %v7721_v19 }
  0xe2   :  { %7456 = vmatmul.mubr.bf16.gmra.mrb[96].mxu0 %v7724_v20 }
  0xe3   :  { %7475 = vmatprep.mubr.msk.bf16.mxu0 %vm8399_vm0, %v8397_v12 }
  0xf5   :  { %v7361_v21 = vpop.f32.mrb[0].mxu0 }
  0xf6   :  { %v534_v22 = vpop.f32.mrb[1].mxu0 }
  0xf7   :  { %v7362_v23 = vpop.f32.mrb[2].mxu0 }
  0xf8   :  { %v934_v24 = vmax.f32 %v7361_v21, %v7362_v23  ;;  %v537_v25 = vpop.f32.mrb[3].mxu0 }
  0xf9   :  { %v933_v26 = vmax.f32 %v534_v22, %v537_v25 }
  0xfa   :  { %v984_v27 = vmul.f32 0.2, %v934_v24 }
  0xfb   :  { %v983_v28 = vmul.f32 0.2, %v933_v26 }
  0xfc   :  { %v1034_v29 = vmax.f32 %v934_v24, %v984_v27 }
  0xfd   :  { %v1033_v30 = vmax.f32 %v933_v26, %v983_v28  ;;  %v7365_v31 = vpop.f32.mrb[4].mxu0 }
  0xfe   :  { %v550_v32 = vpop.f32.mrb[5].mxu0 }
  0xff   :  { %v7366_v33 = vpop.f32.mrb[6].mxu0  ;;  %v1083_v34 = vpack.c.bf16 %v1034_v29, %v1033_v30 }
 0x100   :  { %v936_v36 = vmax.f32 %v7365_v31, %v7366_v33  ;;  %v553_v37 = vpop.f32.mrb[7].mxu0 }
 0x101   :  { %v935_v39 = vmax.f32 %v550_v32, %v553_v37  ;;  %1301 = vmatmul.mubr.bf16.vlgmr.msra.gmra.mrb[0].mxu1 %v1083_v34  ;;  %7476 = vmatmul.mubr.bf16.vlgmr.msra.gmra.mrb[100].mxu0 %v1083_v34 }
 0x102   :  { %v986_v40 = vmul.f32 0.2, %v936_v36  ;;  %1310 = vmatprep.mubr.bf16.mxu1 %v8398_v60  ;;  %7479 = vmatprep.mubr.msk.bf16.mxu0 %vm8399_vm0, %v8397_v12 }
 0x103   :  { %v985_v41 = vmul.f32 0.2, %v935_v39  ;;  %2131 = vmatpush1.bf16.msra.mxu1 %v7748_v35 }
 0x104   :  { %v1036_v42 = vmax.f32 %v936_v36, %v986_v40  ;;  %2132 = vmatprep.subr.bf16.mxu1 %v7753_v15 }
 0x105   :  { %v1035_v43 = vmax.f32 %v935_v39, %v985_v41  ;;  %v7369_v44 = vpop.f32.mrb[8].mxu0 }
 0x106   :  { %v566_v45 = vpop.f32.mrb[9].mxu0 }
 0x107   :  { %v7370_v46 = vpop.f32.mrb[10].mxu0  ;;  %v1084_v47 = vpack.c.bf16 %v1036_v42, %v1035_v43  ;;  %2133 = vmatpush1.bf16.msra.mxu1 %v7751_v14 }
 0x108   :  { %v938_v48 = vmax.f32 %v7369_v44, %v7370_v46  ;;  %v569_v49 = vpop.f32.mrb[11].mxu0 }
 0x109   :  { %v937_v50 = vmax.f32 %v566_v45, %v569_v49  ;;  %1311 = vmatmul.mubr.bf16.gmra.mrb[4].mxu1 %v1084_v47  ;;  %7480 = vmatmul.mubr.bf16.gmra.mrb[104].mxu0 %v1084_v47 }
 0x10a   :  { %v988_v51 = vmul.f32 0.2, %v938_v48  ;;  %1320 = vmatprep.mubr.bf16.mxu1 %v8398_v60  ;;  %7483 = vmatprep.mubr.msk.bf16.mxu0 %vm8399_vm0, %v8397_v12 }
 0x10b   :  { %v987_v52 = vmul.f32 0.2, %v937_v50 }
 0x10c   :  { %v1038_v53 = vmax.f32 %v938_v48, %v988_v51  ;;  %v7754_v51 = vld [vmem:[%s10449_s3 + $0x30] ss:$12 sps:$4 sm:$0xff]  }
 0x10d   :  { %v1037_v54 = vmax.f32 %v937_v50, %v987_v52  ;;  %v7373_v55 = vpop.f32.mrb[12].mxu0  ;;  %v7756_v52 = vld [vmem:[%s10449_s3 + $0x34] ss:$12 sps:$4 sm:$0xff]  }
 0x10e   :  { %v582_v56 = vpop.f32.mrb[13].mxu0  ;;  %2134 = vmatprep.subr.bf16.mxu1 %v7756_v52 }
 0x10f   :  { %v7374_v57 = vpop.f32.mrb[14].mxu0  ;;  %v1085_v58 = vpack.c.bf16 %v1038_v53, %v1037_v54  ;;  %2135 = vmatpush1.bf16.msra.mxu1 %v7754_v51 }
 0x110   :  { %v940_v59 = vmax.f32 %v7373_v55, %v7374_v57  ;;  %v585_v61 = vpop.f32.mrb[15].mxu0 }
 0x111   :  { %v939_v62 = vmax.f32 %v582_v56, %v585_v61  ;;  %1321 = vmatmul.mubr.bf16.gmra.mrb[8].mxu1 %v1085_v58  ;;  %7484 = vmatmul.mubr.bf16.gmra.mrb[108].mxu0 %v1085_v58 }
 0x112   :  { %v990_v63 = vmul.f32 0.2, %v940_v59  ;;  %1330 = vmatprep.mubr.bf16.mxu1 %v8398_v60  ;;  %7487 = vmatprep.mubr.msk.bf16.mxu0 %vm8399_vm0, %v8397_v12 }
 0x113   :  { %v989_v0 = vmul.f32 0.2, %v939_v62 }
 0x114   :  { %v1040_v1 = vmax.f32 %v940_v59, %v990_v63 }
 0x115   :  { %v1039_v2 = vmax.f32 %v939_v62, %v989_v0  ;;  %v7377_v3 = vpop.f32.mrb[16].mxu0 }
 0x116   :  { %v598_v4 = vpop.f32.mrb[17].mxu0 }
 0x117   :  { %v7378_v5 = vpop.f32.mrb[18].mxu0  ;;  %v1086_v6 = vpack.c.bf16 %v1040_v1, %v1039_v2 }
 0x118   :  { %v942_v7 = vmax.f32 %v7377_v3, %v7378_v5  ;;  %v601_v8 = vpop.f32.mrb[19].mxu0 }
 0x119   :  { %v941_v9 = vmax.f32 %v598_v4, %v601_v8  ;;  %1331 = vmatmul.mubr.bf16.gmra.mrb[12].mxu1 %v1086_v6  ;;  %7488 = vmatmul.mubr.bf16.gmra.mrb[112].mxu0 %v1086_v6  ;;  %v7759_v8 = vld [vmem:[%s10449_s3 + $0x4c] ss:$12 sps:$4 sm:$0xff]  }
 0x11a   :  { %v992_v10 = vmul.f32 0.2, %v942_v7  ;;  %1340 = vmatprep.mubr.bf16.mxu1 %v8398_v60  ;;  %7491 = vmatprep.mubr.msk.bf16.mxu0 %vm8399_vm0, %v8397_v12 }
 0x11b   :  { %v991_v11 = vmul.f32 0.2, %v941_v9  ;;  %2136 = vmatprep.subr.bf16.mxu1 %v7759_v8  ;;  %v7771_v8 = vld [vmem:[%s10449_s3 + $0xac] ss:$12 sps:$4 sm:$0xff]  }
 0x11c   :  { %v1042_v13 = vmax.f32 %v942_v7, %v992_v10  ;;  %v7757_v7 = vld [vmem:[%s10449_s3 + $0x48] ss:$12 sps:$4 sm:$0xff]  }
 0x11d   :  { %v1041_v16 = vmax.f32 %v941_v9, %v991_v11  ;;  %v7381_v17 = vpop.f32.mrb[20].mxu0  ;;  %2137 = vmatpush1.bf16.msra.mxu1 %v7757_v7 }
 0x11e   :  { %v614_v18 = vpop.f32.mrb[21].mxu0 }
 0x11f   :  { %v7382_v19 = vpop.f32.mrb[22].mxu0  ;;  %v1087_v20 = vpack.c.bf16 %v1042_v13, %v1041_v16 }
 0x120   :  { %v944_v21 = vmax.f32 %v7381_v17, %v7382_v19  ;;  %v617_v22 = vpop.f32.mrb[23].mxu0 }
 0x121   :  { %v943_v23 = vmax.f32 %v614_v18, %v617_v22  ;;  %1341 = vmatmul.mubr.bf16.gmra.mrb[16].mxu1 %v1087_v20  ;;  %7492 = vmatmul.mubr.bf16.gmra.mrb[116].mxu0 %v1087_v20 }
 0x122   :  { %v994_v24 = vmul.f32 0.2, %v944_v21  ;;  %1350 = vmatprep.mubr.bf16.mxu1 %v8398_v60  ;;  %7495 = vmatprep.mubr.msk.bf16.mxu0 %vm8399_vm0, %v8397_v12 }
 0x123   :  { %v993_v25 = vmul.f32 0.2, %v943_v23 }
 0x124   :  { %v1044_v26 = vmax.f32 %v944_v21, %v994_v24 }
 0x125   :  { %v1043_v27 = vmax.f32 %v943_v23, %v993_v25  ;;  %v7385_v28 = vpop.f32.mrb[24].mxu0 }
 0x126   :  { %v630_v29 = vpop.f32.mrb[25].mxu0 }
 0x127   :  { %v7386_v30 = vpop.f32.mrb[26].mxu0  ;;  %v1088_v31 = vpack.c.bf16 %v1044_v26, %v1043_v27 }
 0x128   :  { %v946_v32 = vmax.f32 %v7385_v28, %v7386_v30  ;;  %v633_v33 = vpop.f32.mrb[27].mxu0 }
 0x129   :  { %v945_v34 = vmax.f32 %v630_v29, %v633_v33  ;;  %1351 = vmatmul.mubr.bf16.gmra.mrb[20].mxu1 %v1088_v31  ;;  %7496 = vmatmul.mubr.bf16.gmra.mrb[120].mxu0 %v1088_v31 }
 0x12a   :  { %v996_v35 = vmul.f32 0.2, %v946_v32  ;;  %1360 = vmatprep.mubr.bf16.mxu1 %v8398_v60  ;;  %7499 = vmatprep.mubr.msk.bf16.mxu0 %vm8399_vm0, %v8397_v12 }
 0x12b   :  { %v995_v36 = vmul.f32 0.2, %v945_v34 }
 0x12c   :  { %v1046_v37 = vmax.f32 %v946_v32, %v996_v35 }
 0x12d   :  { %v1045_v38 = vmax.f32 %v945_v34, %v995_v36  ;;  %v7389_v39 = vpop.f32.mrb[28].mxu0 }
 0x12e   :  { %v646_v40 = vpop.f32.mrb[29].mxu0 }
 0x12f   :  { %v7390_v41 = vpop.f32.mrb[30].mxu0  ;;  %v1089_v42 = vpack.c.bf16 %v1046_v37, %v1045_v38 }
 0x130   :  { %v948_v43 = vmax.f32 %v7389_v39, %v7390_v41  ;;  %v649_v44 = vpop.f32.mrb[31].mxu0 }
 0x131   :  { %v947_v45 = vmax.f32 %v646_v40, %v649_v44  ;;  %1361 = vmatmul.mubr.bf16.gmra.mrb[24].mxu1 %v1089_v42  ;;  %7500 = vmatmul.mubr.bf16.gmra.mrb[124].mxu0 %v1089_v42 }
 0x132   :  { %v998_v46 = vmul.f32 0.2, %v948_v43  ;;  %1370 = vmatprep.mubr.bf16.mxu1 %v8398_v60  ;;  %7503 = vmatprep.mubr.msk.bf16.mxu0 %vm8399_vm0, %v8397_v12 }
 0x133   :  { %v997_v47 = vmul.f32 0.2, %v947_v45 }
 0x134   :  { %v1048_v48 = vmax.f32 %v948_v43, %v998_v46 }
 0x135   :  { %v1047_v49 = vmax.f32 %v947_v45, %v997_v47  ;;  %v7393_v50 = vpop.f32.mrb[32].mxu0 }
 0x136   :  { %v662_v53 = vpop.f32.mrb[33].mxu0 }
 0x137   :  { %v7394_v54 = vpop.f32.mrb[34].mxu0  ;;  %v1090_v55 = vpack.c.bf16 %v1048_v48, %v1047_v49  ;;  %v7762_v48 = vld [vmem:[%s10449_s3 + $0x64] ss:$12 sps:$4 sm:$0xff]  }
 0x138   :  { %v950_v56 = vmax.f32 %v7393_v50, %v7394_v54  ;;  %v665_v57 = vpop.f32.mrb[35].mxu0  ;;  %v7760_v50 = vld [vmem:[%s10449_s3 + $0x60] ss:$12 sps:$4 sm:$0xff]   ;;  %2138 = vmatprep.subr.bf16.mxu1 %v7762_v48 }
 0x139   :  { %v949_v58 = vmax.f32 %v662_v53, %v665_v57  ;;  %1371 = vmatmul.mubr.bf16.gmra.mrb[28].mxu1 %v1090_v55  ;;  %7504 = vmatmul.mubr.bf16.gmra.mrb[128].mxu0 %v1090_v55 }
 0x13a   :  { %v1000_v59 = vmul.f32 0.2, %v950_v56  ;;  %1380 = vmatprep.mubr.bf16.mxu1 %v8398_v60  ;;  %7507 = vmatprep.mubr.msk.bf16.mxu0 %vm8399_vm0, %v8397_v12 }
 0x13b   :  { %v999_v61 = vmul.f32 0.2, %v949_v58  ;;  %2139 = vmatpush1.bf16.msra.mxu1 %v7760_v50 }
 0x13c   :  { %v1050_v62 = vmax.f32 %v950_v56, %v1000_v59  ;;  %v7765_v56 = vld [vmem:[%s10449_s3 + $0x7c] ss:$12 sps:$4 sm:$0xff]  }
 0x13d   :  { %v1049_v63 = vmax.f32 %v949_v58, %v999_v61  ;;  %v7397_v0 = vpop.f32.mrb[36].mxu0  ;;  %v7763_v58 = vld [vmem:[%s10449_s3 + $0x78] ss:$12 sps:$4 sm:$0xff]   ;;  %2140 = vmatprep.subr.bf16.mxu1 %v7765_v56 }
 0x13e   :  { %v678_v1 = vpop.f32.mrb[37].mxu0 }
 0x13f   :  { %v7398_v2 = vpop.f32.mrb[38].mxu0  ;;  %v1091_v3 = vpack.c.bf16 %v1050_v62, %v1049_v63  ;;  %2141 = vmatpush1.bf16.msra.mxu1 %v7763_v58 }
 0x140   :  { %v952_v4 = vmax.f32 %v7397_v0, %v7398_v2  ;;  %v681_v5 = vpop.f32.mrb[39].mxu0  ;;  %v7768_v0 = vld [vmem:[%s10449_s3 + $0x94] ss:$12 sps:$4 sm:$0xff]   ;;  %v7766_v2 = vld [vmem:[%s10449_s3 + $0x90] ss:$12 sps:$4 sm:$0xff]  }
 0x141   :  { %v951_v6 = vmax.f32 %v678_v1, %v681_v5  ;;  %1381 = vmatmul.mubr.bf16.gmra.mrb[32].mxu1 %v1091_v3  ;;  %7508 = vmatmul.mubr.bf16.gmra.mrb[132].mxu0 %v1091_v3 }
 0x142   :  { %v1002_v9 = vmul.f32 0.2, %v952_v4  ;;  %1390 = vmatprep.mubr.bf16.mxu1 %v8398_v60  ;;  %7511 = vmatprep.mubr.msk.bf16.mxu0 %vm8399_vm0, %v8397_v12 }
 0x143   :  { %v1001_v10 = vmul.f32 0.2, %v951_v6  ;;  %2142 = vmatprep.subr.bf16.mxu1 %v7768_v0 }
 0x144   :  { %v1052_v11 = vmax.f32 %v952_v4, %v1002_v9  ;;  %2143 = vmatpush1.bf16.msra.mxu1 %v7766_v2 }
 0x145   :  { %v1051_v13 = vmax.f32 %v951_v6, %v1001_v10  ;;  %v7401_v14 = vpop.f32.mrb[40].mxu0  ;;  %v7769_v10 = vld [vmem:[%s10449_s3 + $0xa8] ss:$12 sps:$4 sm:$0xff]   ;;  %2144 = vmatprep.subr.bf16.mxu1 %v7771_v8 }
 0x146   :  { %v694_v15 = vpop.f32.mrb[41].mxu0 }
 0x147   :  { %v7402_v16 = vpop.f32.mrb[42].mxu0  ;;  %v1092_v17 = vpack.c.bf16 %v1052_v11, %v1051_v13 }
 0x148   :  { %v954_v18 = vmax.f32 %v7401_v14, %v7402_v16  ;;  %v697_v19 = vpop.f32.mrb[43].mxu0  ;;  %2145 = vmatpush1.bf16.msra.mxu1 %v7769_v10 }
 0x149   :  { %v953_v20 = vmax.f32 %v694_v15, %v697_v19  ;;  %1391 = vmatmul.mubr.bf16.gmra.mrb[36].mxu1 %v1092_v17  ;;  %7512 = vmatmul.mubr.bf16.gmra.mrb[136].mxu0 %v1092_v17 }
 0x14a   :  { %v1004_v21 = vmul.f32 0.2, %v954_v18  ;;  %1400 = vmatprep.mubr.bf16.mxu1 %v8398_v60  ;;  %7515 = vmatprep.mubr.msk.bf16.mxu0 %vm8399_vm0, %v8397_v12 }
 0x14b   :  { %v1003_v22 = vmul.f32 0.2, %v953_v20  ;;  %7575 = vmatprep.subr.bf16.mxu1 %v8397_v12 }
 0x14c   :  { %v1054_v23 = vmax.f32 %v954_v18, %v1004_v21 }
 0x14d   :  { %v1053_v24 = vmax.f32 %v953_v20, %v1003_v22  ;;  %v7405_v25 = vpop.f32.mrb[44].mxu0 }
 0x14e   :  { %v710_v26 = vpop.f32.mrb[45].mxu0 }
 0x14f   :  { %v7406_v27 = vpop.f32.mrb[46].mxu0  ;;  %v1093_v28 = vpack.c.bf16 %v1054_v23, %v1053_v24 }
 0x150   :  { %v956_v29 = vmax.f32 %v7405_v25, %v7406_v27  ;;  %v713_v30 = vpop.f32.mrb[47].mxu0 }
 0x151   :  { %v955_v31 = vmax.f32 %v710_v26, %v713_v30  ;;  %1401 = vmatmul.mubr.bf16.gmra.mrb[40].mxu1 %v1093_v28  ;;  %7516 = vmatmul.mubr.bf16.gmra.mrb[140].mxu0 %v1093_v28 }
 0x152   :  { %v1006_v32 = vmul.f32 0.2, %v956_v29  ;;  %1410 = vmatprep.mubr.bf16.mxu1 %v8398_v60  ;;  %7519 = vmatprep.mubr.msk.bf16.mxu0 %vm8399_vm0, %v8397_v12 }
 0x153   :  { %v1005_v33 = vmul.f32 0.2, %v955_v31 }
 0x154   :  { %v1056_v34 = vmax.f32 %v956_v29, %v1006_v32 }
 0x155   :  { %v1055_v35 = vmax.f32 %v955_v31, %v1005_v33  ;;  %v7409_v36 = vpop.f32.mrb[48].mxu0 }
 0x156   :  { %v726_v37 = vpop.f32.mrb[49].mxu0 }
 0x157   :  { %v7410_v38 = vpop.f32.mrb[50].mxu0  ;;  %v1094_v39 = vpack.c.bf16 %v1056_v34, %v1055_v35 }
 0x158   :  { %v958_v40 = vmax.f32 %v7409_v36, %v7410_v38  ;;  %v729_v41 = vpop.f32.mrb[51].mxu0 }
 0x159   :  { %v957_v42 = vmax.f32 %v726_v37, %v729_v41  ;;  %1411 = vmatmul.mubr.bf16.gmra.mrb[44].mxu1 %v1094_v39  ;;  %7520 = vmatmul.mubr.bf16.gmra.mrb[144].mxu0 %v1094_v39 }
 0x15a   :  { %v1008_v43 = vmul.f32 0.2, %v958_v40  ;;  %1420 = vmatprep.mubr.bf16.mxu1 %v8398_v60  ;;  %7523 = vmatprep.mubr.msk.bf16.mxu0 %vm8399_vm0, %v8397_v12 }
 0x15b   :  { %v1007_v44 = vmul.f32 0.2, %v957_v42 }
 0x15c   :  { %v1058_v45 = vmax.f32 %v958_v40, %v1008_v43 }
 0x15d   :  { %v1057_v46 = vmax.f32 %v957_v42, %v1007_v44  ;;  %v7413_v47 = vpop.f32.mrb[52].mxu0 }
 0x15e   :  { %v742_v49 = vpop.f32.mrb[53].mxu0 }
 0x15f   :  { %v7414_v51 = vpop.f32.mrb[54].mxu0  ;;  %v1095_v52 = vpack.c.bf16 %v1058_v45, %v1057_v46 }
 0x160   :  { %v960_v53 = vmax.f32 %v7413_v47, %v7414_v51  ;;  %v745_v54 = vpop.f32.mrb[55].mxu0 }
 0x161   :  { %v959_v55 = vmax.f32 %v742_v49, %v745_v54  ;;  %1421 = vmatmul.mubr.bf16.gmra.mrb[48].mxu1 %v1095_v52  ;;  %7524 = vmatmul.mubr.bf16.gmra.mrb[148].mxu0 %v1095_v52 }
 0x162   :  { %v1010_v57 = vmul.f32 0.2, %v960_v53  ;;  %1430 = vmatprep.mubr.bf16.mxu1 %v8398_v60  ;;  %7527 = vmatprep.mubr.msk.bf16.mxu0 %vm8399_vm0, %v8397_v12 }
 0x163   :  { %v1009_v59 = vmul.f32 0.2, %v959_v55 }
 0x164   :  { %v1060_v61 = vmax.f32 %v960_v53, %v1010_v57 }
 0x165   :  { %v1059_v62 = vmax.f32 %v959_v55, %v1009_v59  ;;  %v7417_v63 = vpop.f32.mrb[56].mxu0 }
 0x166   :  { %v758_v1 = vpop.f32.mrb[57].mxu0 }
 0x167   :  { %v7418_v3 = vpop.f32.mrb[58].mxu0  ;;  %v1096_v4 = vpack.c.bf16 %v1060_v61, %v1059_v62 }
 0x168   :  { %v962_v5 = vmax.f32 %v7417_v63, %v7418_v3  ;;  %v761_v6 = vpop.f32.mrb[59].mxu0 }
 0x169   :  { %v961_v7 = vmax.f32 %v758_v1, %v761_v6  ;;  %1431 = vmatmul.mubr.bf16.gmra.mrb[52].mxu1 %v1096_v4  ;;  %7528 = vmatmul.mubr.bf16.gmra.mrb[152].mxu0 %v1096_v4 }
 0x16a   :  { %v1012_v9 = vmul.f32 0.2, %v962_v5  ;;  %1440 = vmatprep.mubr.bf16.mxu1 %v8398_v60  ;;  %7531 = vmatprep.mubr.msk.bf16.mxu0 %vm8399_vm0, %v8397_v12 }
 0x16b   :  { %v1011_v11 = vmul.f32 0.2, %v961_v7 }
 0x16c   :  { %v1062_v13 = vmax.f32 %v962_v5, %v1012_v9 }
 0x16d   :  { %v1061_v14 = vmax.f32 %v961_v7, %v1011_v11  ;;  %v7421_v15 = vpop.f32.mrb[60].mxu0 }
 0x16e   :  { %v774_v16 = vpop.f32.mrb[61].mxu0 }
 0x16f   :  { %v7422_v17 = vpop.f32.mrb[62].mxu0  ;;  %v1097_v18 = vpack.c.bf16 %v1062_v13, %v1061_v14 }
 0x170   :  { %v964_v19 = vmax.f32 %v7421_v15, %v7422_v17  ;;  %v777_v20 = vpop.f32.mrb[63].mxu0 }
 0x171   :  { %v963_v21 = vmax.f32 %v774_v16, %v777_v20  ;;  %1441 = vmatmul.mubr.bf16.gmra.mrb[56].mxu1 %v1097_v18  ;;  %7532 = vmatmul.mubr.bf16.gmra.mrb[156].mxu0 %v1097_v18 }
 0x172   :  { %v1014_v22 = vmul.f32 0.2, %v964_v19  ;;  %1450 = vmatprep.mubr.bf16.mxu1 %v8398_v60  ;;  %7535 = vmatprep.mubr.msk.bf16.mxu0 %vm8399_vm0, %v8397_v12 }
 0x173   :  { %v1013_v23 = vmul.f32 0.2, %v963_v21 }
 0x174   :  { %v1064_v24 = vmax.f32 %v964_v19, %v1014_v22 }
 0x175   :  { %v1063_v25 = vmax.f32 %v963_v21, %v1013_v23  ;;  %v7425_v26 = vpop.f32.mrb[64].mxu0 }
 0x176   :  { %v790_v27 = vpop.f32.mrb[65].mxu0 }
 0x177   :  { %v7426_v28 = vpop.f32.mrb[66].mxu0  ;;  %v1098_v29 = vpack.c.bf16 %v1064_v24, %v1063_v25 }
 0x178   :  { %v966_v30 = vmax.f32 %v7425_v26, %v7426_v28  ;;  %v793_v31 = vpop.f32.mrb[67].mxu0 }
 0x179   :  { %v965_v32 = vmax.f32 %v790_v27, %v793_v31  ;;  %1451 = vmatmul.mubr.bf16.gmra.mrb[60].mxu1 %v1098_v29  ;;  %7536 = vmatmul.mubr.bf16.gmra.mrb[160].mxu0 %v1098_v29 }
 0x17a   :  { %v1016_v33 = vmul.f32 0.2, %v966_v30  ;;  %1460 = vmatprep.mubr.bf16.mxu1 %v8398_v60  ;;  %7539 = vmatprep.mubr.msk.bf16.mxu0 %vm8399_vm0, %v8397_v12 }
 0x17b   :  { %v1015_v34 = vmul.f32 0.2, %v965_v32 }
 0x17c   :  { %v1066_v35 = vmax.f32 %v966_v30, %v1016_v33 }
 0x17d   :  { %v1065_v36 = vmax.f32 %v965_v32, %v1015_v34  ;;  %v7429_v37 = vpop.f32.mrb[68].mxu0 }
 0x17e   :  { %v806_v38 = vpop.f32.mrb[69].mxu0 }
 0x17f   :  { %v7430_v39 = vpop.f32.mrb[70].mxu0  ;;  %v1099_v40 = vpack.c.bf16 %v1066_v35, %v1065_v36 }
 0x180   :  { %v968_v41 = vmax.f32 %v7429_v37, %v7430_v39  ;;  %v809_v42 = vpop.f32.mrb[71].mxu0 }
 0x181   :  { %v967_v43 = vmax.f32 %v806_v38, %v809_v42  ;;  %1461 = vmatmul.mubr.bf16.gmra.mrb[64].mxu1 %v1099_v40  ;;  %7540 = vmatmul.mubr.bf16.gmra.mrb[164].mxu0 %v1099_v40 }
 0x182   :  { %v1018_v44 = vmul.f32 0.2, %v968_v41  ;;  %1470 = vmatprep.mubr.bf16.mxu1 %v8398_v60  ;;  %7543 = vmatprep.mubr.msk.bf16.mxu0 %vm8399_vm0, %v8397_v12 }
 0x183   :  { %v1017_v45 = vmul.f32 0.2, %v967_v43 }
 0x184   :  { %v1068_v46 = vmax.f32 %v968_v41, %v1018_v44 }
 0x185   :  { %v1067_v47 = vmax.f32 %v967_v43, %v1017_v45  ;;  %v7433_v48 = vpop.f32.mrb[72].mxu0 }
 0x186   :  { %v822_v49 = vpop.f32.mrb[73].mxu0 }
 0x187   :  { %v7434_v50 = vpop.f32.mrb[74].mxu0  ;;  %v1100_v51 = vpack.c.bf16 %v1068_v46, %v1067_v47 }
 0x188   :  { %v970_v52 = vmax.f32 %v7433_v48, %v7434_v50  ;;  %v825_v53 = vpop.f32.mrb[75].mxu0 }
 0x189   :  { %v969_v54 = vmax.f32 %v822_v49, %v825_v53  ;;  %1471 = vmatmul.mubr.bf16.gmra.mrb[68].mxu1 %v1100_v51  ;;  %7544 = vmatmul.mubr.bf16.gmra.mrb[168].mxu0 %v1100_v51 }
 0x18a   :  { %v1020_v55 = vmul.f32 0.2, %v970_v52  ;;  %1480 = vmatprep.mubr.bf16.mxu1 %v8398_v60  ;;  %7547 = vmatprep.mubr.msk.bf16.mxu0 %vm8399_vm0, %v8397_v12 }
 0x18b   :  { %v1019_v56 = vmul.f32 0.2, %v969_v54 }
 0x18c   :  { %v1070_v57 = vmax.f32 %v970_v52, %v1020_v55 }
 0x18d   :  { %v1069_v58 = vmax.f32 %v969_v54, %v1019_v56  ;;  %v7437_v59 = vpop.f32.mrb[76].mxu0 }
 0x18e   :  { %v838_v61 = vpop.f32.mrb[77].mxu0 }
 0x18f   :  { %v7438_v62 = vpop.f32.mrb[78].mxu0  ;;  %v1101_v63 = vpack.c.bf16 %v1070_v57, %v1069_v58 }
 0x190   :  { %v972_v0 = vmax.f32 %v7437_v59, %v7438_v62  ;;  %v841_v1 = vpop.f32.mrb[79].mxu0 }
 0x191   :  { %v971_v2 = vmax.f32 %v838_v61, %v841_v1  ;;  %1481 = vmatmul.mubr.bf16.gmra.mrb[72].mxu1 %v1101_v63  ;;  %7548 = vmatmul.mubr.bf16.gmra.mrb[172].mxu0 %v1101_v63 }
 0x192   :  { %v1022_v3 = vmul.f32 0.2, %v972_v0  ;;  %1490 = vmatprep.mubr.bf16.mxu1 %v8398_v60  ;;  %7551 = vmatprep.mubr.msk.bf16.mxu0 %vm8399_vm0, %v8397_v12 }
 0x193   :  { %v1021_v4 = vmul.f32 0.2, %v971_v2 }
 0x194   :  { %v1072_v5 = vmax.f32 %v972_v0, %v1022_v3 }
 0x195   :  { %v1071_v6 = vmax.f32 %v971_v2, %v1021_v4  ;;  %v7441_v7 = vpop.f32.mrb[80].mxu0 }
 0x196   :  { %v854_v8 = vpop.f32.mrb[81].mxu0 }
 0x197   :  { %v7442_v9 = vpop.f32.mrb[82].mxu0  ;;  %v1102_v10 = vpack.c.bf16 %v1072_v5, %v1071_v6 }
 0x198   :  { %v974_v11 = vmax.f32 %v7441_v7, %v7442_v9  ;;  %v857_v13 = vpop.f32.mrb[83].mxu0 }
 0x199   :  { %v973_v14 = vmax.f32 %v854_v8, %v857_v13  ;;  %1491 = vmatmul.mubr.bf16.gmra.mrb[76].mxu1 %v1102_v10  ;;  %7552 = vmatmul.mubr.bf16.gmra.mrb[176].mxu0 %v1102_v10 }
 0x19a   :  { %v1024_v15 = vmul.f32 0.2, %v974_v11  ;;  %1500 = vmatprep.mubr.bf16.mxu1 %v8398_v60  ;;  %7555 = vmatprep.mubr.msk.bf16.mxu0 %vm8399_vm0, %v8397_v12 }
 0x19b   :  { %v1023_v16 = vmul.f32 0.2, %v973_v14 }
 0x19c   :  { %v1074_v17 = vmax.f32 %v974_v11, %v1024_v15 }
 0x19d   :  { %v1073_v18 = vmax.f32 %v973_v14, %v1023_v16  ;;  %v7445_v19 = vpop.f32.mrb[84].mxu0 }
 0x19e   :  { %v870_v20 = vpop.f32.mrb[85].mxu0 }
 0x19f   :  { %v7446_v21 = vpop.f32.mrb[86].mxu0  ;;  %v1103_v22 = vpack.c.bf16 %v1074_v17, %v1073_v18 }
 0x1a0   :  { %v976_v23 = vmax.f32 %v7445_v19, %v7446_v21  ;;  %v873_v24 = vpop.f32.mrb[87].mxu0 }
 0x1a1   :  { %v975_v25 = vmax.f32 %v870_v20, %v873_v24  ;;  %1501 = vmatmul.mubr.bf16.gmra.mrb[80].mxu1 %v1103_v22  ;;  %7556 = vmatmul.mubr.bf16.gmra.mrb[180].mxu0 %v1103_v22 }
 0x1a2   :  { %v1026_v26 = vmul.f32 0.2, %v976_v23  ;;  %1510 = vmatprep.mubr.bf16.mxu1 %v8398_v60  ;;  %7559 = vmatprep.mubr.msk.bf16.mxu0 %vm8399_vm0, %v8397_v12 }
 0x1a3   :  { %v1025_v27 = vmul.f32 0.2, %v975_v25 }
 0x1a4   :  { %v1076_v28 = vmax.f32 %v976_v23, %v1026_v26 }
 0x1a5   :  { %v1075_v29 = vmax.f32 %v975_v25, %v1025_v27  ;;  %v7449_v30 = vpop.f32.mrb[88].mxu0 }
 0x1a6   :  { %v886_v31 = vpop.f32.mrb[89].mxu0 }
 0x1a7   :  { %v7450_v32 = vpop.f32.mrb[90].mxu0  ;;  %v1104_v33 = vpack.c.bf16 %v1076_v28, %v1075_v29 }
 0x1a8   :  { %v978_v34 = vmax.f32 %v7449_v30, %v7450_v32  ;;  %v889_v35 = vpop.f32.mrb[91].mxu0 }
 0x1a9   :  { %v977_v36 = vmax.f32 %v886_v31, %v889_v35  ;;  %1511 = vmatmul.mubr.bf16.gmra.mrb[84].mxu1 %v1104_v33  ;;  %7560 = vmatmul.mubr.bf16.gmra.mrb[184].mxu0 %v1104_v33 }
 0x1aa   :  { %v1028_v37 = vmul.f32 0.2, %v978_v34  ;;  %1520 = vmatprep.mubr.bf16.mxu1 %v8398_v60  ;;  %7563 = vmatprep.mubr.msk.bf16.mxu0 %vm8399_vm0, %v8397_v12 }
 0x1ab   :  { %v1027_v38 = vmul.f32 0.2, %v977_v36 }
 0x1ac   :  { %v1078_v39 = vmax.f32 %v978_v34, %v1028_v37 }
 0x1ad   :  { %v1077_v40 = vmax.f32 %v977_v36, %v1027_v38  ;;  %v7453_v41 = vpop.f32.mrb[92].mxu0 }
 0x1ae   :  { %v902_v42 = vpop.f32.mrb[93].mxu0 }
 0x1af   :  { %v7454_v43 = vpop.f32.mrb[94].mxu0  ;;  %v1105_v44 = vpack.c.bf16 %v1078_v39, %v1077_v40 }
 0x1b0   :  { %v980_v45 = vmax.f32 %v7453_v41, %v7454_v43  ;;  %v905_v46 = vpop.f32.mrb[95].mxu0 }
 0x1b1   :  { %v979_v47 = vmax.f32 %v902_v42, %v905_v46  ;;  %1521 = vmatmul.mubr.bf16.gmra.mrb[88].mxu1 %v1105_v44  ;;  %7564 = vmatmul.mubr.bf16.gmra.mrb[188].mxu0 %v1105_v44  ;;  %v7772_v44 = vld [vmem:[%s10449_s3 + $0x8] ss:$12 sps:$4 sm:$0xff]  }
 0x1b2   :  { %v1030_v48 = vmul.f32 0.2, %v980_v45  ;;  %1530 = vmatprep.mubr.bf16.mxu1 %v8398_v60  ;;  %7567 = vmatprep.mubr.msk.bf16.mxu0 %vm8399_vm0, %v8397_v12 }
 0x1b3   :  { %v1029_v49 = vmul.f32 0.2, %v979_v47 }
 0x1b4   :  { %v1080_v50 = vmax.f32 %v980_v45, %v1030_v48 }
 0x1b5   :  { %v1079_v51 = vmax.f32 %v979_v47, %v1029_v49  ;;  %v7457_v52 = vpop.f32.mrb[96].mxu0 }
 0x1b6   :  { %v918_v53 = vpop.f32.mrb[97].mxu0 }
 0x1b7   :  { %v7458_v54 = vpop.f32.mrb[98].mxu0  ;;  %v1106_v55 = vpack.c.bf16 %v1080_v50, %v1079_v51 }
 0x1b8   :  { %v982_v56 = vmax.f32 %v7457_v52, %v7458_v54  ;;  %v921_v57 = vpop.f32.mrb[99].mxu0 }
 0x1b9   :  { %v981_v58 = vmax.f32 %v918_v53, %v921_v57  ;;  %1531 = vmatmul.mubr.bf16.gmra.mrb[92].mxu1 %v1106_v55  ;;  %7568 = vmatmul.mubr.bf16.gmra.mrb[192].mxu0 %v1106_v55  ;;  %v7773_v57 = vld [vmem:[%s10449_s3 + $0x20] ss:$12 sps:$4 sm:$0xff]  }
 0x1ba   :  { %v1032_v59 = vmul.f32 0.2, %v982_v56  ;;  %1540 = vmatprep.mubr.bf16.mxu1 %v8398_v60  ;;  %7571 = vmatprep.mubr.msk.bf16.mxu0 %vm8399_vm0, %v8397_v12 }
 0x1bb   :  { %v1031_v61 = vmul.f32 0.2, %v981_v58 }
 0x1bc   :  { %v1082_v62 = vmax.f32 %v982_v56, %v1032_v59 }
 0x1bd   :  { %v1081_v63 = vmax.f32 %v981_v58, %v1031_v61  ;;  %v7774_v61 = vld [vmem:[%s10449_s3 + $0x38] ss:$12 sps:$4 sm:$0xff]  }
 0x1bf   :  { %v1107_v0 = vpack.c.bf16 %v1082_v62, %v1081_v63 }
 0x1c1   :  { %1541 = vmatmul.mubr.bf16.gmra.mrb[96].mxu1 %v1107_v0  ;;  %7572 = vmatmul.mubr.bf16.gmra.mrb[196].mxu0 %v1107_v0 }
 0x1c2   :  { %2162 = vmatprep.mubr.bf16.mxu1 %v8398_v60  ;;  %2672 = vmatprep.mubr.bf16.mxu0 %v8398_v60 }
 0x1d4   :  { %v1302_v1 = vpop.f32.mrb[0].mxu1  ;;  %v1584_v2 = vpop.f32.mrb[100].mxu0 }
 0x1d5   :  { %v1304_v3 = vpop.f32.mrb[1].mxu1  ;;  %v7477_v4 = vpop.f32.mrb[101].mxu0 }
 0x1d6   :  { %v1306_v5 = vpop.f32.mrb[2].mxu1  ;;  %v1586_v6 = vpop.f32.mrb[102].mxu0 }
 0x1d7   :  { %v1832_v7 = vadd.f32 %v1586_v6, %v1304_v3  ;;  %v1308_v8 = vpop.f32.mrb[3].mxu1  ;;  %v7478_v9 = vpop.f32.mrb[103].mxu0 }
 0x1d8   :  { %v1783_v10 = vadd.f32 %v1308_v8, %v1302_v1 }
 0x1dc   :  { %v1312_v11 = vpop.f32.mrb[4].mxu1  ;;  %v1591_v13 = vpop.f32.mrb[104].mxu0 }
 0x1dd   :  { %v1833_v14 = vadd.f32 %v1783_v10, %v1591_v13  ;;  %v1314_v15 = vpop.f32.mrb[5].mxu1  ;;  %v7481_v16 = vpop.f32.mrb[105].mxu0  ;;  %v7775_v10 = vld [vmem:[%s10449_s3 + $0x50] ss:$12 sps:$4 sm:$0xff]  }
 0x1de   :  { %v1784_v17 = vadd.f32 %v1314_v15, %v1306_v5  ;;  %v1316_v18 = vpop.f32.mrb[6].mxu1  ;;  %v1594_v19 = vpop.f32.mrb[106].mxu0 }
 0x1df   :  { %v1882_v20 = vmax.f32 %v1832_v7, %v1833_v14  ;;  %v1318_v21 = vpop.f32.mrb[7].mxu1  ;;  %v7482_v22 = vpop.f32.mrb[107].mxu0 }
 0x1e0   :  { %v1834_v23 = vadd.f32 %v1784_v17, %v1594_v19  ;;  %v1785_v24 = vadd.f32 %v1318_v21, %v1312_v11  ;;  %v7776_v17 = vld [vmem:[%s10449_s3 + $0x68] ss:$12 sps:$4 sm:$0xff]  }
 0x1e1   :  { %v1907_v33 = vmul.f32 0.2, %v1882_v20 }
 0x1e3   :  { %v1932_v40 = vmax.f32 %v1882_v20, %v1907_v33 }
 0x1e4   :  { %v1322_v25 = vpop.f32.mrb[8].mxu1  ;;  %v1599_v26 = vpop.f32.mrb[108].mxu0 }
 0x1e5   :  { %v1835_v27 = vadd.f32 %v1785_v24, %v1599_v26  ;;  %v1324_v28 = vpop.f32.mrb[9].mxu1  ;;  %v7485_v29 = vpop.f32.mrb[109].mxu0 }
 0x1e6   :  { %v1786_v30 = vadd.f32 %v1324_v28, %v1316_v18  ;;  %v1326_v31 = vpop.f32.mrb[10].mxu1  ;;  %v1602_v32 = vpop.f32.mrb[110].mxu0 }
 0x1e7   :  { %v1883_v34 = vmax.f32 %v1834_v23, %v1835_v27  ;;  %v1328_v35 = vpop.f32.mrb[11].mxu1  ;;  %v7486_v36 = vpop.f32.mrb[111].mxu0 }
 0x1e8   :  { %v1836_v37 = vadd.f32 %v1786_v30, %v1602_v32  ;;  %v1787_v38 = vadd.f32 %v1328_v35, %v1322_v25 }
 0x1e9   :  { %v1908_v39 = vmul.f32 0.2, %v1883_v34 }
 0x1eb   :  { %v1933_v41 = vmax.f32 %v1883_v34, %v1908_v39 }
 0x1ec   :  { %v1332_v42 = vpop.f32.mrb[12].mxu1  ;;  %v1607_v43 = vpop.f32.mrb[112].mxu0 }
 0x1ed   :  { %v8838_v45 = vpack.c.bf16 %v1933_v41, %v1932_v40  ;;  %v1837_v46 = vadd.f32 %v1787_v38, %v1607_v43  ;;  %v1334_v47 = vpop.f32.mrb[13].mxu1  ;;  %v7489_v48 = vpop.f32.mrb[113].mxu0 }
 0x1ee   :  { %v1788_v49 = vadd.f32 %v1334_v47, %v1326_v31  ;;  %v1336_v50 = vpop.f32.mrb[14].mxu1  ;;  %v1610_v51 = vpop.f32.mrb[114].mxu0  ;;  %v7777_v48 = vld [vmem:[%s10449_s3 + $0x80] ss:$12 sps:$4 sm:$0xff]  }
 0x1ef   :  { %v1884_v52 = vmax.f32 %v1836_v37, %v1837_v46  ;;  %v1338_v53 = vpop.f32.mrb[15].mxu1  ;;  %v7490_v54 = vpop.f32.mrb[115].mxu0  ;;  %2163 = vmatmul.mubr.bf16.vlgmr.msra.gmra.mrb[100].mxu1 %v8838_v45 }
 0x1f0   :  { %v1838_v55 = vadd.f32 %v1788_v49, %v1610_v51  ;;  %v1789_v56 = vadd.f32 %v1338_v53, %v1332_v42  ;;  %2172 = vmatprep.mubr.bf16.mxu1 %v8398_v60  ;;  %7576 = vmatpush3.bf16.msra.mxu1 %v7772_v44 }
 0x1f1   :  { %7577 = vmatprep.subr.bf16.mxu1 %v8397_v12  ;;  %v1909_v4 = vmul.f32 0.2, %v1884_v52 }
 0x1f3   :  { %v1934_v13 = vmax.f32 %v1884_v52, %v1909_v4 }
 0x1f4   :  { %v1342_v58 = vpop.f32.mrb[16].mxu1  ;;  %v1615_v59 = vpop.f32.mrb[116].mxu0  ;;  %7578 = vmatpush3.bf16.msra.mxu1 %v7773_v57 }
 0x1f5   :  { %v1839_v62 = vadd.f32 %v1789_v56, %v1615_v59  ;;  %v1344_v63 = vpop.f32.mrb[17].mxu1  ;;  %v7493_v0 = vpop.f32.mrb[117].mxu0  ;;  %7579 = vmatprep.subr.bf16.mxu1 %v8397_v12 }
 0x1f6   :  { %v1790_v1 = vadd.f32 %v1344_v63, %v1336_v50  ;;  %v1346_v2 = vpop.f32.mrb[18].mxu1  ;;  %v1618_v3 = vpop.f32.mrb[118].mxu0 }
 0x1f7   :  { %v1885_v5 = vmax.f32 %v1838_v55, %v1839_v62  ;;  %v1348_v6 = vpop.f32.mrb[19].mxu1  ;;  %v7494_v7 = vpop.f32.mrb[119].mxu0 }
 0x1f8   :  { %v1840_v8 = vadd.f32 %v1790_v1, %v1618_v3  ;;  %v1791_v9 = vadd.f32 %v1348_v6, %v1342_v58  ;;  %7580 = vmatpush3.bf16.msra.mxu1 %v7774_v61 }
 0x1f9   :  { %v1910_v11 = vmul.f32 0.2, %v1885_v5  ;;  %7581 = vmatprep.subr.bf16.mxu1 %v8397_v12 }
 0x1fb   :  { %v1935_v14 = vmax.f32 %v1885_v5, %v1910_v11 }
 0x1fc   :  { %v1352_v15 = vpop.f32.mrb[20].mxu1  ;;  %v1623_v16 = vpop.f32.mrb[120].mxu0  ;;  %7582 = vmatpush3.bf16.msra.mxu1 %v7775_v10 }
 0x1fd   :  { %v1841_v18 = vadd.f32 %v1791_v9, %v1623_v16  ;;  %v1354_v19 = vpop.f32.mrb[21].mxu1  ;;  %v7497_v20 = vpop.f32.mrb[121].mxu0  ;;  %v8857_v21 = vpack.c.bf16 %v1935_v14, %v1934_v13  ;;  %7583 = vmatprep.subr.bf16.mxu1 %v8397_v12 }
 0x1fe   :  { %v1792_v22 = vadd.f32 %v1354_v19, %v1346_v2  ;;  %v1356_v23 = vpop.f32.mrb[22].mxu1  ;;  %v1626_v24 = vpop.f32.mrb[122].mxu0 }
 0x1ff   :  { %v1886_v25 = vmax.f32 %v1840_v8, %v1841_v18  ;;  %v1358_v26 = vpop.f32.mrb[23].mxu1  ;;  %v7498_v27 = vpop.f32.mrb[123].mxu0  ;;  %2173 = vmatmul.mubr.bf16.gmra.mrb[104].mxu1 %v8857_v21  ;;  %v7778_v18 = vld [vmem:[%s10449_s3 + $0x98] ss:$12 sps:$4 sm:$0xff]  }
 0x200   :  { %v1842_v28 = vadd.f32 %v1792_v22, %v1626_v24  ;;  %v1793_v29 = vadd.f32 %v1358_v26, %v1352_v15  ;;  %2182 = vmatprep.mubr.bf16.mxu1 %v8398_v60  ;;  %7584 = vmatpush3.bf16.msra.mxu1 %v7776_v17 }
 0x201   :  { %7585 = vmatprep.subr.bf16.mxu1 %v8397_v12  ;;  %v1911_v38 = vmul.f32 0.2, %v1886_v25 }
 0x203   :  { %v1936_v46 = vmax.f32 %v1886_v25, %v1911_v38 }
 0x204   :  { %v1362_v30 = vpop.f32.mrb[24].mxu1  ;;  %v1631_v31 = vpop.f32.mrb[124].mxu0  ;;  %7586 = vmatpush3.bf16.msra.mxu1 %v7777_v48 }
 0x205   :  { %v1843_v32 = vadd.f32 %v1793_v29, %v1631_v31  ;;  %v1364_v33 = vpop.f32.mrb[25].mxu1  ;;  %v7501_v34 = vpop.f32.mrb[125].mxu0  ;;  %7587 = vmatprep.subr.bf16.mxu1 %v8397_v12 }
 0x206   :  { %v1794_v35 = vadd.f32 %v1364_v33, %v1356_v23  ;;  %v1366_v36 = vpop.f32.mrb[26].mxu1  ;;  %v1634_v37 = vpop.f32.mrb[126].mxu0 }
 0x207   :  { %v1887_v39 = vmax.f32 %v1842_v28, %v1843_v32  ;;  %v1368_v40 = vpop.f32.mrb[27].mxu1  ;;  %v7502_v41 = vpop.f32.mrb[127].mxu0  ;;  %v7779_v32 = vld [vmem:[%s10449_s3 + $0xb0] ss:$12 sps:$4 sm:$0xff]  }
 0x208   :  { %v1844_v42 = vadd.f32 %v1794_v35, %v1634_v37  ;;  %v1795_v43 = vadd.f32 %v1368_v40, %v1362_v30  ;;  %7588 = vmatpush3.bf16.msra.mxu1 %v7778_v18 }
 0x209   :  { %v1912_v44 = vmul.f32 0.2, %v1887_v39  ;;  %7589 = vmatprep.subr.bf16.mxu1 %v8397_v12 }
 0x20b   :  { %v1937_v47 = vmax.f32 %v1887_v39, %v1912_v44 }
 0x20c   :  { %v1372_v49 = vpop.f32.mrb[28].mxu1  ;;  %v1639_v50 = vpop.f32.mrb[128].mxu0  ;;  %7590 = vmatpush3.bf16.msra.mxu1 %v7779_v32 }
 0x20d   :  { %v1845_v51 = vadd.f32 %v1795_v43, %v1639_v50  ;;  %v1374_v52 = vpop.f32.mrb[29].mxu1  ;;  %v7505_v53 = vpop.f32.mrb[129].mxu0  ;;  %v8866_v54 = vpack.c.bf16 %v1937_v47, %v1936_v46 }
 0x20e   :  { %v1796_v55 = vadd.f32 %v1374_v52, %v1366_v36  ;;  %v1376_v56 = vpop.f32.mrb[30].mxu1  ;;  %v1642_v57 = vpop.f32.mrb[130].mxu0 }
 0x20f   :  { %v1888_v58 = vmax.f32 %v1844_v42, %v1845_v51  ;;  %v1378_v59 = vpop.f32.mrb[31].mxu1  ;;  %v7506_v61 = vpop.f32.mrb[131].mxu0  ;;  %2183 = vmatmul.mubr.bf16.gmra.mrb[108].mxu1 %v8866_v54 }
 0x210   :  { %v1846_v62 = vadd.f32 %v1796_v55, %v1642_v57  ;;  %v1797_v63 = vadd.f32 %v1378_v59, %v1372_v49  ;;  %2192 = vmatprep.mubr.bf16.mxu1 %v8398_v60 }
 0x211   :  { %v1913_v8 = vmul.f32 0.2, %v1888_v58 }
 0x213   :  { %v1938_v16 = vmax.f32 %v1888_v58, %v1913_v8 }
 0x214   :  { %v1382_v0 = vpop.f32.mrb[32].mxu1  ;;  %v1647_v1 = vpop.f32.mrb[132].mxu0 }
 0x215   :  { %v1847_v2 = vadd.f32 %v1797_v63, %v1647_v1  ;;  %v1384_v3 = vpop.f32.mrb[33].mxu1  ;;  %v7509_v4 = vpop.f32.mrb[133].mxu0 }
 0x216   :  { %v1798_v5 = vadd.f32 %v1384_v3, %v1376_v56  ;;  %v1386_v6 = vpop.f32.mrb[34].mxu1  ;;  %v1650_v7 = vpop.f32.mrb[134].mxu0 }
 0x217   :  { %v1889_v9 = vmax.f32 %v1846_v62, %v1847_v2  ;;  %v1388_v10 = vpop.f32.mrb[35].mxu1  ;;  %v7510_v11 = vpop.f32.mrb[135].mxu0 }
 0x218   :  { %v1848_v13 = vadd.f32 %v1798_v5, %v1650_v7  ;;  %v1799_v14 = vadd.f32 %v1388_v10, %v1382_v0 }
 0x219   :  { %v1914_v15 = vmul.f32 0.2, %v1889_v9 }
 0x21b   :  { %v1939_v17 = vmax.f32 %v1889_v9, %v1914_v15 }
 0x21c   :  { %v1392_v19 = vpop.f32.mrb[36].mxu1  ;;  %v1655_v20 = vpop.f32.mrb[136].mxu0 }
 0x21d   :  { %v1849_v22 = vadd.f32 %v1799_v14, %v1655_v20  ;;  %v1394_v23 = vpop.f32.mrb[37].mxu1  ;;  %v7513_v24 = vpop.f32.mrb[137].mxu0  ;;  %v8874_v25 = vpack.c.bf16 %v1939_v17, %v1938_v16 }
 0x21e   :  { %v1800_v26 = vadd.f32 %v1394_v23, %v1386_v6  ;;  %v1396_v27 = vpop.f32.mrb[38].mxu1  ;;  %v1658_v28 = vpop.f32.mrb[138].mxu0 }
 0x21f   :  { %v1890_v29 = vmax.f32 %v1848_v13, %v1849_v22  ;;  %v1398_v30 = vpop.f32.mrb[39].mxu1  ;;  %v7514_v31 = vpop.f32.mrb[139].mxu0  ;;  %2193 = vmatmul.mubr.bf16.gmra.mrb[112].mxu1 %v8874_v25 }
 0x220   :  { %v1850_v33 = vadd.f32 %v1800_v26, %v1658_v28  ;;  %v1801_v34 = vadd.f32 %v1398_v30, %v1392_v19  ;;  %2202 = vmatprep.mubr.bf16.mxu1 %v8398_v60 }
 0x221   :  { %v1915_v43 = vmul.f32 0.2, %v1890_v29 }
 0x223   :  { %v1940_v51 = vmax.f32 %v1890_v29, %v1915_v43 }
 0x224   :  { %v1402_v35 = vpop.f32.mrb[40].mxu1  ;;  %v1663_v36 = vpop.f32.mrb[140].mxu0 }
 0x225   :  { %v1851_v37 = vadd.f32 %v1801_v34, %v1663_v36  ;;  %v1404_v38 = vpop.f32.mrb[41].mxu1  ;;  %v7517_v39 = vpop.f32.mrb[141].mxu0 }
 0x226   :  { %v1802_v40 = vadd.f32 %v1404_v38, %v1396_v27  ;;  %v1406_v41 = vpop.f32.mrb[42].mxu1  ;;  %v1666_v42 = vpop.f32.mrb[142].mxu0 }
 0x227   :  { %v1891_v44 = vmax.f32 %v1850_v33, %v1851_v37  ;;  %v1408_v46 = vpop.f32.mrb[43].mxu1  ;;  %v7518_v47 = vpop.f32.mrb[143].mxu0 }
 0x228   :  { %v1852_v48 = vadd.f32 %v1802_v40, %v1666_v42  ;;  %v1803_v49 = vadd.f32 %v1408_v46, %v1402_v35 }
 0x229   :  { %v1916_v50 = vmul.f32 0.2, %v1891_v44 }
 0x22b   :  { %v1941_v52 = vmax.f32 %v1891_v44, %v1916_v50 }
 0x22c   :  { %v1412_v53 = vpop.f32.mrb[44].mxu1  ;;  %v1671_v55 = vpop.f32.mrb[144].mxu0 }
 0x22d   :  { %v1853_v56 = vadd.f32 %v1803_v49, %v1671_v55  ;;  %v1414_v57 = vpop.f32.mrb[45].mxu1  ;;  %v7521_v58 = vpop.f32.mrb[145].mxu0  ;;  %v8882_v59 = vpack.c.bf16 %v1941_v52, %v1940_v51  ;;  %v7780_v55 = vld [vmem:[%s10450_s4 + $0x80] ss:$8 sps:$4 sm:$0xff]  }
 0x22e   :  { %v1804_v61 = vadd.f32 %v1414_v57, %v1406_v41  ;;  %v1416_v62 = vpop.f32.mrb[46].mxu1  ;;  %v1674_v63 = vpop.f32.mrb[146].mxu0  ;;  %v7782_v57 = vld [vmem:[%s10450_s4 + $0x84] ss:$8 sps:$4 sm:$0xff]  }
 0x22f   :  { %v1892_v0 = vmax.f32 %v1852_v48, %v1853_v56  ;;  %v1418_v1 = vpop.f32.mrb[47].mxu1  ;;  %v7522_v2 = vpop.f32.mrb[147].mxu0  ;;  %2203 = vmatmul.mubr.bf16.gmra.mrb[116].mxu1 %v8882_v59  ;;  %2640 = vmatprep.subr.bf16.mxu0 %v7782_v57 }
 0x230   :  { %v1854_v3 = vadd.f32 %v1804_v61, %v1674_v63  ;;  %v1805_v4 = vadd.f32 %v1418_v1, %v1412_v53  ;;  %2212 = vmatprep.mubr.bf16.mxu1 %v8398_v60  ;;  %2641 = vmatpush1.bf16.msra.mxu0 %v7780_v55 }
 0x231   :  { %v1917_v14 = vmul.f32 0.2, %v1892_v0 }
 0x233   :  { %v1942_v22 = vmax.f32 %v1892_v0, %v1917_v14 }
 0x234   :  { %v1422_v5 = vpop.f32.mrb[48].mxu1  ;;  %v1679_v6 = vpop.f32.mrb[148].mxu0 }
 0x235   :  { %v1855_v7 = vadd.f32 %v1805_v4, %v1679_v6  ;;  %v1424_v8 = vpop.f32.mrb[49].mxu1  ;;  %v7525_v9 = vpop.f32.mrb[149].mxu0 }
 0x236   :  { %v1806_v10 = vadd.f32 %v1424_v8, %v1416_v62  ;;  %v1426_v11 = vpop.f32.mrb[50].mxu1  ;;  %v1682_v13 = vpop.f32.mrb[150].mxu0 }
 0x237   :  { %v1893_v15 = vmax.f32 %v1854_v3, %v1855_v7  ;;  %v1428_v16 = vpop.f32.mrb[51].mxu1  ;;  %v7526_v17 = vpop.f32.mrb[151].mxu0 }
 0x238   :  { %v1856_v18 = vadd.f32 %v1806_v10, %v1682_v13  ;;  %v1807_v19 = vadd.f32 %v1428_v16, %v1422_v5 }
 0x239   :  { %v1918_v20 = vmul.f32 0.2, %v1893_v15 }
 0x23b   :  { %v1943_v23 = vmax.f32 %v1893_v15, %v1918_v20 }
 0x23c   :  { %v1432_v24 = vpop.f32.mrb[52].mxu1  ;;  %v1687_v26 = vpop.f32.mrb[152].mxu0 }
 0x23d   :  { %v1857_v27 = vadd.f32 %v1807_v19, %v1687_v26  ;;  %v1434_v28 = vpop.f32.mrb[53].mxu1  ;;  %v7529_v29 = vpop.f32.mrb[153].mxu0  ;;  %v8886_v30 = vpack.c.bf16 %v1943_v23, %v1942_v22 }
 0x23e   :  { %v1808_v31 = vadd.f32 %v1434_v28, %v1426_v11  ;;  %v1436_v32 = vpop.f32.mrb[54].mxu1  ;;  %v1690_v33 = vpop.f32.mrb[154].mxu0 }
 0x23f   :  { %v1894_v34 = vmax.f32 %v1856_v18, %v1857_v27  ;;  %v1438_v35 = vpop.f32.mrb[55].mxu1  ;;  %v7530_v36 = vpop.f32.mrb[155].mxu0  ;;  %2213 = vmatmul.mubr.bf16.gmra.mrb[120].mxu1 %v8886_v30 }
 0x240   :  { %v1858_v37 = vadd.f32 %v1808_v31, %v1690_v33  ;;  %v1809_v38 = vadd.f32 %v1438_v35, %v1432_v24  ;;  %2222 = vmatprep.mubr.bf16.mxu1 %v8398_v60 }
 0x241   :  { %v1919_v48 = vmul.f32 0.2, %v1894_v34 }
 0x243   :  { %v1944_v58 = vmax.f32 %v1894_v34, %v1919_v48 }
 0x244   :  { %v1442_v39 = vpop.f32.mrb[56].mxu1  ;;  %v1695_v40 = vpop.f32.mrb[156].mxu0 }
 0x245   :  { %v1859_v41 = vadd.f32 %v1809_v38, %v1695_v40  ;;  %v1444_v42 = vpop.f32.mrb[57].mxu1  ;;  %v7533_v43 = vpop.f32.mrb[157].mxu0 }
 0x246   :  { %v1810_v44 = vadd.f32 %v1444_v42, %v1436_v32  ;;  %v1446_v46 = vpop.f32.mrb[58].mxu1  ;;  %v1698_v47 = vpop.f32.mrb[158].mxu0 }
 0x247   :  { %v1895_v49 = vmax.f32 %v1858_v37, %v1859_v41  ;;  %v1448_v50 = vpop.f32.mrb[59].mxu1  ;;  %v7534_v51 = vpop.f32.mrb[159].mxu0 }
 0x248   :  { %v1860_v52 = vadd.f32 %v1810_v44, %v1698_v47  ;;  %v1811_v53 = vadd.f32 %v1448_v50, %v1442_v39  ;;  %v7783_v51 = vld [vmem:[%s10450_s4 + $0x90] ss:$8 sps:$4 sm:$0xff]  }
 0x249   :  { %v1920_v56 = vmul.f32 0.2, %v1895_v49 }
 0x24b   :  { %v1945_v61 = vmax.f32 %v1895_v49, %v1920_v56 }
 0x24c   :  { %v1452_v62 = vpop.f32.mrb[60].mxu1  ;;  %v1703_v63 = vpop.f32.mrb[160].mxu0 }
 0x24d   :  { %v1861_v0 = vadd.f32 %v1811_v53, %v1703_v63  ;;  %v1454_v1 = vpop.f32.mrb[61].mxu1  ;;  %v7537_v2 = vpop.f32.mrb[161].mxu0  ;;  %v8896_v3 = vpack.c.bf16 %v1945_v61, %v1944_v58 }
 0x24e   :  { %v1812_v4 = vadd.f32 %v1454_v1, %v1446_v46  ;;  %v1456_v5 = vpop.f32.mrb[62].mxu1  ;;  %v1706_v6 = vpop.f32.mrb[162].mxu0 }
 0x24f   :  { %v1896_v7 = vmax.f32 %v1860_v52, %v1861_v0  ;;  %v1458_v8 = vpop.f32.mrb[63].mxu1  ;;  %v7538_v9 = vpop.f32.mrb[163].mxu0  ;;  %2223 = vmatmul.mubr.bf16.gmra.mrb[124].mxu1 %v8896_v3  ;;  %v7785_v52 = vld [vmem:[%s10450_s4 + $0x94] ss:$8 sps:$4 sm:$0xff]  }
 0x250   :  { %v1862_v10 = vadd.f32 %v1812_v4, %v1706_v6  ;;  %v1813_v11 = vadd.f32 %v1458_v8, %v1452_v62  ;;  %2232 = vmatprep.mubr.bf16.mxu1 %v8398_v60  ;;  %2642 = vmatprep.subr.bf16.mxu0 %v7785_v52 }
 0x251   :  { %v1921_v13 = vmul.f32 0.2, %v1896_v7  ;;  %2643 = vmatpush1.bf16.msra.mxu0 %v7783_v51 }
 0x253   :  { %v1946_v31 = vmax.f32 %v1896_v7, %v1921_v13 }
 0x254   :  { %v1462_v14 = vpop.f32.mrb[64].mxu1  ;;  %v1711_v15 = vpop.f32.mrb[164].mxu0 }
 0x255   :  { %v1863_v16 = vadd.f32 %v1813_v11, %v1711_v15  ;;  %v1464_v17 = vpop.f32.mrb[65].mxu1  ;;  %v7541_v18 = vpop.f32.mrb[165].mxu0 }
 0x256   :  { %v1814_v19 = vadd.f32 %v1464_v17, %v1456_v5  ;;  %v1466_v20 = vpop.f32.mrb[66].mxu1  ;;  %v1714_v22 = vpop.f32.mrb[166].mxu0 }
 0x257   :  { %v1897_v23 = vmax.f32 %v1862_v10, %v1863_v16  ;;  %v1468_v24 = vpop.f32.mrb[67].mxu1  ;;  %v7542_v26 = vpop.f32.mrb[167].mxu0 }
 0x258   :  { %v1864_v27 = vadd.f32 %v1814_v19, %v1714_v22  ;;  %v1815_v28 = vadd.f32 %v1468_v24, %v1462_v14 }
 0x259   :  { %v1922_v29 = vmul.f32 0.2, %v1897_v23 }
 0x25b   :  { %v1947_v32 = vmax.f32 %v1897_v23, %v1922_v29 }
 0x25c   :  { %v1472_v33 = vpop.f32.mrb[68].mxu1  ;;  %v1719_v34 = vpop.f32.mrb[168].mxu0 }
 0x25d   :  { %v1865_v35 = vadd.f32 %v1815_v28, %v1719_v34  ;;  %v1474_v36 = vpop.f32.mrb[69].mxu1  ;;  %v7545_v37 = vpop.f32.mrb[169].mxu0  ;;  %v8900_v38 = vpack.c.bf16 %v1947_v32, %v1946_v31 }
 0x25e   :  { %v1816_v39 = vadd.f32 %v1474_v36, %v1466_v20  ;;  %v1476_v40 = vpop.f32.mrb[70].mxu1  ;;  %v1722_v41 = vpop.f32.mrb[170].mxu0  ;;  %v7786_v37 = vld [vmem:[%s10450_s4 + $0xa0] ss:$8 sps:$4 sm:$0xff]  }
 0x25f   :  { %v1898_v42 = vmax.f32 %v1864_v27, %v1865_v35  ;;  %v1478_v43 = vpop.f32.mrb[71].mxu1  ;;  %v7546_v44 = vpop.f32.mrb[171].mxu0  ;;  %2233 = vmatmul.mubr.bf16.gmra.mrb[128].mxu1 %v8900_v38 }
 0x260   :  { %v1866_v46 = vadd.f32 %v1816_v39, %v1722_v41  ;;  %v1817_v47 = vadd.f32 %v1478_v43, %v1472_v33  ;;  %2242 = vmatprep.mubr.bf16.mxu1 %v8398_v60  ;;  %v7788_v39 = vld [vmem:[%s10450_s4 + $0xa4] ss:$8 sps:$4 sm:$0xff]  }
 0x261   :  { %v1923_v48 = vmul.f32 0.2, %v1898_v42  ;;  %2644 = vmatprep.subr.bf16.mxu0 %v7788_v39 }
 0x262   :  { %2645 = vmatpush1.bf16.msra.mxu0 %v7786_v37 }
 0x263   :  { %v1948_v5 = vmax.f32 %v1898_v42, %v1923_v48 }
 0x264   :  { %v1482_v49 = vpop.f32.mrb[72].mxu1  ;;  %v1727_v50 = vpop.f32.mrb[172].mxu0 }
 0x265   :  { %v1867_v53 = vadd.f32 %v1817_v47, %v1727_v50  ;;  %v1484_v55 = vpop.f32.mrb[73].mxu1  ;;  %v7549_v56 = vpop.f32.mrb[173].mxu0 }
 0x266   :  { %v1818_v57 = vadd.f32 %v1484_v55, %v1476_v40  ;;  %v1486_v58 = vpop.f32.mrb[74].mxu1  ;;  %v1730_v61 = vpop.f32.mrb[174].mxu0 }
 0x267   :  { %v1899_v62 = vmax.f32 %v1866_v46, %v1867_v53  ;;  %v1488_v63 = vpop.f32.mrb[75].mxu1  ;;  %v7550_v0 = vpop.f32.mrb[175].mxu0 }
 0x268   :  { %v1868_v1 = vadd.f32 %v1818_v57, %v1730_v61  ;;  %v1819_v2 = vadd.f32 %v1488_v63, %v1482_v49 }
 0x269   :  { %v1924_v4 = vmul.f32 0.2, %v1899_v62 }
 0x26b   :  { %v1949_v6 = vmax.f32 %v1899_v62, %v1924_v4 }
 0x26c   :  { %v1492_v7 = vpop.f32.mrb[76].mxu1  ;;  %v1735_v8 = vpop.f32.mrb[176].mxu0 }
 0x26d   :  { %v1869_v9 = vadd.f32 %v1819_v2, %v1735_v8  ;;  %v1494_v10 = vpop.f32.mrb[77].mxu1  ;;  %v7553_v11 = vpop.f32.mrb[177].mxu0  ;;  %v8910_v13 = vpack.c.bf16 %v1949_v6, %v1948_v5 }
 0x26e   :  { %v1820_v14 = vadd.f32 %v1494_v10, %v1486_v58  ;;  %v1496_v15 = vpop.f32.mrb[78].mxu1  ;;  %v1738_v16 = vpop.f32.mrb[178].mxu0 }
 0x26f   :  { %v1900_v17 = vmax.f32 %v1868_v1, %v1869_v9  ;;  %v1498_v18 = vpop.f32.mrb[79].mxu1  ;;  %v7554_v19 = vpop.f32.mrb[179].mxu0  ;;  %2243 = vmatmul.mubr.bf16.gmra.mrb[132].mxu1 %v8910_v13 }
 0x270   :  { %v1870_v20 = vadd.f32 %v1820_v14, %v1738_v16  ;;  %v1821_v22 = vadd.f32 %v1498_v18, %v1492_v7  ;;  %2252 = vmatprep.mubr.bf16.mxu1 %v8398_v60 }
 0x271   :  { %v1925_v23 = vmul.f32 0.2, %v1900_v17 }
 0x273   :  { %v1950_v43 = vmax.f32 %v1900_v17, %v1925_v23 }
 0x274   :  { %v1502_v24 = vpop.f32.mrb[80].mxu1  ;;  %v1743_v26 = vpop.f32.mrb[180].mxu0 }
 0x275   :  { %v1871_v27 = vadd.f32 %v1821_v22, %v1743_v26  ;;  %v1504_v28 = vpop.f32.mrb[81].mxu1  ;;  %v7557_v29 = vpop.f32.mrb[181].mxu0 }
 0x276   :  { %v1822_v31 = vadd.f32 %v1504_v28, %v1496_v15  ;;  %v1506_v32 = vpop.f32.mrb[82].mxu1  ;;  %v1746_v33 = vpop.f32.mrb[182].mxu0 }
 0x277   :  { %v1901_v34 = vmax.f32 %v1870_v20, %v1871_v27  ;;  %v1508_v35 = vpop.f32.mrb[83].mxu1  ;;  %v7558_v36 = vpop.f32.mrb[183].mxu0 }
 0x278   :  { %v1872_v40 = vadd.f32 %v1822_v31, %v1746_v33  ;;  %v1823_v41 = vadd.f32 %v1508_v35, %v1502_v24 }
 0x279   :  { %v1926_v42 = vmul.f32 0.2, %v1901_v34 }
 0x27b   :  { %v1951_v44 = vmax.f32 %v1901_v34, %v1926_v42 }
 0x27c   :  { %v1512_v46 = vpop.f32.mrb[84].mxu1  ;;  %v1751_v47 = vpop.f32.mrb[184].mxu0 }
 0x27d   :  { %v1873_v48 = vadd.f32 %v1823_v41, %v1751_v47  ;;  %v1514_v49 = vpop.f32.mrb[85].mxu1  ;;  %v7561_v50 = vpop.f32.mrb[185].mxu0  ;;  %v8920_v51 = vpack.c.bf16 %v1951_v44, %v1950_v43  ;;  %v7789_v47 = vld [vmem:[%s10450_s4 + $0xb0] ss:$8 sps:$4 sm:$0xff]  }
 0x27e   :  { %v1824_v52 = vadd.f32 %v1514_v49, %v1506_v32  ;;  %v1516_v53 = vpop.f32.mrb[86].mxu1  ;;  %v1754_v55 = vpop.f32.mrb[186].mxu0 }
 0x27f   :  { %v1902_v56 = vmax.f32 %v1872_v40, %v1873_v48  ;;  %v1518_v57 = vpop.f32.mrb[87].mxu1  ;;  %v7562_v58 = vpop.f32.mrb[187].mxu0  ;;  %2253 = vmatmul.mubr.bf16.gmra.mrb[136].mxu1 %v8920_v51  ;;  %v7791_v48 = vld [vmem:[%s10450_s4 + $0xb4] ss:$8 sps:$4 sm:$0xff]  }
 0x280   :  { %v1874_v61 = vadd.f32 %v1824_v52, %v1754_v55  ;;  %v1825_v62 = vadd.f32 %v1518_v57, %v1512_v46  ;;  %2262 = vmatprep.mubr.bf16.mxu1 %v8398_v60  ;;  %2646 = vmatprep.subr.bf16.mxu0 %v7791_v48 }
 0x281   :  { %v1927_v63 = vmul.f32 0.2, %v1902_v56  ;;  %2647 = vmatpush1.bf16.msra.mxu0 %v7789_v47  ;;  %v7822_v47 = vld [vmem:[%s10450_s4 + $0x60] ss:$8 sps:$4 sm:$0xff]  }
 0x283   :  { %v1952_v17 = vmax.f32 %v1902_v56, %v1927_v63 }
 0x284   :  { %v1522_v0 = vpop.f32.mrb[88].mxu1  ;;  %v1759_v1 = vpop.f32.mrb[188].mxu0 }
 0x285   :  { %v1875_v2 = vadd.f32 %v1825_v62, %v1759_v1  ;;  %v1524_v4 = vpop.f32.mrb[89].mxu1  ;;  %v7565_v5 = vpop.f32.mrb[189].mxu0 }
 0x286   :  { %v1826_v6 = vadd.f32 %v1524_v4, %v1516_v53  ;;  %v1526_v7 = vpop.f32.mrb[90].mxu1  ;;  %v1762_v8 = vpop.f32.mrb[190].mxu0  ;;  %v7794_v4 = vld [vmem:[%s10450_s4 + $0xc4] ss:$8 sps:$4 sm:$0xff]  }
 0x287   :  { %v1903_v9 = vmax.f32 %v1874_v61, %v1875_v2  ;;  %v1528_v10 = vpop.f32.mrb[91].mxu1  ;;  %v7566_v11 = vpop.f32.mrb[191].mxu0  ;;  %v7792_v2 = vld [vmem:[%s10450_s4 + $0xc0] ss:$8 sps:$4 sm:$0xff]   ;;  %2648 = vmatprep.subr.bf16.mxu0 %v7794_v4 }
 0x288   :  { %v1876_v14 = vadd.f32 %v1826_v6, %v1762_v8  ;;  %v1827_v15 = vadd.f32 %v1528_v10, %v1522_v0  ;;  %2649 = vmatpush1.bf16.msra.mxu0 %v7792_v2  ;;  %v7800_v10 = vld [vmem:[%s10450_s4 + $0x4] ss:$8 sps:$4 sm:$0xff]  }
 0x289   :  { %v1928_v16 = vmul.f32 0.2, %v1903_v9  ;;  %2761 = vmatprep.subr.bf16.mxu1 %v7800_v10 }
 0x28b   :  { %v1953_v18 = vmax.f32 %v1903_v9, %v1928_v16 }
 0x28c   :  { %v1532_v19 = vpop.f32.mrb[92].mxu1  ;;  %v1767_v20 = vpop.f32.mrb[192].mxu0 }
 0x28d   :  { %v1877_v22 = vadd.f32 %v1827_v15, %v1767_v20  ;;  %v1534_v23 = vpop.f32.mrb[93].mxu1  ;;  %v7569_v24 = vpop.f32.mrb[193].mxu0  ;;  %v8924_v26 = vpack.c.bf16 %v1953_v18, %v1952_v17  ;;  %v7801_v18 = vld [vmem:[%s10450_s4 + $0x10] ss:$8 sps:$4 sm:$0xff]   ;;  %v7806_v20 = vld [vmem:[%s10450_s4 + $0xe4] ss:$8 sps:$4 sm:$0xff]  }
 0x28e   :  { %v1828_v27 = vadd.f32 %v1534_v23, %v1526_v7  ;;  %v1536_v28 = vpop.f32.mrb[94].mxu1  ;;  %v1770_v29 = vpop.f32.mrb[194].mxu0  ;;  %v7809_v23 = vld [vmem:[%s10450_s4 + $0x24] ss:$8 sps:$4 sm:$0xff]  }
 0x28f   :  { %v1904_v31 = vmax.f32 %v1876_v14, %v1877_v22  ;;  %v1538_v32 = vpop.f32.mrb[95].mxu1  ;;  %v7570_v33 = vpop.f32.mrb[195].mxu0  ;;  %2263 = vmatmul.mubr.bf16.gmra.mrb[140].mxu1 %v8924_v26 }
 0x290   :  { %v1878_v34 = vadd.f32 %v1828_v27, %v1770_v29  ;;  %v1829_v35 = vadd.f32 %v1538_v32, %v1532_v19  ;;  %2272 = vmatprep.mubr.bf16.mxu1 %v8398_v60  ;;  %v7803_v19 = vld [vmem:[%s10450_s4 + $0x14] ss:$8 sps:$4 sm:$0xff]  }
 0x291   :  { %v1929_v36 = vmul.f32 0.2, %v1904_v31  ;;  %v7812_v32 = vld [vmem:[%s10450_s4 + $0x34] ss:$8 sps:$4 sm:$0xff]  }
 0x293   :  { %v1954_v58 = vmax.f32 %v1904_v31, %v1929_v36  ;;  %v7810_v31 = vld [vmem:[%s10450_s4 + $0x30] ss:$8 sps:$4 sm:$0xff]  }
 0x294   :  { %v1542_v37 = vpop.f32.mrb[96].mxu1  ;;  %v1775_v39 = vpop.f32.mrb[196].mxu0 }
 0x295   :  { %v1879_v40 = vadd.f32 %v1829_v35, %v1775_v39  ;;  %v1544_v41 = vpop.f32.mrb[97].mxu1  ;;  %v7573_v42 = vpop.f32.mrb[197].mxu0 }
 0x296   :  { %v1830_v43 = vadd.f32 %v1544_v41, %v1536_v28  ;;  %v1546_v44 = vpop.f32.mrb[98].mxu1  ;;  %v1778_v46 = vpop.f32.mrb[198].mxu0  ;;  %v7816_v41 = vld [vmem:[%s10450_s4 + $0x40] ss:$8 sps:$4 sm:$0xff]   ;;  %v7821_v42 = vld [vmem:[%s10450_s4 + $0x54] ss:$8 sps:$4 sm:$0xff]  }
 0x297   :  { %v1905_v49 = vmax.f32 %v1878_v34, %v1879_v40  ;;  %v1547_v50 = vpop.f32.mrb[99].mxu1  ;;  %v7574_v52 = vpop.f32.mrb[199].mxu0  ;;  %v7815_v40 = vld [vmem:[%s10450_s4 + $0xf4] ss:$8 sps:$4 sm:$0xff]   ;;  %v7824_v44 = vld [vmem:[%s10450_s4 + $0x64] ss:$8 sps:$4 sm:$0xff]  }
 0x298   :  { %v1880_v53 = vadd.f32 %v1830_v43, %v1778_v46  ;;  %v1831_v55 = vadd.f32 %v1547_v50, %v1542_v37  ;;  %v7827_v52 = vld [vmem:[%s10450_s4 + $0x74] ss:$8 sps:$4 sm:$0xff]  }
 0x299   :  { %v1930_v56 = vmul.f32 0.2, %v1905_v49 }
 0x29a   :  { %v1906_v57 = vmax.f32 %v1880_v53, %v1831_v55  ;;  %v7825_v53 = vld [vmem:[%s10450_s4 + $0x70] ss:$8 sps:$4 sm:$0xff]   ;;  %v7830_v55 = vld [vmem:[%s10450_s4 + $0x184] ss:$8 sps:$4 sm:$0xff]  }
 0x29b   :  { %v1955_v61 = vmax.f32 %v1905_v49, %v1930_v56  ;;  %v7836_v56 = vld [vmem:[%s10450_s4 + $0x104] ss:$8 sps:$4 sm:$0xff]  }
 0x29c   :  { %v1931_v62 = vmul.f32 0.2, %v1906_v57 }
 0x29d   :  { %v8934_v63 = vpack.c.bf16 %v1955_v61, %v1954_v58 }
 0x29e   :  { %v1956_v0 = vmax.f32 %v1906_v57, %v1931_v62 }
 0x29f   :  { %2273 = vmatmul.mubr.bf16.gmra.mrb[144].mxu1 %v8934_v63 }
 0x2a0   :  { %2282 = vmatprep.mubr.bf16.mxu1 %v8398_v60  ;;  %v8938_v1 = vpack.c.bf16 %v1956_v0, %v1956_v0 }
 0x2a7   :  { %2283 = vmatmul.mubr.bf16.gmra.mrb[148].mxu1 %v8938_v1 }
 0x2a8   :  { %7591 = vmatprep.mubr.msk.bf16.mxu1 %vm8399_vm0, %v8397_v12 }
 0x2af   :  { %7592 = vmatmul.mubr.bf16.vlgmr.msra.gmra.mrb[152].mxu1 %v8838_v45  ;;  %v7795_v45 = vld [vmem:[%s10450_s4 + $0xd0] ss:$8 sps:$4 sm:$0xff]  }
 0x2b0   :  { %7595 = vmatprep.mubr.msk.bf16.mxu1 %vm8399_vm0, %v8397_v12 }
 0x2b7   :  { %7596 = vmatmul.mubr.bf16.gmra.mrb[156].mxu1 %v8857_v21  ;;  %v7797_v21 = vld [vmem:[%s10450_s4 + $0xd4] ss:$8 sps:$4 sm:$0xff]  }
 0x2b8   :  { %7599 = vmatprep.mubr.msk.bf16.mxu1 %vm8399_vm0, %v8397_v12  ;;  %2650 = vmatprep.subr.bf16.mxu0 %v7797_v21 }
 0x2b9   :  { %2651 = vmatpush1.bf16.msra.mxu0 %v7795_v45 }
 0x2ba   :  { %2652 = vmatprep.subr.bf16.mxu0 %v7806_v20 }
 0x2bf   :  { %7600 = vmatmul.mubr.bf16.gmra.mrb[160].mxu1 %v8866_v54  ;;  %v7798_v54 = vld [vmem:[%s10450_s4] ss:$8 sps:$4 sm:$0xff]  }
 0x2c0   :  { %7603 = vmatprep.mubr.msk.bf16.mxu1 %vm8399_vm0, %v8397_v12  ;;  %2762 = vmatpush1.bf16.msra.mxu1 %v7798_v54 }
 0x2c1   :  { %2763 = vmatprep.subr.bf16.mxu1 %v7803_v19 }
 0x2c2   :  { %v2164_v5 = vpop.f32.mrb[100].mxu1 }
 0x2c3   :  { %v8958_v6 = vpop.f32.mrb[101].mxu1 }
 0x2c4   :  { %v2168_v7 = vpop.f32.mrb[102].mxu1  ;;  %2764 = vmatpush1.bf16.msra.mxu1 %v7801_v18 }
 0x2c5   :  { %v2170_v8 = vpop.f32.mrb[103].mxu1  ;;  %2765 = vmatprep.subr.bf16.mxu1 %v7809_v23 }
 0x2c6   :  { %v8960_v9 = vadd.f32 %v2170_v8, %v2164_v5 }
 0x2c7   :  { %7604 = vmatmul.mubr.bf16.gmra.mrb[164].mxu1 %v8874_v25 }
 0x2c8   :  { %7607 = vmatprep.mubr.msk.bf16.mxu1 %vm8399_vm0, %v8397_v12 }
 0x2cf   :  { %7608 = vmatmul.mubr.bf16.gmra.mrb[168].mxu1 %v8882_v59  ;;  %v7804_v59 = vld [vmem:[%s10450_s4 + $0xe0] ss:$8 sps:$4 sm:$0xff]  }
 0x2d0   :  { %7611 = vmatprep.mubr.msk.bf16.mxu1 %vm8399_vm0, %v8397_v12  ;;  %2653 = vmatpush1.bf16.msra.mxu0 %v7804_v59 }
 0x2d1   :  { %2654 = vmatprep.subr.bf16.mxu0 %v7815_v40 }
 0x2d2   :  { %v2174_v11 = vpop.f32.mrb[104].mxu1 }
 0x2d3   :  { %v2176_v14 = vpop.f32.mrb[105].mxu1 }
 0x2d4   :  { %v8980_v15 = vadd.f32 %v2176_v14, %v2168_v7  ;;  %v2178_v25 = vpop.f32.mrb[106].mxu1 }
 0x2d5   :  { %v2180_v16 = vpop.f32.mrb[107].mxu1 }
 0x2d6   :  { %v8982_v17 = vadd.f32 %v2180_v16, %v2174_v11 }
 0x2d7   :  { %7612 = vmatmul.mubr.bf16.gmra.mrb[172].mxu1 %v8886_v30  ;;  %v7807_v30 = vld [vmem:[%s10450_s4 + $0x20] ss:$8 sps:$4 sm:$0xff]  }
 0x2d8   :  { %7615 = vmatprep.mubr.msk.bf16.mxu1 %vm8399_vm0, %v8397_v12  ;;  %2766 = vmatpush1.bf16.msra.mxu1 %v7807_v30 }
 0x2d9   :  { %2767 = vmatprep.subr.bf16.mxu1 %v7812_v32 }
 0x2dc   :  { %2768 = vmatpush1.bf16.msra.mxu1 %v7810_v31 }
 0x2df   :  { %7616 = vmatmul.mubr.bf16.gmra.mrb[176].mxu1 %v8896_v3 }
 0x2e0   :  { %7619 = vmatprep.mubr.msk.bf16.mxu1 %vm8399_vm0, %v8397_v12 }
 0x2e2   :  { %v2184_v22 = vpop.f32.mrb[108].mxu1 }
 0x2e3   :  { %v2186_v24 = vpop.f32.mrb[109].mxu1 }
 0x2e4   :  { %v9008_v27 = vadd.f32 %v2186_v24, %v2178_v25  ;;  %v2188_v28 = vpop.f32.mrb[110].mxu1 }
 0x2e5   :  { %v2190_v29 = vpop.f32.mrb[111].mxu1 }
 0x2e6   :  { %v9010_v3 = vadd.f32 %v2190_v29, %v2184_v22 }
 0x2e7   :  { %7620 = vmatmul.mubr.bf16.gmra.mrb[180].mxu1 %v8900_v38  ;;  %v7813_v38 = vld [vmem:[%s10450_s4 + $0xf0] ss:$8 sps:$4 sm:$0xff]  }
 0x2e8   :  { %7623 = vmatprep.mubr.msk.bf16.mxu1 %vm8399_vm0, %v8397_v12  ;;  %2655 = vmatpush1.bf16.msra.mxu0 %v7813_v38 }
 0x2e9   :  { %2900 = vmatprep.subr.bf16.mxu0 %v7836_v56 }
 0x2ef   :  { %7624 = vmatmul.mubr.bf16.gmra.mrb[184].mxu1 %v8910_v13  ;;  %v7818_v13 = vld [vmem:[%s10450_s4 + $0x44] ss:$8 sps:$4 sm:$0xff]  }
 0x2f0   :  { %7627 = vmatprep.mubr.msk.bf16.mxu1 %vm8399_vm0, %v8397_v12  ;;  %2769 = vmatprep.subr.bf16.mxu1 %v7818_v13 }
 0x2f1   :  { %2770 = vmatpush1.bf16.msra.mxu1 %v7816_v41 }
 0x2f2   :  { %v2194_v33 = vpop.f32.mrb[112].mxu1  ;;  %2771 = vmatprep.subr.bf16.mxu1 %v7821_v42 }
 0x2f3   :  { %v2196_v34 = vpop.f32.mrb[113].mxu1 }
 0x2f4   :  { %v9024_v35 = vadd.f32 %v2196_v34, %v2188_v28  ;;  %v2198_v36 = vpop.f32.mrb[114].mxu1 }
 0x2f5   :  { %v2200_v37 = vpop.f32.mrb[115].mxu1 }
 0x2f6   :  { %v9026_v39 = vadd.f32 %v2200_v37, %v2194_v33 }
 0x2f7   :  { %7628 = vmatmul.mubr.bf16.gmra.mrb[188].mxu1 %v8920_v51  ;;  %v7819_v51 = vld [vmem:[%s10450_s4 + $0x50] ss:$8 sps:$4 sm:$0xff]  }
 0x2f8   :  { %7631 = vmatprep.mubr.msk.bf16.mxu1 %vm8399_vm0, %v8397_v12  ;;  %2772 = vmatpush1.bf16.msra.mxu1 %v7819_v51 }
 0x2f9   :  { %2773 = vmatprep.subr.bf16.mxu1 %v7824_v44 }
 0x2fc   :  { %2774 = vmatpush1.bf16.msra.mxu1 %v7822_v47 }
 0x2fd   :  { %2775 = vmatprep.subr.bf16.mxu1 %v7827_v52 }
 0x2ff   :  { %7632 = vmatmul.mubr.bf16.gmra.mrb[192].mxu1 %v8924_v26 }
 0x300   :  { %7635 = vmatprep.mubr.msk.bf16.mxu1 %vm8399_vm0, %v8397_v12  ;;  %2776 = vmatpush1.bf16.msra.mxu1 %v7825_v53 }
 0x301   :  { %3041 = vmatprep.subr.bf16.mxu1 %v7830_v55 }
 0x302   :  { %v2204_v43 = vpop.f32.mrb[116].mxu1 }
 0x303   :  { %v2206_v46 = vpop.f32.mrb[117].mxu1 }
 0x304   :  { %v9058_v26 = vadd.f32 %v2206_v46, %v2198_v36  ;;  %v2208_v48 = vpop.f32.mrb[118].mxu1 }
 0x305   :  { %v2210_v49 = vpop.f32.mrb[119].mxu1 }
 0x306   :  { %v9060_v50 = vadd.f32 %v2210_v49, %v2204_v43 }
 0x307   :  { %7636 = vmatmul.mubr.bf16.gmra.mrb[196].mxu1 %v8934_v63 }
 0x308   :  { %7639 = vmatprep.mubr.msk.bf16.mxu1 %vm8399_vm0, %v8397_v12 }
 0x30f   :  { %7640 = vmatmul.mubr.bf16.gmra.mrb[200].mxu1 %v8938_v1 }
 0x310   :  { %2793 = vmatprep.mubr.bf16.mxu1 %v8398_v60 }
 0x312   :  { %v2214_v57 = vpop.f32.mrb[120].mxu1 }
 0x313   :  { %v2216_v58 = vpop.f32.mrb[121].mxu1 }
 0x314   :  { %v9079_v61 = vadd.f32 %v2216_v58, %v2208_v48  ;;  %v2218_v62 = vpop.f32.mrb[122].mxu1 }
 0x315   :  { %v2220_v63 = vpop.f32.mrb[123].mxu1 }
 0x316   :  { %v9081_v0 = vadd.f32 %v2220_v63, %v2214_v57  ;;  %v7828_v63 = vld [vmem:[%s10450_s4 + $0x180] ss:$8 sps:$4 sm:$0xff]  }
 0x322   :  { %v2224_v2 = vpop.f32.mrb[124].mxu1 }
 0x323   :  { %v2226_v4 = vpop.f32.mrb[125].mxu1 }
 0x324   :  { %v9083_v5 = vadd.f32 %v2226_v4, %v2218_v62  ;;  %v2228_v1 = vpop.f32.mrb[126].mxu1 }
 0x325   :  { %v2230_v7 = vpop.f32.mrb[127].mxu1 }
 0x326   :  { %v9085_v8 = vadd.f32 %v2230_v7, %v2224_v2  ;;  %v7833_v7 = vld [vmem:[%s10450_s4 + $0x194] ss:$8 sps:$4 sm:$0xff]  }
 0x332   :  { %v2234_v45 = vpop.f32.mrb[128].mxu1 }
 0x333   :  { %v2236_v21 = vpop.f32.mrb[129].mxu1 }
 0x334   :  { %v9087_v54 = vadd.f32 %v2236_v21, %v2228_v1  ;;  %v2238_v10 = vpop.f32.mrb[130].mxu1 }
 0x335   :  { %v2240_v11 = vpop.f32.mrb[131].mxu1 }
 0x336   :  { %v9089_v14 = vadd.f32 %v2240_v11, %v2234_v45  ;;  %v7831_v11 = vld [vmem:[%s10450_s4 + $0x190] ss:$8 sps:$4 sm:$0xff]  }
 0x342   :  { %v2244_v25 = vpop.f32.mrb[132].mxu1 }
 0x343   :  { %v2246_v16 = vpop.f32.mrb[133].mxu1 }
 0x344   :  { %v9091_v18 = vadd.f32 %v2246_v16, %v2238_v10  ;;  %v2248_v19 = vpop.f32.mrb[134].mxu1 }
 0x345   :  { %v2250_v59 = vpop.f32.mrb[135].mxu1 }
 0x346   :  { %v9093_v20 = vadd.f32 %v2250_v59, %v2244_v25  ;;  %v7839_v25 = vld [vmem:[%s10450_s4 + $0x1a4] ss:$8 sps:$4 sm:$0xff]  }
 0x352   :  { %v2254_v22 = vpop.f32.mrb[136].mxu1 }
 0x353   :  { %v2256_v30 = vpop.f32.mrb[137].mxu1 }
 0x354   :  { %v9095_v23 = vadd.f32 %v2256_v30, %v2248_v19  ;;  %v2258_v24 = vpop.f32.mrb[138].mxu1  ;;  %v7842_v19 = vld [vmem:[%s10450_s4 + $0x114] ss:$8 sps:$4 sm:$0xff]  }
 0x355   :  { %v2260_v28 = vpop.f32.mrb[139].mxu1 }
 0x356   :  { %v9097_v29 = vadd.f32 %v2260_v28, %v2254_v22  ;;  %v7837_v22 = vld [vmem:[%s10450_s4 + $0x1a0] ss:$8 sps:$4 sm:$0xff]   ;;  %v7845_v28 = vld [vmem:[%s10450_s4 + $0x1b4] ss:$8 sps:$4 sm:$0xff]  }
 0x362   :  { %v2264_v31 = vpop.f32.mrb[140].mxu1 }
 0x363   :  { %v2266_v32 = vpop.f32.mrb[141].mxu1 }
 0x364   :  { %v9099_v33 = vadd.f32 %v2266_v32, %v2258_v24  ;;  %v2268_v34 = vpop.f32.mrb[142].mxu1  ;;  %v7840_v32 = vld [vmem:[%s10450_s4 + $0x110] ss:$8 sps:$4 sm:$0xff]  }
 0x365   :  { %v2270_v36 = vpop.f32.mrb[143].mxu1 }
 0x366   :  { %v9101_v37 = vadd.f32 %v2270_v36, %v2264_v31 }
 0x372   :  { %v2274_v38 = vpop.f32.mrb[144].mxu1 }
 0x373   :  { %v2276_v40 = vpop.f32.mrb[145].mxu1 }
 0x374   :  { %v9103_v13 = vadd.f32 %v2276_v40, %v2268_v34  ;;  %v2278_v41 = vpop.f32.mrb[146].mxu1  ;;  %v7851_v40 = vld [vmem:[%s10450_s4 + $0x1c4] ss:$8 sps:$4 sm:$0xff]  }
 0x375   :  { %v2280_v42 = vpop.f32.mrb[147].mxu1 }
 0x376   :  { %v9105_v51 = vadd.f32 %v2280_v42, %v2274_v38  ;;  %v7843_v38 = vld [vmem:[%s10450_s4 + $0x1b0] ss:$8 sps:$4 sm:$0xff]  }
 0x37a   :  { %v2284_v43 = vpop.f32.mrb[148].mxu1 }
 0x37b   :  { %v2285_v44 = vpop.f32.mrb[149].mxu1  ;;  %v7849_v43 = vld [vmem:[%s10450_s4 + $0x1c0] ss:$8 sps:$4 sm:$0xff]  }
 0x37c   :  { %v9107_v46 = vadd.f32 %v2285_v44, %v2278_v41  ;;  %v2287_v47 = vpop.f32.mrb[150].mxu1  ;;  %v7854_v41 = vld [vmem:[%s10450_s4 + $0x134] ss:$8 sps:$4 sm:$0xff]  }
 0x37d   :  { %v2288_v48 = vpop.f32.mrb[151].mxu1 }
 0x37e   :  { %v7857_v48 = vld [vmem:[%s10450_s4 + $0x1d4] ss:$8 sps:$4 sm:$0xff]  }
 0x382   :  { %v2324_v49 = vpop.f32.mrb[152].mxu1 }
 0x383   :  { %v7593_v52 = vpop.f32.mrb[153].mxu1 }
 0x384   :  { %v2326_v53 = vpop.f32.mrb[154].mxu1  ;;  %v7852_v52 = vld [vmem:[%s10450_s4 + $0x130] ss:$8 sps:$4 sm:$0xff]  }
 0x385   :  { %v2450_v55 = vadd.f32 %v2326_v53, %v8958_v6  ;;  %v7594_v56 = vpop.f32.mrb[155].mxu1 }
 0x386   :  { %v7855_v56 = vld [vmem:[%s10450_s4 + $0x1d0] ss:$8 sps:$4 sm:$0xff]  }
 0x387   :  { %v2475_v57 = vmul.f32 0.2, %v2450_v55 }
 0x389   :  { %v2500_v58 = vmax.f32 %v2450_v55, %v2475_v57  ;;  %v7863_v57 = vld [vmem:[%s10450_s4 + $0x1e4] ss:$8 sps:$4 sm:$0xff]  }
 0x38a   :  { %v2331_v62 = vpop.f32.mrb[156].mxu1 }
 0x38b   :  { %v2525_v2 = vpack.c.bf16 %v2500_v58, %v2500_v58  ;;  %v2451_v4 = vadd.f32 %v8960_v9, %v2331_v62  ;;  %v7597_v1 = vpop.f32.mrb[157].mxu1  ;;  %v7866_v58 = vld [vmem:[%s10450_s4 + $0x154] ss:$8 sps:$4 sm:$0xff]  }
 0x38c   :  { %v2334_v45 = vpop.f32.mrb[158].mxu1 }
 0x38d   :  { %v2476_v21 = vmul.f32 0.2, %v2451_v4  ;;  %v9118_v6 = vadd.f32 %v8980_v15, %v2334_v45  ;;  %v7598_v10 = vpop.f32.mrb[159].mxu1  ;;  %2794 = vmatmul.mubr.bf16.vlgmr.msra.gmra.mrb[204].mxu1 %v2525_v2  ;;  %v7834_v15 = vld [vmem:[%s10450_s4 + $0x100] ss:$8 sps:$4 sm:$0xff]  }
 0x38e   :  { %3042 = vmatpush1.bf16.msra.mxu1 %v7828_v63  ;;  %3073 = vmatprep.mubr.bf16.mxu1 %v8398_v60  ;;  %v7861_v63 = vld [vmem:[%s10450_s4 + $0x1e0] ss:$8 sps:$4 sm:$0xff]  }
 0x38f   :  { %v2501_v9 = vmax.f32 %v2451_v4, %v2476_v21  ;;  %3043 = vmatprep.subr.bf16.mxu1 %v7833_v7  ;;  %v7869_v7 = vld [vmem:[%s10450_s4 + $0x1f4] ss:$8 sps:$4 sm:$0xff]   ;;  %v7864_v21 = vld [vmem:[%s10450_s4 + $0x150] ss:$8 sps:$4 sm:$0xff]  }
 0x391   :  { %v2542_v16 = vpack.c.bf16 %v2501_v9, %v2501_v9  ;;  %v7867_v9 = vld [vmem:[%s10450_s4 + $0x1f0] ss:$8 sps:$4 sm:$0xff]  }
 0x392   :  { %3044 = vmatpush1.bf16.msra.mxu1 %v7831_v11  ;;  %v2339_v59 = vpop.f32.mrb[160].mxu1 }
 0x393   :  { %v2453_v30 = vadd.f32 %v8982_v17, %v2339_v59  ;;  %v7601_v24 = vpop.f32.mrb[161].mxu1  ;;  %2673 = vmatmul.mubr.bf16.vlgmr.msra.gmra.mrb[200].mxu0 %v2542_v16  ;;  %3045 = vmatprep.subr.bf16.mxu1 %v7839_v25  ;;  %v7848_v17 = vld [vmem:[%s10450_s4 + $0x124] ss:$8 sps:$4 sm:$0xff]   ;;  %v2477_v16 = vmul.f32 0.2, %v9118_v6 }
 0x394   :  { %2901 = vmatpush1.bf16.msra.mxu0 %v7834_v15  ;;  %v2342_v31 = vpop.f32.mrb[162].mxu1  ;;  %2932 = vmatprep.mubr.bf16.mxu0 %v8398_v60  ;;  %v7875_v15 = vld [vmem:[%s10450_s4 + $0x284] ss:$8 sps:$4 sm:$0xff]  }
 0x395   :  { %v9145_v34 = vadd.f32 %v9008_v27, %v2342_v31  ;;  %v7602_v36 = vpop.f32.mrb[163].mxu1  ;;  %2902 = vmatprep.subr.bf16.mxu0 %v7842_v19  ;;  %v7846_v27 = vld [vmem:[%s10450_s4 + $0x120] ss:$8 sps:$4 sm:$0xff]   ;;  %v2478_v2 = vmul.f32 0.2, %v2453_v30 }
 0x396   :  { %3046 = vmatpush1.bf16.msra.mxu1 %v7837_v22  ;;  %v7878_v19 = vld [vmem:[%s10450_s4 + $0x174] ss:$8 sps:$4 sm:$0xff]   ;;  %v7873_v22 = vld [vmem:[%s10450_s4 + $0x280] ss:$8 sps:$4 sm:$0xff]   ;;  %v7876_v36 = vld [vmem:[%s10450_s4 + $0x170] ss:$8 sps:$4 sm:$0xff]  }
 0x397   :  { %3047 = vmatprep.subr.bf16.mxu1 %v7845_v28  ;;  %v2503_v25 = vmax.f32 %v2453_v30, %v2478_v2  ;;  %v7881_v31 = vld [vmem:[%s10450_s4 + $0x294] ss:$8 sps:$4 sm:$0xff]   ;;  %v7897_v2 = vld [vmem:[%s10450_s4 + $0x2c0] ss:$8 sps:$4 sm:$0xff]  }
 0x398   :  { %2903 = vmatpush1.bf16.msra.mxu0 %v7840_v32 }
 0x399   :  { %2904 = vmatprep.subr.bf16.mxu0 %v7848_v17  ;;  %v2943_v30 = vpack.c.bf16 %v2503_v25, %v2503_v25  ;;  %v2502_v17 = vmax.f32 %v9118_v6, %v2477_v16  ;;  %v7882_v6 = vld [vmem:[%s10450_s4 + $0x200] ss:$8 sps:$4 sm:$0xff]   ;;  %v7903_v25 = vld [vmem:[%s10450_s4 + $0x2d0] ss:$8 sps:$4 sm:$0xff]  }
 0x39a   :  { %3048 = vmatpush1.bf16.msra.mxu1 %v7843_v38  ;;  %v2347_v42 = vpop.f32.mrb[164].mxu1 }
 0x39b   :  { %v9166_v44 = vadd.f32 %v9010_v3, %v2347_v42  ;;  %v7605_v47 = vpop.f32.mrb[165].mxu1  ;;  %3049 = vmatprep.subr.bf16.mxu1 %v7851_v40  ;;  %v7860_v3 = vld [vmem:[%s10450_s4 + $0x144] ss:$8 sps:$4 sm:$0xff]   ;;  %v7890_v42 = vld [vmem:[%s10450_s4 + $0x214] ss:$8 sps:$4 sm:$0xff]  }
 0x39c   :  { %2905 = vmatpush1.bf16.msra.mxu0 %v7846_v27  ;;  %v2350_v49 = vpop.f32.mrb[166].mxu1  ;;  %v7884_v40 = vld [vmem:[%s10450_s4 + $0x204] ss:$8 sps:$4 sm:$0xff]   ;;  %v7879_v27 = vld [vmem:[%s10450_s4 + $0x290] ss:$8 sps:$4 sm:$0xff]  }
 0x39d   :  { %v9175_v53 = vadd.f32 %v9024_v35, %v2350_v49  ;;  %v7606_v55 = vpop.f32.mrb[167].mxu1  ;;  %2906 = vmatprep.subr.bf16.mxu0 %v7854_v41  ;;  %v7858_v35 = vld [vmem:[%s10450_s4 + $0x140] ss:$8 sps:$4 sm:$0xff]   ;;  %v2802_v41 = vpack.c.bf16 %v2502_v17, %v2502_v17 }
 0x39e   :  { %3050 = vmatpush1.bf16.msra.mxu1 %v7849_v43  ;;  %v7885_v47 = vld [vmem:[%s10450_s4 + $0x2a0] ss:$8 sps:$4 sm:$0xff]  }
 0x39f   :  { %3051 = vmatprep.subr.bf16.mxu1 %v7857_v48 }
 0x3a0   :  { %2907 = vmatpush1.bf16.msra.mxu0 %v7852_v52  ;;  %v7893_v52 = vld [vmem:[%s10450_s4 + $0x2b4] ss:$8 sps:$4 sm:$0xff]  }
 0x3a1   :  { %2908 = vmatprep.subr.bf16.mxu0 %v7860_v3  ;;  %v7888_v3 = vld [vmem:[%s10450_s4 + $0x210] ss:$8 sps:$4 sm:$0xff]  }
 0x3a2   :  { %3052 = vmatpush1.bf16.msra.mxu1 %v7855_v56  ;;  %v2355_v62 = vpop.f32.mrb[168].mxu1 }
 0x3a3   :  { %v9196_v4 = vadd.f32 %v9026_v39, %v2355_v62  ;;  %v7609_v1 = vpop.f32.mrb[169].mxu1  ;;  %3053 = vmatprep.subr.bf16.mxu1 %v7863_v57  ;;  %v7872_v39 = vld [vmem:[%s10450_s4 + $0x164] ss:$8 sps:$4 sm:$0xff]   ;;  %v7902_v62 = vld [vmem:[%s10450_s4 + $0x234] ss:$8 sps:$4 sm:$0xff]  }
 0x3a4   :  { %2909 = vmatpush1.bf16.msra.mxu0 %v7858_v35  ;;  %v2358_v45 = vpop.f32.mrb[170].mxu1  ;;  %v7896_v57 = vld [vmem:[%s10450_s4 + $0x224] ss:$8 sps:$4 sm:$0xff]   ;;  %v7891_v35 = vld [vmem:[%s10450_s4 + $0x2b0] ss:$8 sps:$4 sm:$0xff]  }
 0x3a5   :  { %v9205_v10 = vadd.f32 %v9058_v26, %v2358_v45  ;;  %v7610_v11 = vpop.f32.mrb[171].mxu1  ;;  %2910 = vmatprep.subr.bf16.mxu0 %v7866_v58  ;;  %v7870_v26 = vld [vmem:[%s10450_s4 + $0x160] ss:$8 sps:$4 sm:$0xff]   ;;  %v7899_v58 = vld [vmem:[%s10450_s4 + $0x2c4] ss:$8 sps:$4 sm:$0xff]  }
 0x3a6   :  { %3054 = vmatpush1.bf16.msra.mxu1 %v7861_v63  ;;  %v7905_v45 = vld [vmem:[%s10450_s4 + $0x2d4] ss:$8 sps:$4 sm:$0xff]   ;;  %v7900_v11 = vld [vmem:[%s10450_s4 + $0x230] ss:$8 sps:$4 sm:$0xff]  }
 0x3a7   :  { %3055 = vmatprep.subr.bf16.mxu1 %v7869_v7 }
 0x3a8   :  { %2911 = vmatpush1.bf16.msra.mxu0 %v7864_v21 }
 0x3a9   :  { %2912 = vmatprep.subr.bf16.mxu0 %v7872_v39 }
 0x3aa   :  { %3056 = vmatpush1.bf16.msra.mxu1 %v7867_v9  ;;  %v2363_v59 = vpop.f32.mrb[172].mxu1 }
 0x3ab   :  { %v9227_v24 = vadd.f32 %v9060_v50, %v2363_v59  ;;  %v7613_v28 = vpop.f32.mrb[173].mxu1  ;;  %3323 = vmatprep.subr.bf16.mxu1 %v7875_v15  ;;  %v7911_v15 = vld [vmem:[%s10450_s4 + $0x2e4] ss:$8 sps:$4 sm:$0xff]   ;;  %v2480_v59 = vmul.f32 0.2, %v9166_v44 }
 0x3ac   :  { %2913 = vmatpush1.bf16.msra.mxu0 %v7870_v26  ;;  %v2366_v32 = vpop.f32.mrb[174].mxu1  ;;  %v7914_v26 = vld [vmem:[%s10450_s4 + $0x254] ss:$8 sps:$4 sm:$0xff]  }
 0x3ad   :  { %v9237_v38 = vadd.f32 %v9079_v61, %v2366_v32  ;;  %3074 = vmatmul.mubr.bf16.vlgmr.msra.gmra.mrb[208].mxu1 %v2943_v30  ;;  %v7614_v50 = vpop.f32.mrb[175].mxu1  ;;  %2914 = vmatprep.subr.bf16.mxu0 %v7878_v19  ;;  %v7887_v61 = vld [vmem:[%s10450_s4 + $0x2a4] ss:$8 sps:$4 sm:$0xff]   ;;  %v7909_v19 = vld [vmem:[%s10450_s4 + $0x2e0] ss:$8 sps:$4 sm:$0xff]  }
 0x3ae   :  { %3324 = vmatpush1.bf16.msra.mxu1 %v7873_v22  ;;  %3355 = vmatprep.mubr.bf16.mxu1 %v8398_v60  ;;  %v7917_v28 = vld [vmem:[%s10450_s4 + $0x2f4] ss:$8 sps:$4 sm:$0xff]   ;;  %v7912_v32 = vld [vmem:[%s10450_s4 + $0x250] ss:$8 sps:$4 sm:$0xff]  }
 0x3af   :  { %3325 = vmatprep.subr.bf16.mxu1 %v7881_v31  ;;  %v7915_v50 = vld [vmem:[%s10450_s4 + $0x2f0] ss:$8 sps:$4 sm:$0xff]  }
 0x3b0   :  { %2915 = vmatpush1.bf16.msra.mxu0 %v7876_v36 }
 0x3b1   :  { %3182 = vmatprep.subr.bf16.mxu0 %v7884_v40  ;;  %v2505_v40 = vmax.f32 %v9166_v44, %v2480_v59  ;;  %v7921_v44 = vld [vmem:[%s10450_s4 + $0x380] ss:$8 sps:$4 sm:$0xff]  }
 0x3b2   :  { %3326 = vmatpush1.bf16.msra.mxu1 %v7879_v27  ;;  %v2371_v43 = vpop.f32.mrb[176].mxu1  ;;  %v7923_v27 = vld [vmem:[%s10450_s4 + $0x384] ss:$8 sps:$4 sm:$0xff]  }
 0x3b3   :  { %v9259_v48 = vadd.f32 %v9081_v0, %v2371_v43  ;;  %2933 = vmatmul.mubr.bf16.vlgmr.msra.gmra.mrb[204].mxu0 %v2802_v41  ;;  %v7617_v49 = vpop.f32.mrb[177].mxu1  ;;  %3327 = vmatprep.subr.bf16.mxu1 %v7887_v61  ;;  %v2479_v61 = vmul.f32 0.2, %v9145_v34 }
 0x3b4   :  { %3183 = vmatpush1.bf16.msra.mxu0 %v7882_v6  ;;  %v2374_v55 = vpop.f32.mrb[178].mxu1  ;;  %3214 = vmatprep.mubr.bf16.mxu0 %v8398_v60  ;;  %v7926_v6 = vld [vmem:[%s10450_s4 + $0x274] ss:$8 sps:$4 sm:$0xff]  }
 0x3b5   :  { %v9269_v56 = vadd.f32 %v9083_v5, %v2374_v55  ;;  %v7618_v0 = vpop.f32.mrb[179].mxu1  ;;  %3184 = vmatprep.subr.bf16.mxu0 %v7890_v42  ;;  %v7894_v5 = vld [vmem:[%s10450_s4 + $0x220] ss:$8 sps:$4 sm:$0xff]   ;;  %v3225_v42 = vpack.c.bf16 %v2505_v40, %v2505_v40  ;;  %v7929_v49 = vld [vmem:[%s10450_s4 + $0x394] ss:$8 sps:$4 sm:$0xff]  }
 0x3b6   :  { %3328 = vmatpush1.bf16.msra.mxu1 %v7885_v47  ;;  %v7924_v55 = vld [vmem:[%s10450_s4 + $0x270] ss:$8 sps:$4 sm:$0xff]   ;;  %v7962_v40 = vld [vmem:[%s10450_s4 + $0x354] ss:$8 sps:$4 sm:$0xff]  }
 0x3b7   :  { %3329 = vmatprep.subr.bf16.mxu1 %v7893_v52 }
 0x3b8   :  { %3185 = vmatpush1.bf16.msra.mxu0 %v7888_v3  ;;  %v2504_v3 = vmax.f32 %v9145_v34, %v2479_v61  ;;  %v7930_v34 = vld [vmem:[%s10450_s4 + $0x300] ss:$8 sps:$4 sm:$0xff]   ;;  %v2482_v61 = vmul.f32 0.2, %v9196_v4 }
 0x3b9   :  { %3186 = vmatprep.subr.bf16.mxu0 %v7896_v57  ;;  %v7932_v57 = vld [vmem:[%s10450_s4 + $0x304] ss:$8 sps:$4 sm:$0xff]  }
 0x3ba   :  { %3330 = vmatpush1.bf16.msra.mxu1 %v7891_v35  ;;  %v2379_v63 = vpop.f32.mrb[180].mxu1  ;;  %v7927_v35 = vld [vmem:[%s10450_s4 + $0x390] ss:$8 sps:$4 sm:$0xff]  }
 0x3bb   :  { %v9290_v1 = vadd.f32 %v9085_v8, %v2379_v63  ;;  %v7621_v7 = vpop.f32.mrb[181].mxu1  ;;  %3331 = vmatprep.subr.bf16.mxu1 %v7899_v58  ;;  %v7908_v8 = vld [vmem:[%s10450_s4 + $0x244] ss:$8 sps:$4 sm:$0xff]   ;;  %v3084_v58 = vpack.c.bf16 %v2504_v3, %v2504_v3  ;;  %v7933_v63 = vld [vmem:[%s10450_s4 + $0x3a0] ss:$8 sps:$4 sm:$0xff]  }
 0x3bc   :  { %3187 = vmatpush1.bf16.msra.mxu0 %v7894_v5  ;;  %v2382_v21 = vpop.f32.mrb[182].mxu1  ;;  %v7938_v5 = vld [vmem:[%s10450_s4 + $0x314] ss:$8 sps:$4 sm:$0xff]   ;;  %v7971_v3 = vld [vmem:[%s10450_s4 + $0x484] ss:$8 sps:$4 sm:$0xff]  }
 0x3bd   :  { %v9299_v39 = vadd.f32 %v9087_v54, %v2382_v21  ;;  %v7622_v9 = vpop.f32.mrb[183].mxu1  ;;  %3188 = vmatprep.subr.bf16.mxu0 %v7902_v62  ;;  %v7906_v54 = vld [vmem:[%s10450_s4 + $0x240] ss:$8 sps:$4 sm:$0xff]  }
 0x3be   :  { %3332 = vmatpush1.bf16.msra.mxu1 %v7897_v2 }
 0x3bf   :  { %3333 = vmatprep.subr.bf16.mxu1 %v7905_v45  ;;  %v7941_v45 = vld [vmem:[%s10450_s4 + $0x3b4] ss:$8 sps:$4 sm:$0xff]  }
 0x3c0   :  { %3189 = vmatpush1.bf16.msra.mxu0 %v7900_v11  ;;  %v7936_v11 = vld [vmem:[%s10450_s4 + $0x310] ss:$8 sps:$4 sm:$0xff]  }
 0x3c1   :  { %3190 = vmatprep.subr.bf16.mxu0 %v7908_v8  ;;  %v7944_v8 = vld [vmem:[%s10450_s4 + $0x324] ss:$8 sps:$4 sm:$0xff]  }
 0x3c2   :  { %3334 = vmatpush1.bf16.msra.mxu1 %v7903_v25  ;;  %v2387_v16 = vpop.f32.mrb[184].mxu1  ;;  %v7939_v25 = vld [vmem:[%s10450_s4 + $0x3b0] ss:$8 sps:$4 sm:$0xff]  }
 0x3c3   :  { %v9321_v22 = vadd.f32 %v9089_v14, %v2387_v16  ;;  %v7625_v30 = vpop.f32.mrb[185].mxu1  ;;  %3335 = vmatprep.subr.bf16.mxu1 %v7911_v15  ;;  %v7920_v14 = vld [vmem:[%s10450_s4 + $0x264] ss:$8 sps:$4 sm:$0xff]   ;;  %v7945_v16 = vld [vmem:[%s10450_s4 + $0x3c0] ss:$8 sps:$4 sm:$0xff]  }
 0x3c4   :  { %3191 = vmatpush1.bf16.msra.mxu0 %v7906_v54  ;;  %v2390_v31 = vpop.f32.mrb[186].mxu1  ;;  %v7947_v15 = vld [vmem:[%s10450_s4 + $0x3c4] ss:$8 sps:$4 sm:$0xff]   ;;  %v7950_v54 = vld [vmem:[%s10450_s4 + $0x334] ss:$8 sps:$4 sm:$0xff]  }
 0x3c5   :  { %v9330_v36 = vadd.f32 %v9091_v18, %v2390_v31  ;;  %v7626_v17 = vpop.f32.mrb[187].mxu1  ;;  %3192 = vmatprep.subr.bf16.mxu0 %v7914_v26  ;;  %v7918_v18 = vld [vmem:[%s10450_s4 + $0x260] ss:$8 sps:$4 sm:$0xff]   ;;  %v7953_v30 = vld [vmem:[%s10450_s4 + $0x3d4] ss:$8 sps:$4 sm:$0xff]  }
 0x3c6   :  { %3336 = vmatpush1.bf16.msra.mxu1 %v7909_v19  ;;  %v7948_v31 = vld [vmem:[%s10450_s4 + $0x330] ss:$8 sps:$4 sm:$0xff]  }
 0x3c7   :  { %3337 = vmatprep.subr.bf16.mxu1 %v7917_v28 }
 0x3c8   :  { %3193 = vmatpush1.bf16.msra.mxu0 %v7912_v32 }
 0x3c9   :  { %3194 = vmatprep.subr.bf16.mxu0 %v7920_v14  ;;  %v7951_v14 = vld [vmem:[%s10450_s4 + $0x3d0] ss:$8 sps:$4 sm:$0xff]  }
 0x3ca   :  { %3338 = vmatpush1.bf16.msra.mxu1 %v7915_v50  ;;  %v2395_v41 = vpop.f32.mrb[188].mxu1  ;;  %v7959_v50 = vld [vmem:[%s10450_s4 + $0x3e4] ss:$8 sps:$4 sm:$0xff]  }
 0x3cb   :  { %v9353_v43 = vadd.f32 %v9093_v20, %v2395_v41  ;;  %v7629_v47 = vpop.f32.mrb[189].mxu1  ;;  %3605 = vmatprep.subr.bf16.mxu1 %v7923_v27 }
 0x3cc   :  { %3195 = vmatpush1.bf16.msra.mxu0 %v7918_v18  ;;  %v2398_v52 = vpop.f32.mrb[190].mxu1  ;;  %v7957_v18 = vld [vmem:[%s10450_s4 + $0x3e0] ss:$8 sps:$4 sm:$0xff]   ;;  %v7960_v47 = vld [vmem:[%s10450_s4 + $0x350] ss:$8 sps:$4 sm:$0xff]  }
 0x3cd   :  { %v9363_v0 = vadd.f32 %v9095_v23, %v2398_v52  ;;  %3356 = vmatmul.mubr.bf16.vlgmr.msra.gmra.mrb[212].mxu1 %v3225_v42  ;;  %v7630_v20 = vpop.f32.mrb[191].mxu1  ;;  %3196 = vmatprep.subr.bf16.mxu0 %v7926_v6  ;;  %v7935_v23 = vld [vmem:[%s10450_s4 + $0x3a4] ss:$8 sps:$4 sm:$0xff]  }
 0x3ce   :  { %3606 = vmatpush1.bf16.msra.mxu1 %v7921_v44  ;;  %3637 = vmatprep.mubr.bf16.mxu1 %v8398_v60  ;;  %v7965_v44 = vld [vmem:[%s10450_s4 + $0x3f4] ss:$8 sps:$4 sm:$0xff]   ;;  %v7968_v52 = vld [vmem:[%s10450_s4 + $0x364] ss:$8 sps:$4 sm:$0xff]   ;;  %v7966_v20 = vld [vmem:[%s10450_s4 + $0x360] ss:$8 sps:$4 sm:$0xff]  }
 0x3cf   :  { %3607 = vmatprep.subr.bf16.mxu1 %v7929_v49 }
 0x3d0   :  { %3197 = vmatpush1.bf16.msra.mxu0 %v7924_v55  ;;  %v2507_v55 = vmax.f32 %v9196_v4, %v2482_v61  ;;  %v7969_v4 = vld [vmem:[%s10450_s4 + $0x480] ss:$8 sps:$4 sm:$0xff]   ;;  %v8011_v61 = vld [vmem:[%s10450_s4 + $0x4f0] ss:$8 sps:$4 sm:$0xff]  }
 0x3d1   :  { %3464 = vmatprep.subr.bf16.mxu0 %v7932_v57  ;;  %v2481_v57 = vmul.f32 0.2, %v9175_v53 }
 0x3d2   :  { %3608 = vmatpush1.bf16.msra.mxu1 %v7927_v35  ;;  %v2403_v62 = vpop.f32.mrb[192].mxu1  ;;  %v7974_v35 = vld [vmem:[%s10450_s4 + $0x374] ss:$8 sps:$4 sm:$0xff]  }
 0x3d3   :  { %v9385_v2 = vadd.f32 %v9097_v29, %v2403_v62  ;;  %3215 = vmatmul.mubr.bf16.vlgmr.msra.gmra.mrb[208].mxu0 %v3084_v58  ;;  %v7633_v7 = vpop.f32.mrb[193].mxu1  ;;  %3609 = vmatprep.subr.bf16.mxu1 %v7935_v23  ;;  %v3507_v23 = vpack.c.bf16 %v2507_v55, %v2507_v55  ;;  %v7972_v58 = vld [vmem:[%s10450_s4 + $0x370] ss:$8 sps:$4 sm:$0xff]   ;;  %v7980_v62 = vld [vmem:[%s10450_s4 + $0x404] ss:$8 sps:$4 sm:$0xff]  }
 0x3d4   :  { %3465 = vmatpush1.bf16.msra.mxu0 %v7930_v34  ;;  %v2406_v21 = vpop.f32.mrb[194].mxu1  ;;  %3496 = vmatprep.mubr.bf16.mxu0 %v8398_v60  ;;  %v7977_v34 = vld [vmem:[%s10450_s4 + $0x494] ss:$8 sps:$4 sm:$0xff]   ;;  %v7983_v7 = vld [vmem:[%s10450_s4 + $0x4a4] ss:$8 sps:$4 sm:$0xff]  }
 0x3d5   :  { %v9395_v9 = vadd.f32 %v9099_v33, %v2406_v21  ;;  %v7634_v29 = vpop.f32.mrb[195].mxu1  ;;  %3466 = vmatprep.subr.bf16.mxu0 %v7938_v5  ;;  %v7942_v33 = vld [vmem:[%s10450_s4 + $0x320] ss:$8 sps:$4 sm:$0xff]   ;;  %v2506_v5 = vmax.f32 %v9175_v53, %v2481_v57  ;;  %v7986_v21 = vld [vmem:[%s10450_s4 + $0x414] ss:$8 sps:$4 sm:$0xff]  }
 0x3d6   :  { %3610 = vmatpush1.bf16.msra.mxu1 %v7933_v63  ;;  %v7975_v63 = vld [vmem:[%s10450_s4 + $0x490] ss:$8 sps:$4 sm:$0xff]   ;;  %v7978_v53 = vld [vmem:[%s10450_s4 + $0x400] ss:$8 sps:$4 sm:$0xff]   ;;  %v7989_v29 = vld [vmem:[%s10450_s4 + $0x4b4] ss:$8 sps:$4 sm:$0xff]  }
 0x3d7   :  { %3611 = vmatprep.subr.bf16.mxu1 %v7941_v45  ;;  %v3366_v45 = vpack.c.bf16 %v2506_v5, %v2506_v5  ;;  %v8020_v55 = vld [vmem:[%s10450_s4 + $0x470] ss:$8 sps:$4 sm:$0xff]  }
 0x3d8   :  { %3467 = vmatpush1.bf16.msra.mxu0 %v7936_v11  ;;  %v7981_v11 = vld [vmem:[%s10450_s4 + $0x4a0] ss:$8 sps:$4 sm:$0xff]   ;;  %v8023_v57 = vld [vmem:[%s10450_s4 + $0x590] ss:$8 sps:$4 sm:$0xff]  }
 0x3d9   :  { %3468 = vmatprep.subr.bf16.mxu0 %v7944_v8  ;;  %v7984_v8 = vld [vmem:[%s10450_s4 + $0x410] ss:$8 sps:$4 sm:$0xff]  }
 0x3da   :  { %3612 = vmatpush1.bf16.msra.mxu1 %v7939_v25  ;;  %v2411_v26 = vpop.f32.mrb[196].mxu1  ;;  %v7992_v25 = vld [vmem:[%s10450_s4 + $0x424] ss:$8 sps:$4 sm:$0xff]   ;;  %v8032_v5 = vld [vmem:[%s10450_s4 + $0x510] ss:$8 sps:$4 sm:$0xff]  }
 0x3db   :  { %v9416_v19 = vadd.f32 %v9101_v37, %v2411_v26  ;;  %v7637_v59 = vpop.f32.mrb[197].mxu1  ;;  %3613 = vmatprep.subr.bf16.mxu1 %v7947_v15  ;;  %v7956_v37 = vld [vmem:[%s10450_s4 + $0x344] ss:$8 sps:$4 sm:$0xff]   ;;  %v7987_v15 = vld [vmem:[%s10450_s4 + $0x4b0] ss:$8 sps:$4 sm:$0xff]  }
 0x3dc   :  { %3469 = vmatpush1.bf16.msra.mxu0 %v7942_v33  ;;  %v2414_v28 = vpop.f32.mrb[198].mxu1  ;;  %v7995_v33 = vld [vmem:[%s10450_s4 + $0x4c4] ss:$8 sps:$4 sm:$0xff]   ;;  %v7998_v26 = vld [vmem:[%s10450_s4 + $0x434] ss:$8 sps:$4 sm:$0xff]  }
 0x3dd   :  { %v9425_v32 = vadd.f32 %v9103_v13, %v2414_v28  ;;  %v7638_v17 = vpop.f32.mrb[199].mxu1  ;;  %3470 = vmatprep.subr.bf16.mxu0 %v7950_v54  ;;  %v7954_v13 = vld [vmem:[%s10450_s4 + $0x340] ss:$8 sps:$4 sm:$0xff]   ;;  %v8001_v59 = vld [vmem:[%s10450_s4 + $0x4d4] ss:$8 sps:$4 sm:$0xff]  }
 0x3de   :  { %3614 = vmatpush1.bf16.msra.mxu1 %v7945_v16  ;;  %v7990_v54 = vld [vmem:[%s10450_s4 + $0x420] ss:$8 sps:$4 sm:$0xff]   ;;  %v8004_v28 = vld [vmem:[%s10450_s4 + $0x444] ss:$8 sps:$4 sm:$0xff]  }
 0x3df   :  { %3615 = vmatprep.subr.bf16.mxu1 %v7953_v30  ;;  %v7993_v16 = vld [vmem:[%s10450_s4 + $0x4c0] ss:$8 sps:$4 sm:$0xff]   ;;  %v7996_v30 = vld [vmem:[%s10450_s4 + $0x430] ss:$8 sps:$4 sm:$0xff]   ;;  %v8007_v17 = vld [vmem:[%s10450_s4 + $0x4e4] ss:$8 sps:$4 sm:$0xff]  }
 0x3e0   :  { %3471 = vmatpush1.bf16.msra.mxu0 %v7948_v31  ;;  %v7999_v31 = vld [vmem:[%s10450_s4 + $0x4d0] ss:$8 sps:$4 sm:$0xff]  }
 0x3e1   :  { %3472 = vmatprep.subr.bf16.mxu0 %v7956_v37  ;;  %v8002_v37 = vld [vmem:[%s10450_s4 + $0x440] ss:$8 sps:$4 sm:$0xff]  }
 0x3e2   :  { %3616 = vmatpush1.bf16.msra.mxu1 %v7951_v14  ;;  %v2419_v27 = vpop.f32.mrb[200].mxu1  ;;  %v8010_v14 = vld [vmem:[%s10450_s4 + $0x454] ss:$8 sps:$4 sm:$0xff]  }
 0x3e3   :  { %v9447_v6 = vadd.f32 %v9105_v51, %v2419_v27  ;;  %v7641_v41 = vpop.f32.mrb[201].mxu1  ;;  %3617 = vmatprep.subr.bf16.mxu1 %v7959_v50  ;;  %v7963_v51 = vld [vmem:[%s10450_s4 + $0x3f0] ss:$8 sps:$4 sm:$0xff]   ;;  %v8005_v50 = vld [vmem:[%s10450_s4 + $0x4e0] ss:$8 sps:$4 sm:$0xff]  }
 0x3e4   :  { %3473 = vmatpush1.bf16.msra.mxu0 %v7954_v13  ;;  %v2422_v42 = vpop.f32.mrb[202].mxu1  ;;  %v2484_v13 = vmul.f32 0.2, %v9227_v24  ;;  %v8008_v27 = vld [vmem:[%s10450_s4 + $0x450] ss:$8 sps:$4 sm:$0xff]  }
 0x3e5   :  { %v7642_v49 = vpop.f32.mrb[203].mxu1  ;;  %3474 = vmatprep.subr.bf16.mxu0 %v7962_v40  ;;  %v8013_v40 = vld [vmem:[%s10450_s4 + $0x4f4] ss:$8 sps:$4 sm:$0xff]   ;;  %v8014_v42 = vld [vmem:[%s10450_s4 + $0x460] ss:$8 sps:$4 sm:$0xff]  }
 0x3e6   :  { %3618 = vmatpush1.bf16.msra.mxu1 %v7957_v18  ;;  %v8016_v18 = vld [vmem:[%s10450_s4 + $0x464] ss:$8 sps:$4 sm:$0xff]   ;;  %v2509_v41 = vmax.f32 %v9227_v24, %v2484_v13  ;;  %v8022_v49 = vld [vmem:[%s10450_s4 + $0x474] ss:$8 sps:$4 sm:$0xff]   ;;  %v8017_v24 = vld [vmem:[%s10450_s4 + $0x580] ss:$8 sps:$4 sm:$0xff]  }
 0x3e7   :  { %3619 = vmatprep.subr.bf16.mxu1 %v7965_v44  ;;  %v8019_v44 = vld [vmem:[%s10450_s4 + $0x584] ss:$8 sps:$4 sm:$0xff]   ;;  %v8070_v13 = vld [vmem:[%s10450_s4 + $0x574] ss:$8 sps:$4 sm:$0xff]  }
 0x3e8   :  { %3475 = vmatpush1.bf16.msra.mxu0 %v7960_v47  ;;  %v2483_v47 = vmul.f32 0.2, %v9205_v10 }
 0x3e9   :  { %3476 = vmatprep.subr.bf16.mxu0 %v7968_v52  ;;  %v3789_v52 = vpack.c.bf16 %v2509_v41, %v2509_v41  ;;  %v8076_v41 = vld [vmem:[%s10450_s4 + $0x604] ss:$8 sps:$4 sm:$0xff]  }
 0x3ea   :  { %3620 = vmatpush1.bf16.msra.mxu1 %v7963_v51  ;;  %v8025_v51 = vld [vmem:[%s10450_s4 + $0x594] ss:$8 sps:$4 sm:$0xff]  }
 0x3eb   :  { %3887 = vmatprep.subr.bf16.mxu1 %v7971_v3  ;;  %v2508_v3 = vmax.f32 %v9205_v10, %v2483_v47  ;;  %v8026_v10 = vld [vmem:[%s10450_s4 + $0x500] ss:$8 sps:$4 sm:$0xff]  }
 0x3ec   :  { %3477 = vmatpush1.bf16.msra.mxu0 %v7966_v20  ;;  %v8028_v20 = vld [vmem:[%s10450_s4 + $0x504] ss:$8 sps:$4 sm:$0xff]  }
 0x3ed   :  { %3638 = vmatmul.mubr.bf16.vlgmr.msra.gmra.mrb[216].mxu1 %v3507_v23  ;;  %3478 = vmatprep.subr.bf16.mxu0 %v7974_v35  ;;  %v8031_v35 = vld [vmem:[%s10450_s4 + $0x5a4] ss:$8 sps:$4 sm:$0xff]   ;;  %v8034_v23 = vld [vmem:[%s10450_s4 + $0x514] ss:$8 sps:$4 sm:$0xff]  }
 0x3ee   :  { %3888 = vmatpush1.bf16.msra.mxu1 %v7969_v4  ;;  %3919 = vmatprep.mubr.bf16.mxu1 %v8398_v60  ;;  %v3648_v4 = vpack.c.bf16 %v2508_v3, %v2508_v3  ;;  %v8083_v3 = vld [vmem:[%s10450_s4 + $0x6b0] ss:$8 sps:$4 sm:$0xff]  }
 0x3ef   :  { %3889 = vmatprep.subr.bf16.mxu1 %v7977_v34  ;;  %v8029_v34 = vld [vmem:[%s10450_s4 + $0x5a0] ss:$8 sps:$4 sm:$0xff]  }
 0x3f0   :  { %3479 = vmatpush1.bf16.msra.mxu0 %v7972_v58  ;;  %v8037_v58 = vld [vmem:[%s10450_s4 + $0x5b4] ss:$8 sps:$4 sm:$0xff]  }
 0x3f1   :  { %3746 = vmatprep.subr.bf16.mxu0 %v7980_v62  ;;  %v8040_v62 = vld [vmem:[%s10450_s4 + $0x524] ss:$8 sps:$4 sm:$0xff]  }
 0x3f2   :  { %3890 = vmatpush1.bf16.msra.mxu1 %v7975_v63  ;;  %v8035_v63 = vld [vmem:[%s10450_s4 + $0x5b0] ss:$8 sps:$4 sm:$0xff]  }
 0x3f3   :  { %3497 = vmatmul.mubr.bf16.vlgmr.msra.gmra.mrb[212].mxu0 %v3366_v45  ;;  %3891 = vmatprep.subr.bf16.mxu1 %v7983_v7  ;;  %v8043_v7 = vld [vmem:[%s10450_s4 + $0x5c4] ss:$8 sps:$4 sm:$0xff]   ;;  %v8046_v45 = vld [vmem:[%s10450_s4 + $0x534] ss:$8 sps:$4 sm:$0xff]  }
 0x3f4   :  { %3747 = vmatpush1.bf16.msra.mxu0 %v7978_v53  ;;  %3778 = vmatprep.mubr.bf16.mxu0 %v8398_v60  ;;  %v8038_v53 = vld [vmem:[%s10450_s4 + $0x520] ss:$8 sps:$4 sm:$0xff]  }
 0x3f5   :  { %3748 = vmatprep.subr.bf16.mxu0 %v7986_v21  ;;  %v8041_v21 = vld [vmem:[%s10450_s4 + $0x5c0] ss:$8 sps:$4 sm:$0xff]  }
 0x3f6   :  { %3892 = vmatpush1.bf16.msra.mxu1 %v7981_v11  ;;  %v8049_v11 = vld [vmem:[%s10450_s4 + $0x5d4] ss:$8 sps:$4 sm:$0xff]  }
 0x3f7   :  { %3893 = vmatprep.subr.bf16.mxu1 %v7989_v29  ;;  %v8044_v29 = vld [vmem:[%s10450_s4 + $0x530] ss:$8 sps:$4 sm:$0xff]  }
 0x3f8   :  { %3749 = vmatpush1.bf16.msra.mxu0 %v7984_v8  ;;  %v8052_v8 = vld [vmem:[%s10450_s4 + $0x544] ss:$8 sps:$4 sm:$0xff]  }
 0x3f9   :  { %3750 = vmatprep.subr.bf16.mxu0 %v7992_v25  ;;  %v8047_v25 = vld [vmem:[%s10450_s4 + $0x5d0] ss:$8 sps:$4 sm:$0xff]  }
 0x3fa   :  { %3894 = vmatpush1.bf16.msra.mxu1 %v7987_v15  ;;  %v8055_v15 = vld [vmem:[%s10450_s4 + $0x5e4] ss:$8 sps:$4 sm:$0xff]  }
 0x3fb   :  { %3895 = vmatprep.subr.bf16.mxu1 %v7995_v33  ;;  %v8050_v33 = vld [vmem:[%s10450_s4 + $0x540] ss:$8 sps:$4 sm:$0xff]  }
 0x3fc   :  { %3751 = vmatpush1.bf16.msra.mxu0 %v7990_v54  ;;  %v8058_v54 = vld [vmem:[%s10450_s4 + $0x554] ss:$8 sps:$4 sm:$0xff]  }
 0x3fd   :  { %3752 = vmatprep.subr.bf16.mxu0 %v7998_v26  ;;  %v8053_v26 = vld [vmem:[%s10450_s4 + $0x5e0] ss:$8 sps:$4 sm:$0xff]  }
 0x3fe   :  { %3896 = vmatpush1.bf16.msra.mxu1 %v7993_v16  ;;  %v2486_v16 = vmul.f32 0.2, %v9259_v48 }
 0x3ff   :  { %3897 = vmatprep.subr.bf16.mxu1 %v8001_v59  ;;  %v8061_v59 = vld [vmem:[%s10450_s4 + $0x5f4] ss:$8 sps:$4 sm:$0xff]  }
 0x400   :  { %3753 = vmatpush1.bf16.msra.mxu0 %v7996_v30  ;;  %v8056_v30 = vld [vmem:[%s10450_s4 + $0x550] ss:$8 sps:$4 sm:$0xff]  }
 0x401   :  { %3754 = vmatprep.subr.bf16.mxu0 %v8004_v28  ;;  %v8064_v28 = vld [vmem:[%s10450_s4 + $0x564] ss:$8 sps:$4 sm:$0xff]  }
 0x402   :  { %3898 = vmatpush1.bf16.msra.mxu1 %v7999_v31  ;;  %v8059_v31 = vld [vmem:[%s10450_s4 + $0x5f0] ss:$8 sps:$4 sm:$0xff]  }
 0x403   :  { %3899 = vmatprep.subr.bf16.mxu1 %v8007_v17  ;;  %v2511_v17 = vmax.f32 %v9259_v48, %v2486_v16  ;;  %v8065_v48 = vld [vmem:[%s10450_s4 + $0x680] ss:$8 sps:$4 sm:$0xff]   ;;  %v8121_v16 = vld [vmem:[%s10450_s4 + $0x794] ss:$8 sps:$4 sm:$0xff]  }
 0x404   :  { %3755 = vmatpush1.bf16.msra.mxu0 %v8002_v37  ;;  %v8067_v37 = vld [vmem:[%s10450_s4 + $0x684] ss:$8 sps:$4 sm:$0xff]  }
 0x405   :  { %3756 = vmatprep.subr.bf16.mxu0 %v8010_v14  ;;  %v8062_v14 = vld [vmem:[%s10450_s4 + $0x560] ss:$8 sps:$4 sm:$0xff]  }
 0x406   :  { %3900 = vmatpush1.bf16.msra.mxu1 %v8005_v50  ;;  %v2485_v50 = vmul.f32 0.2, %v9237_v38 }
 0x407   :  { %3901 = vmatprep.subr.bf16.mxu1 %v8013_v40  ;;  %v4071_v40 = vpack.c.bf16 %v2511_v17, %v2511_v17  ;;  %v8127_v17 = vld [vmem:[%s10450_s4 + $0x7a4] ss:$8 sps:$4 sm:$0xff]  }
 0x408   :  { %3757 = vmatpush1.bf16.msra.mxu0 %v8008_v27  ;;  %v8073_v27 = vld [vmem:[%s10450_s4 + $0x694] ss:$8 sps:$4 sm:$0xff]  }
 0x409   :  { %3758 = vmatprep.subr.bf16.mxu0 %v8016_v18  ;;  %v8068_v18 = vld [vmem:[%s10450_s4 + $0x570] ss:$8 sps:$4 sm:$0xff]  }
 0x40a   :  { %3902 = vmatpush1.bf16.msra.mxu1 %v8011_v61  ;;  %v2510_v61 = vmax.f32 %v9237_v38, %v2485_v50  ;;  %v8074_v38 = vld [vmem:[%s10450_s4 + $0x600] ss:$8 sps:$4 sm:$0xff]  }
 0x40b   :  { %4169 = vmatprep.subr.bf16.mxu1 %v8019_v44  ;;  %v8071_v44 = vld [vmem:[%s10450_s4 + $0x690] ss:$8 sps:$4 sm:$0xff]   ;;  %v8125_v50 = vld [vmem:[%s10450_s4 + $0x7a0] ss:$8 sps:$4 sm:$0xff]  }
 0x40c   :  { %3759 = vmatpush1.bf16.msra.mxu0 %v8014_v42  ;;  %v8079_v42 = vld [vmem:[%s10450_s4 + $0x6a4] ss:$8 sps:$4 sm:$0xff]   ;;  %v3930_v47 = vpack.c.bf16 %v2510_v61, %v2510_v61  ;;  %v8134_v61 = vld [vmem:[%s10450_s4 + $0x720] ss:$8 sps:$4 sm:$0xff]  }
 0x40d   :  { %3920 = vmatmul.mubr.bf16.vlgmr.msra.gmra.mrb[220].mxu1 %v3789_v52  ;;  %3760 = vmatprep.subr.bf16.mxu0 %v8022_v49  ;;  %v8082_v49 = vld [vmem:[%s10450_s4 + $0x614] ss:$8 sps:$4 sm:$0xff]  }
 0x40e   :  { %4170 = vmatpush1.bf16.msra.mxu1 %v8017_v24  ;;  %4201 = vmatprep.mubr.bf16.mxu1 %v8398_v60  ;;  %v8077_v24 = vld [vmem:[%s10450_s4 + $0x6a0] ss:$8 sps:$4 sm:$0xff]   ;;  %v8085_v52 = vld [vmem:[%s10450_s4 + $0x6b4] ss:$8 sps:$4 sm:$0xff]  }
 0x40f   :  { %4171 = vmatprep.subr.bf16.mxu1 %v8025_v51  ;;  %v8080_v51 = vld [vmem:[%s10450_s4 + $0x610] ss:$8 sps:$4 sm:$0xff]  }
 0x410   :  { %3761 = vmatpush1.bf16.msra.mxu0 %v8020_v55  ;;  %v8088_v55 = vld [vmem:[%s10450_s4 + $0x624] ss:$8 sps:$4 sm:$0xff]  }
 0x411   :  { %4028 = vmatprep.subr.bf16.mxu0 %v8028_v20  ;;  %v8091_v20 = vld [vmem:[%s10450_s4 + $0x6c4] ss:$8 sps:$4 sm:$0xff]  }
 0x412   :  { %4172 = vmatpush1.bf16.msra.mxu1 %v8023_v57  ;;  %v8086_v57 = vld [vmem:[%s10450_s4 + $0x620] ss:$8 sps:$4 sm:$0xff]  }
 0x413   :  { %3779 = vmatmul.mubr.bf16.vlgmr.msra.gmra.mrb[216].mxu0 %v3648_v4  ;;  %4173 = vmatprep.subr.bf16.mxu1 %v8031_v35  ;;  %v8094_v35 = vld [vmem:[%s10450_s4 + $0x634] ss:$8 sps:$4 sm:$0xff]  }
 0x414   :  { %4029 = vmatpush1.bf16.msra.mxu0 %v8026_v10  ;;  %4060 = vmatprep.mubr.bf16.mxu0 %v8398_v60  ;;  %v8089_v10 = vld [vmem:[%s10450_s4 + $0x6c0] ss:$8 sps:$4 sm:$0xff]   ;;  %v8097_v4 = vld [vmem:[%s10450_s4 + $0x6d4] ss:$8 sps:$4 sm:$0xff]  }
 0x415   :  { %4030 = vmatprep.subr.bf16.mxu0 %v8034_v23  ;;  %v8092_v23 = vld [vmem:[%s10450_s4 + $0x630] ss:$8 sps:$4 sm:$0xff]  }
 0x416   :  { %4174 = vmatpush1.bf16.msra.mxu1 %v8029_v34  ;;  %v8100_v34 = vld [vmem:[%s10450_s4 + $0x644] ss:$8 sps:$4 sm:$0xff]  }
 0x417   :  { %4175 = vmatprep.subr.bf16.mxu1 %v8037_v58  ;;  %v8095_v58 = vld [vmem:[%s10450_s4 + $0x6d0] ss:$8 sps:$4 sm:$0xff]  }
 0x418   :  { %4031 = vmatpush1.bf16.msra.mxu0 %v8032_v5  ;;  %v8103_v5 = vld [vmem:[%s10450_s4 + $0x6e4] ss:$8 sps:$4 sm:$0xff]  }
 0x419   :  { %4032 = vmatprep.subr.bf16.mxu0 %v8040_v62  ;;  %v8098_v62 = vld [vmem:[%s10450_s4 + $0x640] ss:$8 sps:$4 sm:$0xff]  }
 0x41a   :  { %4176 = vmatpush1.bf16.msra.mxu1 %v8035_v63  ;;  %v8106_v63 = vld [vmem:[%s10450_s4 + $0x654] ss:$8 sps:$4 sm:$0xff]  }
 0x41b   :  { %4177 = vmatprep.subr.bf16.mxu1 %v8043_v7  ;;  %v8101_v7 = vld [vmem:[%s10450_s4 + $0x6e0] ss:$8 sps:$4 sm:$0xff]  }
 0x41c   :  { %4033 = vmatpush1.bf16.msra.mxu0 %v8038_v53  ;;  %v2488_v53 = vmul.f32 0.2, %v9290_v1 }
 0x41d   :  { %4034 = vmatprep.subr.bf16.mxu0 %v8046_v45  ;;  %v8109_v45 = vld [vmem:[%s10450_s4 + $0x6f4] ss:$8 sps:$4 sm:$0xff]  }
 0x41e   :  { %4178 = vmatpush1.bf16.msra.mxu1 %v8041_v21  ;;  %v8104_v21 = vld [vmem:[%s10450_s4 + $0x650] ss:$8 sps:$4 sm:$0xff]  }
 0x41f   :  { %4179 = vmatprep.subr.bf16.mxu1 %v8049_v11  ;;  %v8112_v11 = vld [vmem:[%s10450_s4 + $0x664] ss:$8 sps:$4 sm:$0xff]  }
 0x420   :  { %4035 = vmatpush1.bf16.msra.mxu0 %v8044_v29  ;;  %v8107_v29 = vld [vmem:[%s10450_s4 + $0x6f0] ss:$8 sps:$4 sm:$0xff]  }
 0x421   :  { %4036 = vmatprep.subr.bf16.mxu0 %v8052_v8  ;;  %v2513_v8 = vmax.f32 %v9290_v1, %v2488_v53  ;;  %v8113_v1 = vld [vmem:[%s10450_s4 + $0x780] ss:$8 sps:$4 sm:$0xff]   ;;  %v8163_v53 = vld [vmem:[%s10450_s4 + $0x884] ss:$8 sps:$4 sm:$0xff]  }
 0x422   :  { %4180 = vmatpush1.bf16.msra.mxu1 %v8047_v25  ;;  %v8115_v25 = vld [vmem:[%s10450_s4 + $0x784] ss:$8 sps:$4 sm:$0xff]  }
 0x423   :  { %4181 = vmatprep.subr.bf16.mxu1 %v8055_v15  ;;  %v8110_v15 = vld [vmem:[%s10450_s4 + $0x660] ss:$8 sps:$4 sm:$0xff]  }
 0x424   :  { %4037 = vmatpush1.bf16.msra.mxu0 %v8050_v33  ;;  %v2487_v33 = vmul.f32 0.2, %v9269_v56 }
 0x425   :  { %4038 = vmatprep.subr.bf16.mxu0 %v8058_v54  ;;  %v8118_v54 = vld [vmem:[%s10450_s4 + $0x674] ss:$8 sps:$4 sm:$0xff]  }
 0x426   :  { %4182 = vmatpush1.bf16.msra.mxu1 %v8053_v26  ;;  %v4353_v26 = vpack.c.bf16 %v2513_v8, %v2513_v8 }
 0x427   :  { %4183 = vmatprep.subr.bf16.mxu1 %v8061_v59  ;;  %v8116_v59 = vld [vmem:[%s10450_s4 + $0x670] ss:$8 sps:$4 sm:$0xff]  }
 0x428   :  { %4039 = vmatpush1.bf16.msra.mxu0 %v8056_v30  ;;  %v2512_v30 = vmax.f32 %v9269_v56, %v2487_v33  ;;  %v8122_v56 = vld [vmem:[%s10450_s4 + $0x700] ss:$8 sps:$4 sm:$0xff]   ;;  %v8169_v33 = vld [vmem:[%s10450_s4 + $0x894] ss:$8 sps:$4 sm:$0xff]  }
 0x429   :  { %4040 = vmatprep.subr.bf16.mxu0 %v8064_v28  ;;  %v8124_v28 = vld [vmem:[%s10450_s4 + $0x704] ss:$8 sps:$4 sm:$0xff]  }
 0x42a   :  { %4184 = vmatpush1.bf16.msra.mxu1 %v8059_v31  ;;  %v8119_v31 = vld [vmem:[%s10450_s4 + $0x790] ss:$8 sps:$4 sm:$0xff]  }
 0x42b   :  { %4451 = vmatprep.subr.bf16.mxu1 %v8067_v37  ;;  %v4212_v37 = vpack.c.bf16 %v2512_v30, %v2512_v30 }
 0x42c   :  { %4041 = vmatpush1.bf16.msra.mxu0 %v8062_v14  ;;  %v8130_v14 = vld [vmem:[%s10450_s4 + $0x714] ss:$8 sps:$4 sm:$0xff]  }
 0x42d   :  { %4202 = vmatmul.mubr.bf16.vlgmr.msra.gmra.mrb[224].mxu1 %v4071_v40  ;;  %4042 = vmatprep.subr.bf16.mxu0 %v8070_v13  ;;  %v8133_v13 = vld [vmem:[%s10450_s4 + $0x7b4] ss:$8 sps:$4 sm:$0xff]   ;;  %v8136_v40 = vld [vmem:[%s10450_s4 + $0x724] ss:$8 sps:$4 sm:$0xff]  }
 0x42e   :  { %4452 = vmatpush1.bf16.msra.mxu1 %v8065_v48  ;;  %4483 = vmatprep.mubr.bf16.mxu1 %v8398_v60  ;;  %v8128_v48 = vld [vmem:[%s10450_s4 + $0x710] ss:$8 sps:$4 sm:$0xff]  }
 0x42f   :  { %4453 = vmatprep.subr.bf16.mxu1 %v8073_v27  ;;  %v8131_v27 = vld [vmem:[%s10450_s4 + $0x7b0] ss:$8 sps:$4 sm:$0xff]  }
 0x430   :  { %4043 = vmatpush1.bf16.msra.mxu0 %v8068_v18  ;;  %v8139_v18 = vld [vmem:[%s10450_s4 + $0x7c4] ss:$8 sps:$4 sm:$0xff]  }
 0x431   :  { %4310 = vmatprep.subr.bf16.mxu0 %v8076_v41  ;;  %v8142_v41 = vld [vmem:[%s10450_s4 + $0x734] ss:$8 sps:$4 sm:$0xff]  }
 0x432   :  { %4454 = vmatpush1.bf16.msra.mxu1 %v8071_v44  ;;  %v8137_v44 = vld [vmem:[%s10450_s4 + $0x7c0] ss:$8 sps:$4 sm:$0xff]  }
 0x433   :  { %4061 = vmatmul.mubr.bf16.vlgmr.msra.gmra.mrb[220].mxu0 %v3930_v47  ;;  %4455 = vmatprep.subr.bf16.mxu1 %v8079_v42  ;;  %v8145_v42 = vld [vmem:[%s10450_s4 + $0x7d4] ss:$8 sps:$4 sm:$0xff]   ;;  %v8148_v47 = vld [vmem:[%s10450_s4 + $0x744] ss:$8 sps:$4 sm:$0xff]  }
 0x434   :  { %4311 = vmatpush1.bf16.msra.mxu0 %v8074_v38  ;;  %4342 = vmatprep.mubr.bf16.mxu0 %v8398_v60  ;;  %v8140_v38 = vld [vmem:[%s10450_s4 + $0x730] ss:$8 sps:$4 sm:$0xff]  }
 0x435   :  { %4312 = vmatprep.subr.bf16.mxu0 %v8082_v49  ;;  %v8143_v49 = vld [vmem:[%s10450_s4 + $0x7d0] ss:$8 sps:$4 sm:$0xff]  }
 0x436   :  { %4456 = vmatpush1.bf16.msra.mxu1 %v8077_v24  ;;  %v8151_v24 = vld [vmem:[%s10450_s4 + $0x7e4] ss:$8 sps:$4 sm:$0xff]  }
 0x437   :  { %4457 = vmatprep.subr.bf16.mxu1 %v8085_v52 }
 0x438   :  { %4313 = vmatpush1.bf16.msra.mxu0 %v8080_v51  ;;  %v8146_v51 = vld [vmem:[%s10450_s4 + $0x740] ss:$8 sps:$4 sm:$0xff]  }
 0x439   :  { %4314 = vmatprep.subr.bf16.mxu0 %v8088_v55 }
 0x43a   :  { %4458 = vmatpush1.bf16.msra.mxu1 %v8083_v3  ;;  %v8154_v3 = vld [vmem:[%s10450_s4 + $0x754] ss:$8 sps:$4 sm:$0xff]  }
 0x43b   :  { %4459 = vmatprep.subr.bf16.mxu1 %v8091_v20 }
 0x43c   :  { %4315 = vmatpush1.bf16.msra.mxu0 %v8086_v57  ;;  %v8149_v57 = vld [vmem:[%s10450_s4 + $0x7e0] ss:$8 sps:$4 sm:$0xff]  }
 0x43d   :  { %4316 = vmatprep.subr.bf16.mxu0 %v8094_v35  ;;  %v2490_v35 = vmul.f32 0.2, %v9321_v22 }
 0x43e   :  { %4460 = vmatpush1.bf16.msra.mxu1 %v8089_v10 }
 0x43f   :  { %4461 = vmatprep.subr.bf16.mxu1 %v8097_v4  ;;  %v8157_v4 = vld [vmem:[%s10450_s4 + $0x7f4] ss:$8 sps:$4 sm:$0xff]  }
 0x440   :  { %4317 = vmatpush1.bf16.msra.mxu0 %v8092_v23  ;;  %v8152_v23 = vld [vmem:[%s10450_s4 + $0x750] ss:$8 sps:$4 sm:$0xff]  }
 0x441   :  { %4318 = vmatprep.subr.bf16.mxu0 %v8100_v34  ;;  %v8160_v34 = vld [vmem:[%s10450_s4 + $0x764] ss:$8 sps:$4 sm:$0xff]  }
 0x442   :  { %4462 = vmatpush1.bf16.msra.mxu1 %v8095_v58 }
 0x443   :  { %4463 = vmatprep.subr.bf16.mxu1 %v8103_v5  ;;  %v8155_v5 = vld [vmem:[%s10450_s4 + $0x7f0] ss:$8 sps:$4 sm:$0xff]  }
 0x444   :  { %4319 = vmatpush1.bf16.msra.mxu0 %v8098_v62  ;;  %v2515_v62 = vmax.f32 %v9321_v22, %v2490_v35  ;;  %v8166_v22 = vld [vmem:[%s10450_s4 + $0x774] ss:$8 sps:$4 sm:$0xff]  }
 0x445   :  { %4320 = vmatprep.subr.bf16.mxu0 %v8106_v63 }
 0x446   :  { %4464 = vmatpush1.bf16.msra.mxu1 %v8101_v7 }
 0x447   :  { %4465 = vmatprep.subr.bf16.mxu1 %v8109_v45 }
 0x448   :  { %4321 = vmatpush1.bf16.msra.mxu0 %v8104_v21 }
 0x449   :  { %4322 = vmatprep.subr.bf16.mxu0 %v8112_v11  ;;  %v8158_v11 = vld [vmem:[%s10450_s4 + $0x760] ss:$8 sps:$4 sm:$0xff]  }
 0x44a   :  { %4466 = vmatpush1.bf16.msra.mxu1 %v8107_v29  ;;  %v2489_v29 = vmul.f32 0.2, %v9299_v39 }
 0x44b   :  { %4733 = vmatprep.subr.bf16.mxu1 %v8115_v25  ;;  %v8161_v25 = vld [vmem:[%s10450_s4 + $0x880] ss:$8 sps:$4 sm:$0xff]  }
 0x44c   :  { %4323 = vmatpush1.bf16.msra.mxu0 %v8110_v15  ;;  %v4635_v15 = vpack.c.bf16 %v2515_v62, %v2515_v62 }
 0x44d   :  { %4484 = vmatmul.mubr.bf16.vlgmr.msra.gmra.mrb[228].mxu1 %v4353_v26  ;;  %4324 = vmatprep.subr.bf16.mxu0 %v8118_v54  ;;  %v8164_v54 = vld [vmem:[%s10450_s4 + $0x770] ss:$8 sps:$4 sm:$0xff]   ;;  %v8172_v26 = vld [vmem:[%s10450_s4 + $0x804] ss:$8 sps:$4 sm:$0xff]  }
 0x44e   :  { %4734 = vmatpush1.bf16.msra.mxu1 %v8113_v1  ;;  %4765 = vmatprep.mubr.bf16.mxu1 %v8398_v60  ;;  %v2514_v1 = vmax.f32 %v9299_v39, %v2489_v29  ;;  %v8170_v39 = vld [vmem:[%s10450_s4 + $0x800] ss:$8 sps:$4 sm:$0xff]  }
 0x44f   :  { %4735 = vmatprep.subr.bf16.mxu1 %v8121_v16  ;;  %v8167_v16 = vld [vmem:[%s10450_s4 + $0x890] ss:$8 sps:$4 sm:$0xff]  }
 0x450   :  { %4325 = vmatpush1.bf16.msra.mxu0 %v8116_v59  ;;  %v8175_v59 = vld [vmem:[%s10450_s4 + $0x8a4] ss:$8 sps:$4 sm:$0xff]   ;;  %v4494_v30 = vpack.c.bf16 %v2514_v1, %v2514_v1 }
 0x451   :  { %4592 = vmatprep.subr.bf16.mxu0 %v8124_v28  ;;  %v8178_v28 = vld [vmem:[%s10450_s4 + $0x814] ss:$8 sps:$4 sm:$0xff]  }
 0x452   :  { %4736 = vmatpush1.bf16.msra.mxu1 %v8119_v31  ;;  %v8173_v31 = vld [vmem:[%s10450_s4 + $0x8a0] ss:$8 sps:$4 sm:$0xff]  }
 0x453   :  { %4343 = vmatmul.mubr.bf16.vlgmr.msra.gmra.mrb[224].mxu0 %v4212_v37  ;;  %4737 = vmatprep.subr.bf16.mxu1 %v8127_v17  ;;  %v8181_v17 = vld [vmem:[%s10450_s4 + $0x8b4] ss:$8 sps:$4 sm:$0xff]   ;;  %v8184_v37 = vld [vmem:[%s10450_s4 + $0x824] ss:$8 sps:$4 sm:$0xff]  }
 0x454   :  { %4593 = vmatpush1.bf16.msra.mxu0 %v8122_v56  ;;  %4624 = vmatprep.mubr.bf16.mxu0 %v8398_v60  ;;  %v8176_v56 = vld [vmem:[%s10450_s4 + $0x810] ss:$8 sps:$4 sm:$0xff]  }
 0x455   :  { %4594 = vmatprep.subr.bf16.mxu0 %v8130_v14  ;;  %v8179_v14 = vld [vmem:[%s10450_s4 + $0x8b0] ss:$8 sps:$4 sm:$0xff]  }
 0x456   :  { %4738 = vmatpush1.bf16.msra.mxu1 %v8125_v50  ;;  %v8187_v50 = vld [vmem:[%s10450_s4 + $0x8c4] ss:$8 sps:$4 sm:$0xff]  }
 0x457   :  { %4739 = vmatprep.subr.bf16.mxu1 %v8133_v13  ;;  %v8182_v13 = vld [vmem:[%s10450_s4 + $0x820] ss:$8 sps:$4 sm:$0xff]  }
 0x458   :  { %4595 = vmatpush1.bf16.msra.mxu0 %v8128_v48  ;;  %v8190_v48 = vld [vmem:[%s10450_s4 + $0x834] ss:$8 sps:$4 sm:$0xff]  }
 0x459   :  { %4596 = vmatprep.subr.bf16.mxu0 %v8136_v40  ;;  %v8185_v40 = vld [vmem:[%s10450_s4 + $0x8c0] ss:$8 sps:$4 sm:$0xff]  }
 0x45a   :  { %4740 = vmatpush1.bf16.msra.mxu1 %v8131_v27  ;;  %v8193_v27 = vld [vmem:[%s10450_s4 + $0x8d4] ss:$8 sps:$4 sm:$0xff]  }
 0x45b   :  { %4741 = vmatprep.subr.bf16.mxu1 %v8139_v18  ;;  %v8188_v18 = vld [vmem:[%s10450_s4 + $0x830] ss:$8 sps:$4 sm:$0xff]  }
 0x45c   :  { %4597 = vmatpush1.bf16.msra.mxu0 %v8134_v61  ;;  %v8196_v61 = vld [vmem:[%s10450_s4 + $0x844] ss:$8 sps:$4 sm:$0xff]  }
 0x45d   :  { %4598 = vmatprep.subr.bf16.mxu0 %v8142_v41  ;;  %v8191_v41 = vld [vmem:[%s10450_s4 + $0x8d0] ss:$8 sps:$4 sm:$0xff]  }
 0x45e   :  { %4742 = vmatpush1.bf16.msra.mxu1 %v8137_v44  ;;  %v8199_v44 = vld [vmem:[%s10450_s4 + $0x8e4] ss:$8 sps:$4 sm:$0xff]  }
 0x45f   :  { %4743 = vmatprep.subr.bf16.mxu1 %v8145_v42 }
 0x460   :  { %4599 = vmatpush1.bf16.msra.mxu0 %v8140_v38  ;;  %v2795_v52 = vpop.f32.mrb[204].mxu1  ;;  %v8194_v38 = vld [vmem:[%s10450_s4 + $0x840] ss:$8 sps:$4 sm:$0xff]  }
 0x461   :  { %v2797_v55 = vpop.f32.mrb[205].mxu1  ;;  %4600 = vmatprep.subr.bf16.mxu0 %v8148_v47 }
 0x462   :  { %4744 = vmatpush1.bf16.msra.mxu1 %v8143_v49  ;;  %v2799_v20 = vpop.f32.mrb[206].mxu1  ;;  %v8202_v49 = vld [vmem:[%s10450_s4 + $0x854] ss:$8 sps:$4 sm:$0xff]  }
 0x463   :  { %v2800_v10 = vpop.f32.mrb[207].mxu1  ;;  %4745 = vmatprep.subr.bf16.mxu1 %v8151_v24  ;;  %v8200_v20 = vld [vmem:[%s10450_s4 + $0x850] ss:$8 sps:$4 sm:$0xff]  }
 0x464   :  { %4601 = vmatpush1.bf16.msra.mxu0 %v8146_v51  ;;  %v2492_v51 = vmul.f32 0.2, %v9353_v43  ;;  %v8203_v10 = vld [vmem:[%s10450_s4 + $0x8f0] ss:$8 sps:$4 sm:$0xff]  }
 0x465   :  { %4602 = vmatprep.subr.bf16.mxu0 %v8154_v3  ;;  %v8205_v3 = vld [vmem:[%s10450_s4 + $0x8f4] ss:$8 sps:$4 sm:$0xff]  }
 0x466   :  { %4746 = vmatpush1.bf16.msra.mxu1 %v8149_v57  ;;  %v2674_v58 = vpop.f32.mrb[200].mxu0  ;;  %v8208_v57 = vld [vmem:[%s10450_s4 + $0x864] ss:$8 sps:$4 sm:$0xff]  }
 0x467   :  { %v9870_v63 = vadd.f32 %v2795_v52, %v2674_v58  ;;  %v2676_v7 = vpop.f32.mrb[201].mxu0  ;;  %4747 = vmatprep.subr.bf16.mxu1 %v8157_v4  ;;  %v8197_v52 = vld [vmem:[%s10450_s4 + $0x8e0] ss:$8 sps:$4 sm:$0xff]   ;;  %v2517_v4 = vmax.f32 %v9353_v43, %v2492_v51  ;;  %v8211_v58 = vld [vmem:[%s10450_s4 + $0x984] ss:$8 sps:$4 sm:$0xff]  }
 0x468   :  { %v9875_v45 = vadd.f32 %v2797_v55, %v2676_v7  ;;  %4603 = vmatpush1.bf16.msra.mxu0 %v8152_v23  ;;  %v2678_v21 = vpop.f32.mrb[202].mxu0  ;;  %v8206_v7 = vld [vmem:[%s10450_s4 + $0x860] ss:$8 sps:$4 sm:$0xff]   ;;  %v8214_v43 = vld [vmem:[%s10450_s4 + $0x874] ss:$8 sps:$4 sm:$0xff]  }
 0x469   :  { %v2679_v8 = vpop.f32.mrb[203].mxu0  ;;  %4604 = vmatprep.subr.bf16.mxu0 %v8160_v34  ;;  %v4917_v29 = vpack.c.bf16 %v2517_v4, %v2517_v4 }
 0x46a   :  { %4748 = vmatpush1.bf16.msra.mxu1 %v8155_v5  ;;  %v8217_v8 = vld [vmem:[%s10450_s4 + $0x994] ss:$8 sps:$4 sm:$0xff]  }
 0x46b   :  { %5015 = vmatprep.subr.bf16.mxu1 %v8163_v53  ;;  %v2491_v53 = vmul.f32 0.2, %v9330_v36 }
 0x46c   :  { %4605 = vmatpush1.bf16.msra.mxu0 %v8158_v11 }
 0x46d   :  { %4766 = vmatmul.mubr.bf16.vlgmr.msra.gmra.mrb[232].mxu1 %v4635_v15  ;;  %4606 = vmatprep.subr.bf16.mxu0 %v8166_v22  ;;  %v8212_v22 = vld [vmem:[%s10450_s4 + $0x870] ss:$8 sps:$4 sm:$0xff]   ;;  %v8220_v15 = vld [vmem:[%s10450_s4 + $0x904] ss:$8 sps:$4 sm:$0xff]  }
 0x46e   :  { %5016 = vmatpush1.bf16.msra.mxu1 %v8161_v25  ;;  %5047 = vmatprep.mubr.bf16.mxu1 %v8398_v60  ;;  %v2516_v25 = vmax.f32 %v9330_v36, %v2491_v53  ;;  %v8218_v36 = vld [vmem:[%s10450_s4 + $0x900] ss:$8 sps:$4 sm:$0xff]  }
 0x46f   :  { %5017 = vmatprep.subr.bf16.mxu1 %v8169_v33  ;;  %v8215_v33 = vld [vmem:[%s10450_s4 + $0x990] ss:$8 sps:$4 sm:$0xff]  }
 0x470   :  { %4607 = vmatpush1.bf16.msra.mxu0 %v8164_v54  ;;  %v8223_v54 = vld [vmem:[%s10450_s4 + $0x9a4] ss:$8 sps:$4 sm:$0xff]   ;;  %v4776_v1 = vpack.c.bf16 %v2516_v25, %v2516_v25  ;;  %v8269_v25 = vld [vmem:[%s10450_s4 + $0xaa0] ss:$8 sps:$4 sm:$0xff]  }
 0x471   :  { %4874 = vmatprep.subr.bf16.mxu0 %v8172_v26  ;;  %v8226_v26 = vld [vmem:[%s10450_s4 + $0x914] ss:$8 sps:$4 sm:$0xff]  }
 0x472   :  { %5018 = vmatpush1.bf16.msra.mxu1 %v8167_v16  ;;  %v8221_v16 = vld [vmem:[%s10450_s4 + $0x9a0] ss:$8 sps:$4 sm:$0xff]  }
 0x473   :  { %4625 = vmatmul.mubr.bf16.vlgmr.msra.gmra.mrb[228].mxu0 %v4494_v30  ;;  %5019 = vmatprep.subr.bf16.mxu1 %v8175_v59  ;;  %v8229_v59 = vld [vmem:[%s10450_s4 + $0x9b4] ss:$8 sps:$4 sm:$0xff]   ;;  %v8232_v30 = vld [vmem:[%s10450_s4 + $0x924] ss:$8 sps:$4 sm:$0xff]  }
 0x474   :  { %4875 = vmatpush1.bf16.msra.mxu0 %v8170_v39  ;;  %4906 = vmatprep.mubr.bf16.mxu0 %v8398_v60  ;;  %v8224_v39 = vld [vmem:[%s10450_s4 + $0x910] ss:$8 sps:$4 sm:$0xff]  }
 0x475   :  { %4876 = vmatprep.subr.bf16.mxu0 %v8178_v28  ;;  %v8227_v28 = vld [vmem:[%s10450_s4 + $0x9b0] ss:$8 sps:$4 sm:$0xff]  }
 0x476   :  { %5020 = vmatpush1.bf16.msra.mxu1 %v8173_v31  ;;  %v8235_v31 = vld [vmem:[%s10450_s4 + $0x9c4] ss:$8 sps:$4 sm:$0xff]  }
 0x477   :  { %5021 = vmatprep.subr.bf16.mxu1 %v8181_v17  ;;  %v8230_v17 = vld [vmem:[%s10450_s4 + $0x920] ss:$8 sps:$4 sm:$0xff]  }
 0x478   :  { %4877 = vmatpush1.bf16.msra.mxu0 %v8176_v56  ;;  %v8238_v56 = vld [vmem:[%s10450_s4 + $0x934] ss:$8 sps:$4 sm:$0xff]  }
 0x479   :  { %4878 = vmatprep.subr.bf16.mxu0 %v8184_v37  ;;  %v8233_v37 = vld [vmem:[%s10450_s4 + $0x9c0] ss:$8 sps:$4 sm:$0xff]  }
 0x47a   :  { %5022 = vmatpush1.bf16.msra.mxu1 %v8179_v14  ;;  %v8241_v14 = vld [vmem:[%s10450_s4 + $0x9d4] ss:$8 sps:$4 sm:$0xff]  }
 0x47b   :  { %5023 = vmatprep.subr.bf16.mxu1 %v8187_v50  ;;  %v8236_v50 = vld [vmem:[%s10450_s4 + $0x930] ss:$8 sps:$4 sm:$0xff]  }
 0x47c   :  { %4879 = vmatpush1.bf16.msra.mxu0 %v8182_v13  ;;  %v8244_v13 = vld [vmem:[%s10450_s4 + $0x944] ss:$8 sps:$4 sm:$0xff]  }
 0x47d   :  { %4880 = vmatprep.subr.bf16.mxu0 %v8190_v48  ;;  %v8239_v48 = vld [vmem:[%s10450_s4 + $0x9d0] ss:$8 sps:$4 sm:$0xff]  }
 0x47e   :  { %5024 = vmatpush1.bf16.msra.mxu1 %v8185_v40  ;;  %v8247_v40 = vld [vmem:[%s10450_s4 + $0x9e4] ss:$8 sps:$4 sm:$0xff]  }
 0x47f   :  { %5025 = vmatprep.subr.bf16.mxu1 %v8193_v27 }
 0x480   :  { %v3075_v42 = vpop.f32.mrb[208].mxu1  ;;  %4881 = vmatpush1.bf16.msra.mxu0 %v8188_v18  ;;  %v8242_v18 = vld [vmem:[%s10450_s4 + $0x940] ss:$8 sps:$4 sm:$0xff]  }
 0x481   :  { %v3077_v47 = vpop.f32.mrb[209].mxu1  ;;  %4882 = vmatprep.subr.bf16.mxu0 %v8196_v61 }
 0x482   :  { %v3079_v24 = vpop.f32.mrb[210].mxu1  ;;  %5026 = vmatpush1.bf16.msra.mxu1 %v8191_v41  ;;  %v8250_v41 = vld [vmem:[%s10450_s4 + $0x954] ss:$8 sps:$4 sm:$0xff]  }
 0x483   :  { %v3080_v55 = vpop.f32.mrb[211].mxu1  ;;  %5027 = vmatprep.subr.bf16.mxu1 %v8199_v44  ;;  %v8248_v24 = vld [vmem:[%s10450_s4 + $0x950] ss:$8 sps:$4 sm:$0xff]  }
 0x484   :  { %4883 = vmatpush1.bf16.msra.mxu0 %v8194_v38  ;;  %v2494_v38 = vmul.f32 0.2, %v9385_v2  ;;  %v8251_v55 = vld [vmem:[%s10450_s4 + $0x9f0] ss:$8 sps:$4 sm:$0xff]  }
 0x485   :  { %4884 = vmatprep.subr.bf16.mxu0 %v8202_v49  ;;  %v8253_v49 = vld [vmem:[%s10450_s4 + $0x9f4] ss:$8 sps:$4 sm:$0xff]  }
 0x486   :  { %v2934_v35 = vpop.f32.mrb[204].mxu0  ;;  %5028 = vmatpush1.bf16.msra.mxu1 %v8197_v52  ;;  %v8256_v52 = vld [vmem:[%s10450_s4 + $0x964] ss:$8 sps:$4 sm:$0xff]  }
 0x487   :  { %v2941_v23 = vadd.f32 %v2934_v35, %v9870_v63  ;;  %v2936_v34 = vpop.f32.mrb[205].mxu0  ;;  %5029 = vmatprep.subr.bf16.mxu1 %v8205_v3  ;;  %v2519_v3 = vmax.f32 %v9385_v2, %v2494_v38  ;;  %v8259_v35 = vld [vmem:[%s10450_s4 + $0xa84] ss:$8 sps:$4 sm:$0xff]   ;;  %v8262_v2 = vld [vmem:[%s10450_s4 + $0x974] ss:$8 sps:$4 sm:$0xff]  }
 0x488   :  { %v2942_v5 = vadd.f32 %v2936_v34, %v9875_v45  ;;  %v2938_v62 = vpop.f32.mrb[206].mxu0  ;;  %4885 = vmatpush1.bf16.msra.mxu0 %v8200_v20  ;;  %v8209_v45 = vld [vmem:[%s10450_s4 + $0x980] ss:$8 sps:$4 sm:$0xff]   ;;  %v2493_v34 = vmul.f32 0.2, %v9363_v0 }
 0x489   :  { %v2939_v21 = vpop.f32.mrb[207].mxu0  ;;  %4886 = vmatprep.subr.bf16.mxu0 %v8208_v57  ;;  %v9988_v63 = vadd.f32 %v3075_v42, %v2941_v23  ;;  %v8245_v42 = vld [vmem:[%s10450_s4 + $0x9e0] ss:$8 sps:$4 sm:$0xff]   ;;  %v5199_v53 = vpack.c.bf16 %v2519_v3, %v2519_v3  ;;  %v2495_v3 = vmul.f32 0.2, %v9395_v9 }
 0x48a   :  { %5030 = vmatpush1.bf16.msra.mxu1 %v8203_v10  ;;  %v9993_v11 = vadd.f32 %v3077_v47, %v2942_v5  ;;  %v8254_v23 = vld [vmem:[%s10450_s4 + $0x960] ss:$8 sps:$4 sm:$0xff]   ;;  %v8265_v21 = vld [vmem:[%s10450_s4 + $0xa94] ss:$8 sps:$4 sm:$0xff]  }
 0x48b   :  { %5297 = vmatprep.subr.bf16.mxu1 %v8211_v58  ;;  %v8257_v62 = vld [vmem:[%s10450_s4 + $0xa80] ss:$8 sps:$4 sm:$0xff]  }
 0x48c   :  { %4887 = vmatpush1.bf16.msra.mxu0 %v8206_v7 }
 0x48d   :  { %5048 = vmatmul.mubr.bf16.vlgmr.msra.gmra.mrb[236].mxu1 %v4917_v29  ;;  %4888 = vmatprep.subr.bf16.mxu0 %v8214_v43  ;;  %v8260_v43 = vld [vmem:[%s10450_s4 + $0x970] ss:$8 sps:$4 sm:$0xff]   ;;  %v8271_v29 = vld [vmem:[%s10450_s4 + $0xaa4] ss:$8 sps:$4 sm:$0xff]  }
 0x48e   :  { %5298 = vmatpush1.bf16.msra.mxu1 %v8209_v45  ;;  %5329 = vmatprep.mubr.bf16.mxu1 %v8398_v60  ;;  %v8268_v45 = vld [vmem:[%s10450_s4 + $0xa04] ss:$8 sps:$4 sm:$0xff]  }
 0x48f   :  { %5299 = vmatprep.subr.bf16.mxu1 %v8217_v8 }
 0x490   :  { %4889 = vmatpush1.bf16.msra.mxu0 %v8212_v22  ;;  %v8274_v22 = vld [vmem:[%s10450_s4 + $0xa14] ss:$8 sps:$4 sm:$0xff]  }
 0x491   :  { %5156 = vmatprep.subr.bf16.mxu0 %v8220_v15  ;;  %v8277_v15 = vld [vmem:[%s10450_s4 + $0xab4] ss:$8 sps:$4 sm:$0xff]  }
 0x492   :  { %5300 = vmatpush1.bf16.msra.mxu1 %v8215_v33  ;;  %v8272_v33 = vld [vmem:[%s10450_s4 + $0xa10] ss:$8 sps:$4 sm:$0xff]  }
 0x493   :  { %4907 = vmatmul.mubr.bf16.vlgmr.msra.gmra.mrb[232].mxu0 %v4776_v1  ;;  %5301 = vmatprep.subr.bf16.mxu1 %v8223_v54  ;;  %v8280_v54 = vld [vmem:[%s10450_s4 + $0xa24] ss:$8 sps:$4 sm:$0xff]  }
 0x494   :  { %5157 = vmatpush1.bf16.msra.mxu0 %v8218_v36  ;;  %5188 = vmatprep.mubr.bf16.mxu0 %v8398_v60  ;;  %v8275_v36 = vld [vmem:[%s10450_s4 + $0xab0] ss:$8 sps:$4 sm:$0xff]   ;;  %v8283_v1 = vld [vmem:[%s10450_s4 + $0xac4] ss:$8 sps:$4 sm:$0xff]  }
 0x495   :  { %5158 = vmatprep.subr.bf16.mxu0 %v8226_v26  ;;  %v8278_v26 = vld [vmem:[%s10450_s4 + $0xa20] ss:$8 sps:$4 sm:$0xff]  }
 0x496   :  { %5302 = vmatpush1.bf16.msra.mxu1 %v8221_v16  ;;  %v8286_v16 = vld [vmem:[%s10450_s4 + $0xa34] ss:$8 sps:$4 sm:$0xff]  }
 0x497   :  { %5303 = vmatprep.subr.bf16.mxu1 %v8229_v59  ;;  %v8281_v59 = vld [vmem:[%s10450_s4 + $0xac0] ss:$8 sps:$4 sm:$0xff]  }
 0x498   :  { %5159 = vmatpush1.bf16.msra.mxu0 %v8224_v39  ;;  %v8289_v39 = vld [vmem:[%s10450_s4 + $0xad4] ss:$8 sps:$4 sm:$0xff]  }
 0x499   :  { %5160 = vmatprep.subr.bf16.mxu0 %v8232_v30  ;;  %v8284_v30 = vld [vmem:[%s10450_s4 + $0xa30] ss:$8 sps:$4 sm:$0xff]  }
 0x49a   :  { %5304 = vmatpush1.bf16.msra.mxu1 %v8227_v28  ;;  %v8292_v28 = vld [vmem:[%s10450_s4 + $0xa44] ss:$8 sps:$4 sm:$0xff]  }
 0x49b   :  { %5305 = vmatprep.subr.bf16.mxu1 %v8235_v31  ;;  %v8287_v31 = vld [vmem:[%s10450_s4 + $0xad0] ss:$8 sps:$4 sm:$0xff]  }
 0x49c   :  { %5161 = vmatpush1.bf16.msra.mxu0 %v8230_v17  ;;  %v8295_v17 = vld [vmem:[%s10450_s4 + $0xae4] ss:$8 sps:$4 sm:$0xff]  }
 0x49d   :  { %5162 = vmatprep.subr.bf16.mxu0 %v8238_v56 }
 0x49e   :  { %5306 = vmatpush1.bf16.msra.mxu1 %v8233_v37  ;;  %v8290_v37 = vld [vmem:[%s10450_s4 + $0xa40] ss:$8 sps:$4 sm:$0xff]  }
 0x49f   :  { %5307 = vmatprep.subr.bf16.mxu1 %v8241_v14 }
 0x4a0   :  { %v3357_v27 = vpop.f32.mrb[212].mxu1  ;;  %5163 = vmatpush1.bf16.msra.mxu0 %v8236_v50  ;;  %v8298_v50 = vld [vmem:[%s10450_s4 + $0xa54] ss:$8 sps:$4 sm:$0xff]  }
 0x4a1   :  { %v3359_v61 = vpop.f32.mrb[213].mxu1  ;;  %5164 = vmatprep.subr.bf16.mxu0 %v8244_v13 }
 0x4a2   :  { %v3361_v44 = vpop.f32.mrb[214].mxu1  ;;  %5308 = vmatpush1.bf16.msra.mxu1 %v8239_v48  ;;  %v8293_v48 = vld [vmem:[%s10450_s4 + $0xae0] ss:$8 sps:$4 sm:$0xff]  }
 0x4a3   :  { %v3362_v47 = vpop.f32.mrb[215].mxu1  ;;  %5309 = vmatprep.subr.bf16.mxu1 %v8247_v40  ;;  %v2496_v40 = vmul.f32 0.2, %v9416_v19 }
 0x4a4   :  { %5165 = vmatpush1.bf16.msra.mxu0 %v8242_v18  ;;  %v8301_v18 = vld [vmem:[%s10450_s4 + $0xaf4] ss:$8 sps:$4 sm:$0xff]  }
 0x4a5   :  { %5166 = vmatprep.subr.bf16.mxu0 %v8250_v41  ;;  %v8304_v41 = vld [vmem:[%s10450_s4 + $0xa64] ss:$8 sps:$4 sm:$0xff]   ;;  %v2521_v38 = vmax.f32 %v9416_v19, %v2496_v40  ;;  %v8310_v19 = vld [vmem:[%s10450_s4 + $0xa74] ss:$8 sps:$4 sm:$0xff]  }
 0x4a6   :  { %v3216_v51 = vpop.f32.mrb[208].mxu0  ;;  %5310 = vmatpush1.bf16.msra.mxu1 %v8245_v42  ;;  %v8299_v42 = vld [vmem:[%s10450_s4 + $0xaf0] ss:$8 sps:$4 sm:$0xff]  }
 0x4a7   :  { %v3223_v20 = vadd.f32 %v3216_v51, %v9988_v63  ;;  %v3218_v57 = vpop.f32.mrb[209].mxu0  ;;  %5311 = vmatprep.subr.bf16.mxu1 %v8253_v49  ;;  %v2518_v63 = vmax.f32 %v9363_v0, %v2493_v34  ;;  %v8266_v0 = vld [vmem:[%s10450_s4 + $0xa00] ss:$8 sps:$4 sm:$0xff]   ;;  %v8308_v34 = vld [vmem:[%s10450_s4 + $0xa70] ss:$8 sps:$4 sm:$0xff]  }
 0x4a8   :  { %v3224_v10 = vadd.f32 %v3218_v57, %v9993_v11  ;;  %v3220_v4 = vpop.f32.mrb[210].mxu0  ;;  %5167 = vmatpush1.bf16.msra.mxu0 %v8248_v24  ;;  %v8263_v11 = vld [vmem:[%s10450_s4 + $0xa90] ss:$8 sps:$4 sm:$0xff]   ;;  %v8307_v24 = vld [vmem:[%s10450_s4 + $0xb84] ss:$8 sps:$4 sm:$0xff]  }
 0x4a9   :  { %v3221_v58 = vpop.f32.mrb[211].mxu0  ;;  %5168 = vmatprep.subr.bf16.mxu0 %v8256_v52  ;;  %v10096_v5 = vadd.f32 %v3357_v27, %v3223_v20  ;;  %v5058_v8 = vpack.c.bf16 %v2518_v63, %v2518_v63  ;;  %v5481_v4 = vpack.c.bf16 %v2521_v38, %v2521_v38  ;;  %v8320_v63 = vld [vmem:[%s10450_s4 + $0xb10] ss:$8 sps:$4 sm:$0xff]  }
 0x4aa   :  { %5312 = vmatpush1.bf16.msra.mxu1 %v8251_v55  ;;  %v10101_v7 = vadd.f32 %v3359_v61, %v3224_v10  ;;  %v8296_v61 = vld [vmem:[%s10450_s4 + $0xa50] ss:$8 sps:$4 sm:$0xff]   ;;  %v8302_v55 = vld [vmem:[%s10450_s4 + $0xa60] ss:$8 sps:$4 sm:$0xff]   ;;  %v2520_v58 = vmax.f32 %v9395_v9, %v2495_v3  ;;  %v8361_v3 = vld [vmem:[%s10450_s4 + $0xc14] ss:$8 sps:$4 sm:$0xff]  }
 0x4ab   :  { %5579 = vmatprep.subr.bf16.mxu1 %v8259_v35  ;;  %v8305_v35 = vld [vmem:[%s10450_s4 + $0xb80] ss:$8 sps:$4 sm:$0xff]  }
 0x4ac   :  { %5169 = vmatpush1.bf16.msra.mxu0 %v8254_v23  ;;  %v8313_v23 = vld [vmem:[%s10450_s4 + $0xb94] ss:$8 sps:$4 sm:$0xff]   ;;  %v8314_v9 = vld [vmem:[%s10450_s4 + $0xb00] ss:$8 sps:$4 sm:$0xff]  }
 0x4ad   :  { %5330 = vmatmul.mubr.bf16.vlgmr.msra.gmra.mrb[240].mxu1 %v5199_v53  ;;  %5170 = vmatprep.subr.bf16.mxu0 %v8262_v2  ;;  %v8316_v2 = vld [vmem:[%s10450_s4 + $0xb04] ss:$8 sps:$4 sm:$0xff]   ;;  %v8322_v53 = vld [vmem:[%s10450_s4 + $0xb14] ss:$8 sps:$4 sm:$0xff]  }
 0x4ae   :  { %5580 = vmatpush1.bf16.msra.mxu1 %v8257_v62  ;;  %5611 = vmatprep.mubr.bf16.mxu1 %v8398_v60  ;;  %v8319_v62 = vld [vmem:[%s10450_s4 + $0xba4] ss:$8 sps:$4 sm:$0xff]  }
 0x4af   :  { %5581 = vmatprep.subr.bf16.mxu1 %v8265_v21  ;;  %v8317_v21 = vld [vmem:[%s10450_s4 + $0xba0] ss:$8 sps:$4 sm:$0xff]  }
 0x4b0   :  { %5171 = vmatpush1.bf16.msra.mxu0 %v8260_v43  ;;  %v8325_v43 = vld [vmem:[%s10450_s4 + $0xbb4] ss:$8 sps:$4 sm:$0xff]  }
 0x4b1   :  { %5438 = vmatprep.subr.bf16.mxu0 %v8268_v45  ;;  %v8328_v45 = vld [vmem:[%s10450_s4 + $0xb24] ss:$8 sps:$4 sm:$0xff]  }
 0x4b2   :  { %5582 = vmatpush1.bf16.msra.mxu1 %v8263_v11  ;;  %v8323_v11 = vld [vmem:[%s10450_s4 + $0xbb0] ss:$8 sps:$4 sm:$0xff]  }
 0x4b3   :  { %5189 = vmatmul.mubr.bf16.vlgmr.msra.gmra.mrb[236].mxu0 %v5058_v8  ;;  %5583 = vmatprep.subr.bf16.mxu1 %v8271_v29  ;;  %v8331_v29 = vld [vmem:[%s10450_s4 + $0xbc4] ss:$8 sps:$4 sm:$0xff]   ;;  %v8334_v8 = vld [vmem:[%s10450_s4 + $0xb34] ss:$8 sps:$4 sm:$0xff]  }
 0x4b4   :  { %5439 = vmatpush1.bf16.msra.mxu0 %v8266_v0  ;;  %5470 = vmatprep.mubr.bf16.mxu0 %v8398_v60  ;;  %v8326_v0 = vld [vmem:[%s10450_s4 + $0xb20] ss:$8 sps:$4 sm:$0xff]  }
 0x4b5   :  { %5440 = vmatprep.subr.bf16.mxu0 %v8274_v22  ;;  %v8329_v22 = vld [vmem:[%s10450_s4 + $0xbc0] ss:$8 sps:$4 sm:$0xff]  }
 0x4b6   :  { %5584 = vmatpush1.bf16.msra.mxu1 %v8269_v25  ;;  %v8337_v25 = vld [vmem:[%s10450_s4 + $0xbd4] ss:$8 sps:$4 sm:$0xff]  }
 0x4b7   :  { %5585 = vmatprep.subr.bf16.mxu1 %v8277_v15  ;;  %v8332_v15 = vld [vmem:[%s10450_s4 + $0xb30] ss:$8 sps:$4 sm:$0xff]  }
 0x4b8   :  { %5441 = vmatpush1.bf16.msra.mxu0 %v8272_v33  ;;  %v8340_v33 = vld [vmem:[%s10450_s4 + $0xb44] ss:$8 sps:$4 sm:$0xff]  }
 0x4b9   :  { %5442 = vmatprep.subr.bf16.mxu0 %v8280_v54  ;;  %v8335_v54 = vld [vmem:[%s10450_s4 + $0xbd0] ss:$8 sps:$4 sm:$0xff]  }
 0x4ba   :  { %5586 = vmatpush1.bf16.msra.mxu1 %v8275_v36  ;;  %v8343_v36 = vld [vmem:[%s10450_s4 + $0xbe4] ss:$8 sps:$4 sm:$0xff]  }
 0x4bb   :  { %5587 = vmatprep.subr.bf16.mxu1 %v8283_v1 }
 0x4bc   :  { %5443 = vmatpush1.bf16.msra.mxu0 %v8278_v26  ;;  %v8338_v26 = vld [vmem:[%s10450_s4 + $0xb40] ss:$8 sps:$4 sm:$0xff]  }
 0x4bd   :  { %5444 = vmatprep.subr.bf16.mxu0 %v8286_v16 }
 0x4be   :  { %5588 = vmatpush1.bf16.msra.mxu1 %v8281_v59  ;;  %v8346_v59 = vld [vmem:[%s10450_s4 + $0xb54] ss:$8 sps:$4 sm:$0xff]  }
 0x4bf   :  { %5589 = vmatprep.subr.bf16.mxu1 %v8289_v39 }
 0x4c0   :  { %v3639_v56 = vpop.f32.mrb[216].mxu1  ;;  %5445 = vmatpush1.bf16.msra.mxu0 %v8284_v30  ;;  %v8341_v30 = vld [vmem:[%s10450_s4 + $0xbe0] ss:$8 sps:$4 sm:$0xff]  }
 0x4c1   :  { %v3641_v14 = vpop.f32.mrb[217].mxu1  ;;  %5446 = vmatprep.subr.bf16.mxu0 %v8292_v28  ;;  %v2498_v28 = vmul.f32 0.2, %v9447_v6 }
 0x4c2   :  { %v3643_v13 = vpop.f32.mrb[218].mxu1  ;;  %5590 = vmatpush1.bf16.msra.mxu1 %v8287_v31 }
 0x4c3   :  { %v3644_v27 = vpop.f32.mrb[219].mxu1  ;;  %5591 = vmatprep.subr.bf16.mxu1 %v8295_v17  ;;  %v8349_v17 = vld [vmem:[%s10450_s4 + $0xbf4] ss:$8 sps:$4 sm:$0xff]   ;;  %v2523_v13 = vmax.f32 %v9447_v6, %v2498_v28 }
 0x4c4   :  { %5447 = vmatpush1.bf16.msra.mxu0 %v8290_v37  ;;  %v8352_v37 = vld [vmem:[%s10450_s4 + $0xb64] ss:$8 sps:$4 sm:$0xff]   ;;  %v8355_v6 = vld [vmem:[%s10450_s4 + $0xb74] ss:$8 sps:$4 sm:$0xff]  }
 0x4c5   :  { %5448 = vmatprep.subr.bf16.mxu0 %v8298_v50  ;;  %v8347_v50 = vld [vmem:[%s10450_s4 + $0xbf0] ss:$8 sps:$4 sm:$0xff]  }
 0x4c6   :  { %v3498_v44 = vpop.f32.mrb[212].mxu0  ;;  %5592 = vmatpush1.bf16.msra.mxu1 %v8293_v48 }
 0x4c7   :  { %v3505_v47 = vadd.f32 %v3498_v44, %v10096_v5  ;;  %v3500_v49 = vpop.f32.mrb[213].mxu0  ;;  %5593 = vmatprep.subr.bf16.mxu1 %v8301_v18  ;;  %v8311_v5 = vld [vmem:[%s10450_s4 + $0xb90] ss:$8 sps:$4 sm:$0xff]  }
 0x4c8   :  { %v3506_v52 = vadd.f32 %v3500_v49, %v10101_v7  ;;  %v3502_v51 = vpop.f32.mrb[214].mxu0  ;;  %5449 = vmatpush1.bf16.msra.mxu0 %v8296_v61  ;;  %v5340_v7 = vpack.c.bf16 %v2520_v58, %v2520_v58  ;;  %v8350_v61 = vld [vmem:[%s10450_s4 + $0xb60] ss:$8 sps:$4 sm:$0xff]   ;;  %v8353_v49 = vld [vmem:[%s10450_s4 + $0xb70] ss:$8 sps:$4 sm:$0xff]  }
 0x4c9   :  { %v3503_v20 = vpop.f32.mrb[215].mxu0  ;;  %5450 = vmatprep.subr.bf16.mxu0 %v8304_v41  ;;  %v10204_v57 = vadd.f32 %v3639_v56, %v3505_v47  ;;  %v8344_v56 = vld [vmem:[%s10450_s4 + $0xb50] ss:$8 sps:$4 sm:$0xff]   ;;  %v2497_v41 = vmul.f32 0.2, %v9425_v32  ;;  %v5763_v47 = vpack.c.bf16 %v2523_v13, %v2523_v13  ;;  %v8381_v13 = vld [vmem:[%s10451_s6 + $0x8] sm:$0xff]  }
 0x4ca   :  { %5594 = vmatpush1.bf16.msra.mxu1 %v8299_v42  ;;  %v10209_v10 = vadd.f32 %v3641_v14, %v3506_v52  ;;  %v8358_v52 = vld [vmem:[%s10450_s4 + $0xc04] ss:$8 sps:$4 sm:$0xff]   ;;  %v8356_v51 = vld [vmem:[%s10450_s4 + $0xc00] ss:$8 sps:$4 sm:$0xff]   ;;  %v8373_v58 = vld [vmem:[%s10450_s4 + $0xc54] ss:$8 sps:$4 sm:$0xff]  }
 0x4cb   :  { %5861 = vmatprep.subr.bf16.mxu1 %v8307_v24  ;;  %v2522_v24 = vmax.f32 %v9425_v32, %v2497_v41  ;;  %v8359_v32 = vld [vmem:[%s10450_s4 + $0xc10] ss:$8 sps:$4 sm:$0xff]   ;;  %v8364_v20 = vld [vmem:[%s10450_s4 + $0xc24] ss:$8 sps:$4 sm:$0xff]  }
 0x4cc   :  { %5451 = vmatpush1.bf16.msra.mxu0 %v8302_v55 }
 0x4cd   :  { %5612 = vmatmul.mubr.bf16.vlgmr.msra.gmra.mrb[244].mxu1 %v5481_v4  ;;  %5452 = vmatprep.subr.bf16.mxu0 %v8310_v19  ;;  %v5622_v55 = vpack.c.bf16 %v2522_v24, %v2522_v24  ;;  %v8362_v19 = vld [vmem:[%s10450_s4 + $0xc20] ss:$8 sps:$4 sm:$0xff]  }
 0x4ce   :  { %5862 = vmatpush1.bf16.msra.mxu1 %v8305_v35  ;;  %5893 = vmatprep.mubr.bf16.mxu1 %v8398_v60  ;;  %v8365_v35 = vld [vmem:[%s10450_s4 + $0xc30] ss:$8 sps:$4 sm:$0xff]   ;;  %v8385_v24 = vld [vmem:[%s10451_s6 + $0x28] sm:$0xff]  }
 0x4cf   :  { %5863 = vmatprep.subr.bf16.mxu1 %v8313_v23  ;;  %v8368_v23 = vld [vmem:[%s10450_s4 + $0xc40] ss:$8 sps:$4 sm:$0xff]  }
 0x4d0   :  { %5453 = vmatpush1.bf16.msra.mxu0 %v8308_v34 }
 0x4d1   :  { %5720 = vmatprep.subr.bf16.mxu0 %v8316_v2 }
 0x4d2   :  { %5864 = vmatpush1.bf16.msra.mxu1 %v8311_v5 }
 0x4d3   :  { %5471 = vmatmul.mubr.bf16.vlgmr.msra.gmra.mrb[240].mxu0 %v5340_v7  ;;  %5865 = vmatprep.subr.bf16.mxu1 %v8319_v62  ;;  %v8371_v62 = vld [vmem:[%s10450_s4 + $0xc50] ss:$8 sps:$4 sm:$0xff]  }
 0x4d4   :  { %5721 = vmatpush1.bf16.msra.mxu0 %v8314_v9  ;;  %5752 = vmatprep.mubr.bf16.mxu0 %v8398_v60  ;;  %v8376_v9 = vld [vmem:[%s10450_s4 + $0xc64] ss:$8 sps:$4 sm:$0xff]  }
 0x4d5   :  { %5722 = vmatprep.subr.bf16.mxu0 %v8322_v53 }
 0x4d6   :  { %5866 = vmatpush1.bf16.msra.mxu1 %v8317_v21 }
 0x4d7   :  { %5867 = vmatprep.subr.bf16.mxu1 %v8325_v43 }
 0x4d8   :  { %5723 = vmatpush1.bf16.msra.mxu0 %v8320_v63 }
 0x4d9   :  { %5724 = vmatprep.subr.bf16.mxu0 %v8328_v45  ;;  %v8374_v45 = vld [vmem:[%s10450_s4 + $0xc60] ss:$8 sps:$4 sm:$0xff]  }
 0x4da   :  { %5868 = vmatpush1.bf16.msra.mxu1 %v8323_v11  ;;  %v2499_v11 = vmul.f32 0.2, %v9107_v46 }
 0x4db   :  { %5869 = vmatprep.subr.bf16.mxu1 %v8331_v29 }
 0x4dc   :  { %5725 = vmatpush1.bf16.msra.mxu0 %v8326_v0  ;;  %v8379_v0 = vld [vmem:[%s10450_s4 + $0xc74] ss:$8 sps:$4 sm:$0xff]  }
 0x4dd   :  { %5726 = vmatprep.subr.bf16.mxu0 %v8334_v8 }
 0x4de   :  { %5870 = vmatpush1.bf16.msra.mxu1 %v8329_v22 }
 0x4df   :  { %5871 = vmatprep.subr.bf16.mxu1 %v8337_v25  ;;  %v8377_v25 = vld [vmem:[%s10450_s4 + $0xc70] ss:$8 sps:$4 sm:$0xff]  }
 0x4e0   :  { %v3921_v1 = vpop.f32.mrb[220].mxu1  ;;  %5727 = vmatpush1.bf16.msra.mxu0 %v8332_v15  ;;  %v2524_v15 = vmax.f32 %v9107_v46, %v2499_v11 }
 0x4e1   :  { %v3923_v16 = vpop.f32.mrb[221].mxu1  ;;  %5728 = vmatprep.subr.bf16.mxu0 %v8340_v33 }
 0x4e2   :  { %v3925_v39 = vpop.f32.mrb[222].mxu1  ;;  %5872 = vmatpush1.bf16.msra.mxu1 %v8335_v54  ;;  %v5904_v33 = vpack.c.bf16 %v2524_v15, %v2524_v15 }
 0x4e3   :  { %v3926_v31 = vpop.f32.mrb[223].mxu1  ;;  %5873 = vmatprep.subr.bf16.mxu1 %v8343_v36 }
 0x4e4   :  { %5729 = vmatpush1.bf16.msra.mxu0 %v8338_v26 }
 0x4e5   :  { %5730 = vmatprep.subr.bf16.mxu0 %v8346_v59 }
 0x4e6   :  { %v3780_v14 = vpop.f32.mrb[216].mxu0  ;;  %5874 = vmatpush1.bf16.msra.mxu1 %v8341_v30 }
 0x4e7   :  { %v3787_v48 = vadd.f32 %v3780_v14, %v10204_v57  ;;  %v3782_v40 = vpop.f32.mrb[217].mxu0  ;;  %5875 = vmatprep.subr.bf16.mxu1 %v8349_v17  ;;  %v8367_v57 = vld [vmem:[%s10450_s4 + $0xc34] ss:$8 sps:$4 sm:$0xff]  }
 0x4e8   :  { %v3788_v27 = vadd.f32 %v3782_v40, %v10209_v10  ;;  %v3784_v18 = vpop.f32.mrb[218].mxu0  ;;  %5731 = vmatpush1.bf16.msra.mxu0 %v8344_v56  ;;  %v8370_v10 = vld [vmem:[%s10450_s4 + $0xc44] ss:$8 sps:$4 sm:$0xff]  }
 0x4e9   :  { %v3785_v44 = vpop.f32.mrb[219].mxu0  ;;  %5732 = vmatprep.subr.bf16.mxu0 %v8352_v37  ;;  %v3928_v42 = vadd.f32 %v3921_v1, %v3787_v48  ;;  %v8380_v56 = vld [vmem:[%s10451_s6] sm:$0xff]  }
 0x4ea   :  { %5876 = vmatpush1.bf16.msra.mxu1 %v8347_v50  ;;  %v3929_v38 = vadd.f32 %v3923_v16, %v3788_v27  ;;  %v8382_v27 = vld [vmem:[%s10451_s6 + $0x10] sm:$0xff]  }
 0x4eb   :  { %6180 = vmatprep.subr.bf16.mxu1 %v8398_v60 }
 0x4ec   :  { %5733 = vmatpush1.bf16.msra.mxu0 %v8350_v61 }
 0x4ed   :  { %5894 = vmatmul.mubr.bf16.vlgmr.msra.gmra.mrb[248].mxu1 %v5763_v47  ;;  %5734 = vmatprep.subr.bf16.mxu0 %v8355_v6 }
 0x4ee   :  { %6181 = vmatpush1.bf16.msra.mxu1 %v8380_v56 }
 0x4ef   :  { %6182 = vmatprep.subr.bf16.mxu1 %v8398_v60 }
 0x4f0   :  { %5735 = vmatpush1.bf16.msra.mxu0 %v8353_v49  ;;  %v8384_v49 = vld [vmem:[%s10451_s6 + $0x20] sm:$0xff]  }
 0x4f1   :  { %6002 = vmatprep.subr.bf16.mxu0 %v8358_v52  ;;  %v8386_v52 = vld [vmem:[%s10451_s6 + $0x30] sm:$0xff]  }
 0x4f2   :  { %6183 = vmatpush1.bf16.msra.mxu1 %v8381_v13 }
 0x4f3   :  { %5753 = vmatmul.mubr.bf16.vlgmr.msra.gmra.mrb[244].mxu0 %v5622_v55  ;;  %6184 = vmatprep.subr.bf16.mxu1 %v8398_v60  ;;  %v8388_v55 = vld [vmem:[%s10451_s6 + $0x40] sm:$0xff]  }
 0x4f4   :  { %6003 = vmatpush1.bf16.msra.mxu0 %v8356_v51  ;;  %6034 = vmatprep.mubr.bf16.mxu0 %v8398_v60  ;;  %v8387_v51 = vld [vmem:[%s10451_s6 + $0x38] sm:$0xff]  }
 0x4f5   :  { %6004 = vmatprep.subr.bf16.mxu0 %v8361_v3 }
 0x4f6   :  { %6185 = vmatpush1.bf16.msra.mxu1 %v8382_v27 }
 0x4f7   :  { %6186 = vmatprep.subr.bf16.mxu1 %v8398_v60 }
 0x4f8   :  { %6005 = vmatpush1.bf16.msra.mxu0 %v8359_v32  ;;  %v8389_v32 = vld [vmem:[%s10451_s6 + $0x48] sm:$0xff]  }
 0x4f9   :  { %6006 = vmatprep.subr.bf16.mxu0 %v8364_v20 }
 0x4fc   :  { %6007 = vmatpush1.bf16.msra.mxu0 %v8362_v19 }
 0x4fd   :  { %6008 = vmatprep.subr.bf16.mxu0 %v8367_v57 }
 0x500   :  { %v4203_v4 = vpop.f32.mrb[224].mxu1  ;;  %6009 = vmatpush1.bf16.msra.mxu0 %v8365_v35 }
 0x501   :  { %v4205_v34 = vpop.f32.mrb[225].mxu1  ;;  %6010 = vmatprep.subr.bf16.mxu0 %v8370_v10  ;;  %v8390_v10 = vld [vmem:[%s10451_s6 + $0x50] sm:$0xff]  }
 0x502   :  { %v4207_v2 = vpop.f32.mrb[226].mxu1 }
 0x503   :  { %v4208_v5 = vpop.f32.mrb[227].mxu1 }
 0x504   :  { %6011 = vmatpush1.bf16.msra.mxu0 %v8368_v23 }
 0x505   :  { %6012 = vmatprep.subr.bf16.mxu0 %v8373_v58 }
 0x506   :  { %v4062_v7 = vpop.f32.mrb[220].mxu0 }
 0x507   :  { %v4069_v53 = vadd.f32 %v4062_v7, %v3928_v42  ;;  %v4064_v21 = vpop.f32.mrb[221].mxu0  ;;  %v8392_v7 = vld [vmem:[%s10451_s6 + $0x60] ss:$0 sps:$4 sm:$0xff]  }
 0x508   :  { %v4070_v43 = vadd.f32 %v4064_v21, %v3929_v38  ;;  %v4066_v63 = vpop.f32.mrb[222].mxu0  ;;  %6013 = vmatpush1.bf16.msra.mxu0 %v8371_v62  ;;  %v8383_v38 = vld [vmem:[%s10451_s6 + $0x18] sm:$0xff]   ;;  %v8393_v21 = vld [vmem:[%s10452_s8] sm:$0xff]  }
 0x509   :  { %v4067_v29 = vpop.f32.mrb[223].mxu0  ;;  %6014 = vmatprep.subr.bf16.mxu0 %v8376_v9  ;;  %v4210_v8 = vadd.f32 %v4203_v4, %v4069_v53  ;;  %6187 = vmatpush1.bf16.msra.mxu1 %v8383_v38  ;;  %v8391_v9 = vld [vmem:[%s10451_s6 + $0x58] sm:$0xff]   ;;  %v6178_v53 = vsel %vm6176_vm1, %v8392_v7, 0 }
 0x50a   :  { %v4211_v22 = vadd.f32 %v4205_v34, %v4070_v43  ;;  %6188 = vmatprep.subr.bf16.mxu1 %v8398_v60  ;;  %v8394_v43 = vld [vmem:[%s10452_s8 + $0x8] sm:$0xff]  }
 0x50c   :  { %6015 = vmatpush1.bf16.msra.mxu0 %v8374_v45 }
 0x50d   :  { %6016 = vmatprep.subr.bf16.mxu0 %v8379_v0  ;;  %6189 = vmatpush1.bf16.msra.mxu1 %v8384_v49  ;;  %v6045_v49 = vld [vmem:[%s10453_s5] sm:$0x3] }
 0x50e   :  { %6190 = vmatprep.subr.bf16.mxu1 %v8398_v60 }
 0x510   :  { %6017 = vmatpush1.bf16.msra.mxu0 %v8377_v25 }
 0x511   :  { %7643 = vmatprep.subr.bf16.mxu0 %v8397_v12  ;;  %6191 = vmatpush1.bf16.msra.mxu1 %v8385_v24 }
 0x512   :  { %6192 = vmatprep.subr.bf16.mxu1 %v8398_v60 }
 0x513   :  { %6035 = vmatmul.mubr.bf16.vlgmr.msra.gmra.mrb[248].mxu0 %v5904_v33 }
 0x514   :  { %7651 = vmatprep.mubr.msk.bf16.mxu0 %vm8399_vm0, %v8397_v12  ;;  %7644 = vmatpush3.bf16.msra.mxu0 %v8393_v21 }
 0x515   :  { %6193 = vmatpush1.bf16.msra.mxu1 %v8386_v52  ;;  %7645 = vmatprep.subr.bf16.mxu0 %v8397_v12 }
 0x516   :  { %6194 = vmatprep.subr.bf16.mxu1 %v8398_v60 }
 0x518   :  { %7646 = vmatpush3.bf16.msra.mxu0 %v8394_v43 }
 0x519   :  { %6195 = vmatpush1.bf16.msra.mxu1 %v8387_v51  ;;  %7647 = vmatprep.subr.bf16.mxu0 %v8397_v12 }
 0x51a   :  { %6196 = vmatprep.subr.bf16.mxu1 %v8398_v60 }
 0x51d   :  { %6197 = vmatpush1.bf16.msra.mxu1 %v8388_v55 }
 0x51e   :  { %6198 = vmatprep.subr.bf16.mxu1 %v8398_v60 }
 0x520   :  { %v4485_v54 = vpop.f32.mrb[228].mxu1 }
 0x521   :  { %v4487_v36 = vpop.f32.mrb[229].mxu1  ;;  %6199 = vmatpush1.bf16.msra.mxu1 %v8389_v32 }
 0x522   :  { %v4489_v1 = vpop.f32.mrb[230].mxu1  ;;  %6200 = vmatprep.subr.bf16.mxu1 %v8398_v60 }
 0x523   :  { %v4490_v26 = vpop.f32.mrb[231].mxu1 }
 0x525   :  { %6201 = vmatpush1.bf16.msra.mxu1 %v8390_v10 }
 0x526   :  { %v4344_v16 = vpop.f32.mrb[224].mxu0  ;;  %6202 = vmatprep.subr.bf16.mxu1 %v8398_v60 }
 0x527   :  { %v4351_v59 = vadd.f32 %v4344_v16, %v4210_v8  ;;  %v4346_v39 = vpop.f32.mrb[225].mxu0 }
 0x528   :  { %v4352_v30 = vadd.f32 %v4346_v39, %v4211_v22  ;;  %v4348_v28 = vpop.f32.mrb[226].mxu0 }
 0x529   :  { %v4349_v31 = vpop.f32.mrb[227].mxu0  ;;  %v4492_v46 = vadd.f32 %v4485_v54, %v4351_v59  ;;  %6203 = vmatpush1.bf16.msra.mxu1 %v8391_v9  ;;  %v8396_v9 = vld [vmem:[%s10452_s8 + $0x18] sm:$0x3f]  }
 0x52a   :  { %v4493_v17 = vadd.f32 %v4487_v36, %v4352_v30  ;;  %6204 = vmatprep.subr.bf16.mxu1 %v8398_v60  ;;  %v6267_v7 = vsel %vm6265_vm3, %v8396_v9, 0 }
 0x52d   :  { %6205 = vmatpush1.bf16.msra.mxu1 %v6178_v53  ;;  %v7205_v53 = vld [vmem:[%s10454_s7] ss:$0 sm:$0xff] }
 0x540   :  { %v4767_v37 = vpop.f32.mrb[232].mxu1 }
 0x541   :  { %v4769_v14 = vpop.f32.mrb[233].mxu1 }
 0x542   :  { %v4771_v50 = vpop.f32.mrb[234].mxu1 }
 0x543   :  { %v4772_v48 = vpop.f32.mrb[235].mxu1 }
 0x546   :  { %v4626_v40 = vpop.f32.mrb[228].mxu0 }
 0x547   :  { %v4633_v18 = vadd.f32 %v4626_v40, %v4492_v46  ;;  %v4628_v61 = vpop.f32.mrb[229].mxu0 }
 0x548   :  { %v4634_v41 = vadd.f32 %v4628_v61, %v4493_v17  ;;  %v4630_v44 = vpop.f32.mrb[230].mxu0 }
 0x549   :  { %v4631_v6 = vpop.f32.mrb[231].mxu0  ;;  %v4774_v42 = vadd.f32 %v4767_v37, %v4633_v18 }
 0x54a   :  { %v4775_v47 = vadd.f32 %v4769_v14, %v4634_v41 }
 0x560   :  { %v5049_v3 = vpop.f32.mrb[236].mxu1 }
 0x561   :  { %v5051_v20 = vpop.f32.mrb[237].mxu1 }
 0x562   :  { %v5053_v19 = vpop.f32.mrb[238].mxu1 }
 0x563   :  { %v5054_v57 = vpop.f32.mrb[239].mxu1 }
 0x566   :  { %v4908_v35 = vpop.f32.mrb[232].mxu0 }
 0x567   :  { %v4915_v4 = vadd.f32 %v4908_v35, %v4774_v42  ;;  %v4910_v23 = vpop.f32.mrb[233].mxu0  ;;  %v6047_v42 = vlaneseq }
 0x568   :  { %v4916_v34 = vadd.f32 %v4910_v23, %v4775_v47  ;;  %v4912_v58 = vpop.f32.mrb[234].mxu0 }
 0x569   :  { %v4913_v2 = vpop.f32.mrb[235].mxu0  ;;  %v5056_v5 = vadd.f32 %v5049_v3, %v4915_v4  ;;  %v6048_v38 = vshrl.u32 %v6047_v42, 7 }
 0x56a   :  { %v5057_v62 = vadd.f32 %v5051_v20, %v4916_v34 }
 0x56b   :  { %v6049_v47 = vsub.s32 0, %v6048_v38  ;;  %v6053_v24 = vsub.s32 1, %v6048_v38 }
 0x56d   :  { %v6050_v52 = vrot.slane %v6045_v49, %v6049_v47  ;;  %v6054_v55 = vrot.slane %v6045_v49, %v6053_v24 }
 0x580   :  { %v5331_v60 = vpop.f32.mrb[240].mxu1 }
 0x581   :  { %v5333_v63 = vpop.f32.mrb[241].mxu1 }
 0x582   :  { %v5335_v45 = vpop.f32.mrb[242].mxu1 }
 0x583   :  { %v5336_v11 = vpop.f32.mrb[243].mxu1 }
 0x586   :  { %v5190_v29 = vpop.f32.mrb[236].mxu0 }
 0x587   :  { %v5197_v0 = vadd.f32 %v5190_v29, %v5056_v5  ;;  %v5192_v8 = vpop.f32.mrb[237].mxu0 }
 0x588   :  { %v5198_v22 = vadd.f32 %v5192_v8, %v5057_v62  ;;  %v5194_v25 = vpop.f32.mrb[238].mxu0  ;;  %v8395_v62 = vld [vmem:[%s10452_s8 + $0x10] sm:$0xff]  }
 0x589   :  { %v5195_v15 = vpop.f32.mrb[239].mxu0  ;;  %v5338_v33 = vadd.f32 %v5331_v60, %v5197_v0  ;;  %7648 = vmatpush3.bf16.msra.mxu0 %v8395_v62  ;;  %v7220_v0 = vld [vmem:[%s10455_s9] ss:$0 sm:$0xff] }
 0x58a   :  { %v5339_v54 = vadd.f32 %v5333_v63, %v5198_v22  ;;  %7649 = vmatprep.subr.bf16.mxu0 %v8397_v12 }
 0x58d   :  { %7650 = vmatpush3.bf16.msra.mxu0 %v6267_v7 }
 0x5a0   :  { %v5613_v36 = vpop.f32.mrb[244].mxu1 }
 0x5a1   :  { %v5615_v1 = vpop.f32.mrb[245].mxu1 }
 0x5a2   :  { %v5617_v26 = vpop.f32.mrb[246].mxu1 }
 0x5a3   :  { %v5618_v16 = vpop.f32.mrb[247].mxu1 }
 0x5a6   :  { %v5472_v59 = vpop.f32.mrb[240].mxu0 }
 0x5a7   :  { %v5479_v39 = vadd.f32 %v5472_v59, %v5338_v33  ;;  %v5474_v30 = vpop.f32.mrb[241].mxu0 }
 0x5a8   :  { %v5480_v28 = vadd.f32 %v5474_v30, %v5339_v54  ;;  %v5476_v31 = vpop.f32.mrb[242].mxu0 }
 0x5a9   :  { %v5477_v46 = vpop.f32.mrb[243].mxu0  ;;  %v5620_v17 = vadd.f32 %v5613_v36, %v5479_v39 }
 0x5aa   :  { %v5621_v56 = vadd.f32 %v5615_v1, %v5480_v28 }
 0x5c0   :  { %v5895_v37 = vpop.f32.mrb[248].mxu1 }
 0x5c1   :  { %v5897_v14 = vpop.f32.mrb[249].mxu1 }
 0x5c2   :  { %v5899_v50 = vpop.f32.mrb[250].mxu1 }
 0x5c3   :  { %v5900_v13 = vpop.f32.mrb[251].mxu1 }
 0x5c6   :  { %v5754_v48 = vpop.f32.mrb[244].mxu0 }
 0x5c7   :  { %v5761_v40 = vadd.f32 %v5754_v48, %v5620_v17  ;;  %v5756_v27 = vpop.f32.mrb[245].mxu0 }
 0x5c8   :  { %v5762_v18 = vadd.f32 %v5756_v27, %v5621_v56  ;;  %v5758_v61 = vpop.f32.mrb[246].mxu0 }
 0x5c9   :  { %v5759_v41 = vpop.f32.mrb[247].mxu0  ;;  %v5902_v44 = vadd.f32 %v5895_v37, %v5761_v40 }
 0x5ca   :  { %v5903_v6 = vadd.f32 %v5897_v14, %v5762_v18 }
 0x5e6   :  { %v6036_v51 = vpop.f32.mrb[248].mxu0 }
 0x5e7   :  { %v6043_v3 = vadd.f32 %v6036_v51, %v5902_v44  ;;  %v6038_v32 = vpop.f32.mrb[249].mxu0 }
 0x5e8   :  { %v6044_v20 = vadd.f32 %v6038_v32, %v5903_v6  ;;  %v6040_v19 = vpop.f32.mrb[250].mxu0 }
 0x5e9   :  { %v6057_v57 = vadd.f32 %v6050_v52, %v6043_v3  ;;  %v6041_v35 = vpop.f32.mrb[251].mxu0 }
 0x5ea   :  { %v6058_v10 = vadd.f32 %v6054_v55, %v6044_v20 }
 0x5eb   :  { %v6059_v4 = vmul.f32 0.2, %v6057_v57 }
 0x5ec   :  { %v6060_v23 = vmul.f32 0.2, %v6058_v10 }
 0x5ed   :  { %v6061_v34 = vmax.f32 %v6057_v57, %v6059_v4 }
 0x5ee   :  { %v6062_v58 = vmax.f32 %v6058_v10, %v6060_v23 }
 0x5ef   :  { %v6063_v5 = vpack.c.bf16 %v6061_v34, %v6061_v34 }
 0x5f0   :  { %v6064_v2 = vpack.c.bf16 %v6062_v58, %v6062_v58 }
 0x5f2   :  { %7219 = vmatprep.mubr.msk.bf16.mxu1 %vm6172_vm2, %v6064_v2 }
 0x5f3   :  { %6213 = vmatmul.mubr.bf16.vlgmr.msra.gmra.mrb[252].mxu1 %v6063_v5 }
 0x6c6   :  { %v6214_v21 = vpop.f32.mrb[252].mxu1 }
 0x6c7   :  { %v6215_v43 = vadd.f32 %v7205_v53, %v6214_v21  ;;  %v6216_v60 = vpop.f32.mrb[253].mxu1 }
 0x6c8   :  { %v6217_v63 = vpop.f32.mrb[254].mxu1 }
 0x6c9   :  { %v6220_v45 = vmul.f32 0.2, %v6215_v43  ;;  %v6218_v11 = vpop.f32.mrb[255].mxu1 }
 0x6cb   :  { %v6221_v29 = vmax.f32 %v6215_v43, %v6220_v45 }
 0x6cd   :  { %v6222_v12 = vpack.c.bf16 %v6221_v29, %v6221_v29 }
 0x6cf   :  { %7652 = vmatmul.mubr.msk.bf16.vlgmr.msra.gmra.mrb[252].mxu0 %vm6261_vm4, %v6222_v12 }
 0x7a2   :  { %v6303_v8 = vpop.f32.mrb[252].mxu0 }
 0x7a3   :  { %v6304_v22 = vadd.f32 %v7220_v0, %v6303_v8  ;;  %v7653_v25 = vpop.f32.mrb[253].mxu0 }
 0x7a4   :  { %v6306_v15 = vpop.f32.mrb[254].mxu0 }
 0x7a5   :  { %6310 = vst.msk [vmem:[%s10456_s10] sm:$0xff] %vm6309_vm5, %v6304_v22  ;;  %v7654_v33 = vpop.f32.mrb[255].mxu0 }

</bundles_post_ra>
